<compile_context>
chip_gen: v6e
topology: v6e:2x2x1
jax: 0.10.0
libtpu: 0.0.40
codegen_flags: <defaults>
</compile_context>

<pallas_src>
import numpy as np
import jax
import jax.numpy as jnp
from jax.experimental import pallas as pl
from jax.experimental.pallas import tpu as pltpu

# ----------------------------- model dimensions -------------------------------
B = 2                 # batch
C = 32                # embedding dim
H = W = 8             # input_resolution
N = H * W             # tokens per image (window == whole sequence)
HEADS = 4
HD = C // HEADS       # head dim = 8
HIDDEN = 4 * C        # mlp_ratio = 4.0
LN_EPS = 1e-5
ATTN_SCALE = float(C) ** -0.5     # spec: WindowAttention.scale = dim ** -0.5 (full dim)

# packed-vector slab layout: one (8, 128) tile, one parameter vector per row
VEC_LANES = 128
(_R_LN1G, _R_LN1B, _R_LN2G, _R_LN2B,
 _R_BPROJ, _R_BM2, _R_BQKV, _R_BM1) = range(8)
assert 3 * C <= VEC_LANES and HIDDEN <= VEC_LANES


# ----------------------------- in-kernel helpers -------------------------------
def _erf(x):
    # Abramowitz & Stegun 7.1.26 (|err| < 1.5e-7); used because lax.erf has no
    # guaranteed Pallas-TPU lowering. Matches torch nn.GELU() (exact erf GELU).
    a1, a2, a3, a4, a5 = 0.254829592, -0.284496736, 1.421413741, -1.453152027, 1.061405429
    p = 0.3275911
    sgn = jnp.where(x >= 0.0, 1.0, -1.0)
    ax = jnp.abs(x)
    t = 1.0 / (1.0 + p * ax)
    poly = ((((a5 * t + a4) * t + a3) * t + a2) * t + a1) * t
    return sgn * (1.0 - poly * jnp.exp(-ax * ax))


def _gelu_exact(x):
    return 0.5 * x * (1.0 + _erf(x * (1.0 / np.sqrt(2.0))))


def _layernorm(x, g, b):
    mu = jnp.mean(x, axis=-1, keepdims=True)
    var = jnp.mean(jnp.square(x - mu), axis=-1, keepdims=True)
    return (x - mu) * jax.lax.rsqrt(var + LN_EPS) * g + b


# ----------------------------------- kernel ------------------------------------
def swin_block_kernel(x_ref, w_ref, wm2_ref, vec_ref, out_ref):
    """Fused SwinTransformerBlock forward (eval mode).

    x_ref   : (B, C, N)        channel-major input (view of (B, C, H, W))
    w_ref   : (C, 4*C+HIDDEN)  [ w_qkv^T | w_proj^T | w_mlp1^T ]
    wm2_ref : (HIDDEN, C)      w_mlp2^T
    vec_ref : (8, 128)         packed LN gammas/betas and biases (one per row)
    out_ref : (B, C, N)
    """
    vec = vec_ref[...]
    ln1_g  = vec[_R_LN1G:_R_LN1G + 1, :C]
    ln1_b  = vec[_R_LN1B:_R_LN1B + 1, :C]
    ln2_g  = vec[_R_LN2G:_R_LN2G + 1, :C]
    ln2_b  = vec[_R_LN2B:_R_LN2B + 1, :C]
    b_proj = vec[_R_BPROJ:_R_BPROJ + 1, :C]
    b_m2   = vec[_R_BM2:_R_BM2 + 1, :C]
    b_qkv  = vec[_R_BQKV:_R_BQKV + 1, :3 * C]
    b_m1   = vec[_R_BM1:_R_BM1 + 1, :HIDDEN]

    # ---- tokens: (B, C, N) -> (B*N, C), done in-VMEM (two small XLU transposes)
    x = x_ref[...]
    x_tok = jnp.concatenate([x[b].T for b in range(B)], axis=0)        # (B*N, C) = (128, 32)

    # ---- LN1 + fused QKV (M = B*N = 128 fills the MXU sublane dim)
    xn = _layernorm(x_tok, ln1_g, ln1_b)
    qkv = jnp.dot(xn, w_ref[:, 0:3 * C],
                  preferred_element_type=jnp.float32) + b_qkv          # (128, 3C)

    # ---- multi-head attention, batched over B; concat-free (proj folded per head)
    w_proj = w_ref[:, 3 * C:4 * C]                                     # (C, C)
    proj = jnp.zeros((B * N, C), jnp.float32)
    for h in range(HEADS):
        q = qkv[:, h * HD:(h + 1) * HD].reshape(B, N, HD)
        k = qkv[:, C + h * HD:C + (h + 1) * HD].reshape(B, N, HD)
        v = qkv[:, 2 * C + h * HD:2 * C + (h + 1) * HD].reshape(B, N, HD)
        s = jnp.einsum('bqd,bkd->bqk', q, k,
                       preferred_element_type=jnp.float32) * ATTN_SCALE  # (B, N, N)
        s = s - jnp.max(s, axis=-1, keepdims=True)
        e = jnp.exp(s)
        p = e * pl.reciprocal(jnp.sum(e, axis=-1, keepdims=True), approx=True)
        o = jnp.einsum('bqk,bkd->bqd', p, v,
                       preferred_element_type=jnp.float32).reshape(B * N, HD)
        proj = proj + jnp.dot(o, w_proj[h * HD:(h + 1) * HD, :],
                              preferred_element_type=jnp.float32)
    proj = proj + b_proj

    # ---- residual 1 (drop_path = identity in eval)
    x2 = x_tok + proj

    # ---- LN2 + MLP
    x2n = _layernorm(x2, ln2_g, ln2_b)
    h1 = jnp.dot(x2n, w_ref[:, 4 * C:4 * C + HIDDEN],
                 preferred_element_type=jnp.float32) + b_m1            # (128, HIDDEN)
    h1 = _gelu_exact(h1)
    mlp = jnp.dot(h1, wm2_ref[...], preferred_element_type=jnp.float32) + b_m2

    # ---- residual 2: per the reference module the residual is on norm2(x)
    xout = x2n + mlp                                                   # (B*N, C)

    # ---- back to channel-major (B, C, N), in-VMEM transposes
    for b in range(B):
        out_ref[b] = xout[b * N:(b + 1) * N, :].T


# -------------------------------- pallas wrapper --------------------------------
_COST = pl.CostEstimate(
    flops=(2 * B * N * C * (3 * C)                            # qkv
           + HEADS * (2 * B * N * N * HD * 2                  # q@k^T and p@v
                      + 2 * B * N * HD * C)                   # folded per-head proj
           + 2 * 2 * B * N * C * HIDDEN),                     # two MLP layers
    transcendentals=B * HEADS * N * N + B * N * HIDDEN + 2 * B * N,
    bytes_accessed=4 * (2 * B * C * N + C * (4 * C + HIDDEN) + HIDDEN * C + 8 * VEC_LANES),
)


def _full(shape):
    return pl.BlockSpec(shape, lambda i, _s=shape: (0,) * len(_s))


@jax.jit
def swin_block_forward(x, w_slab, w_m2, vec):
    """x: (B, C, H, W) float32 -> (B, C, H, W). SwinTransformerBlock.forward (eval)."""
    x_flat = x.reshape(B, C, N)                      # contiguous view, free
    out = pl.pallas_call(
        swin_block_kernel,
        out_shape=jax.ShapeDtypeStruct((B, C, N), jnp.float32),
        grid=(1,),                                   # whole block in one step; batch is
                                                     # folded into the matmul M dim inside
        in_specs=[
            _full((B, C, N)),
            _full((C, 4 * C + HIDDEN)),
            _full((HIDDEN, C)),
            _full((8, VEC_LANES)),
        ],
        out_specs=_full((B, C, N)),
        compiler_params=pltpu.CompilerParams(
            dimension_semantics=("arbitrary",),
            vmem_limit_bytes=32 * 1024 * 1024),
        cost_estimate=_COST,
    )(x_flat, w_slab, w_m2, vec)
    return out.reshape(B, C, H, W)


# ------------------------------- parameter setup --------------------------------
def init_params(key):
    """PyTorch-layout parameters (nn.Linear weights are (out_features, in_features))."""
    keys = iter(jax.random.split(key, 16))

    def nrm(shape, s=0.1):
        return jax.random.normal(next(keys), shape, dtype=jnp.float32) * s

    def unif(shape, lo, hi):
        return jax.random.uniform(next(keys), shape, dtype=jnp.float32, minval=lo, maxval=hi)

    return {
        "ln1_g": unif((C,), 0.8, 1.2), "ln1_b": nrm((C,)),
        "w_qkv": nrm((3 * C, C)),      "b_qkv": nrm((3 * C,)),
        "w_proj": nrm((C, C)),         "b_proj": nrm((C,)),
        "ln2_g": unif((C,), 0.8, 1.2), "ln2_b": nrm((C,)),
        "w_mlp1": nrm((HIDDEN, C)),    "b_mlp1": nrm((HIDDEN,)),
        "w_mlp2": nrm((C, HIDDEN)),    "b_mlp2": nrm((C,)),
    }


def pack_params(p):
    """Consolidate parameters into the kernel's 3 weight operands (done once, host-side)."""
    w_slab = jnp.concatenate(
        [p["w_qkv"].T, p["w_proj"].T, p["w_mlp1"].T], axis=1)          # (C, 4*C + HIDDEN)
    w_m2 = p["w_mlp2"].T                                                # (HIDDEN, C)

    def row(v):
        return jnp.pad(v, (0, VEC_LANES - v.shape[0]))[None, :]

    vec = jnp.concatenate([        # row order must match the _R_* indices above
        row(p["ln1_g"]), row(p["ln1_b"]), row(p["ln2_g"]), row(p["ln2_b"]),
        row(p["b_proj"]), row(p["b_mlp2"]), row(p["b_qkv"]), row(p["b_mlp1"]),
    ], axis=0)                                                          # (8, 128)
    return w_slab, w_m2, vec


if __name__ == "__main__":
    root = jax.random.PRNGKey(0)
    k_x, k_p = jax.random.split(root)
    params = init_params(k_p)
    w_slab, w_m2, vec = pack_params(params)
    x = jax.random.normal(k_x, (B, C, H, W), dtype=jnp.float32)

    out = swin_block_forward(x, w_slab, w_m2, vec)
    jax.block_until_ready(out)
    assert out.shape == (B, C, H, W) and out.dtype == jnp.float32
    assert bool(jnp.all(jnp.isfinite(out)))
    print("KERNEL_OK")
</pallas_src>

<mosaic_0001>
module attributes {stable_mosaic.version = 11 : i64} {
  func.func @swin_block_kernel(%arg0: i32, %arg1: memref<2x32x64xf32, #tpu.memory_space<vmem>>, %arg2: memref<32x256xf32, #tpu.memory_space<vmem>>, %arg3: memref<128x32xf32, #tpu.memory_space<vmem>>, %arg4: memref<8x128xf32, #tpu.memory_space<vmem>>, %arg5: memref<2x32x64xf32, #tpu.memory_space<vmem>>) attributes {dimension_semantics = [#tpu.dimension_semantics<arbitrary>], iteration_bounds = array<i64: 1>, scalar_prefetch = 0 : i64, scratch_operands = 0 : i64, tpu.core_type = #tpu.core_type<tc>, window_params = [{pipeline_mode = #tpu.pipeline_mode<synchronous>, transform_indices = @transform_0, window_bounds = array<i64: 2, 32, 64>}, {pipeline_mode = #tpu.pipeline_mode<synchronous>, transform_indices = @transform_1, window_bounds = array<i64: 32, 256>}, {pipeline_mode = #tpu.pipeline_mode<synchronous>, transform_indices = @transform_2, window_bounds = array<i64: 128, 32>}, {pipeline_mode = #tpu.pipeline_mode<synchronous>, transform_indices = @transform_3, window_bounds = array<i64: 8, 128>}, {pipeline_mode = #tpu.pipeline_mode<synchronous>, transform_indices = @transform_4, window_bounds = array<i64: 2, 32, 64>}]} {
    %c0 = arith.constant 0 : index
    %c0_0 = arith.constant 0 : index
    %0 = vector.load %arg4[%c0, %c0_0] : memref<8x128xf32, #tpu.memory_space<vmem>>, vector<8x128xf32>
    %1 = vector.extract_strided_slice %0 {offsets = [0, 0], sizes = [1, 32], strides = [1, 1]} : vector<8x128xf32> to vector<1x32xf32>
    %2 = vector.extract_strided_slice %0 {offsets = [1, 0], sizes = [1, 32], strides = [1, 1]} : vector<8x128xf32> to vector<1x32xf32>
    %3 = vector.extract_strided_slice %0 {offsets = [2, 0], sizes = [1, 32], strides = [1, 1]} : vector<8x128xf32> to vector<1x32xf32>
    %4 = vector.extract_strided_slice %0 {offsets = [3, 0], sizes = [1, 32], strides = [1, 1]} : vector<8x128xf32> to vector<1x32xf32>
    %5 = vector.extract_strided_slice %0 {offsets = [4, 0], sizes = [1, 32], strides = [1, 1]} : vector<8x128xf32> to vector<1x32xf32>
    %6 = vector.extract_strided_slice %0 {offsets = [5, 0], sizes = [1, 32], strides = [1, 1]} : vector<8x128xf32> to vector<1x32xf32>
    %7 = vector.extract_strided_slice %0 {offsets = [6, 0], sizes = [1, 96], strides = [1, 1]} : vector<8x128xf32> to vector<1x96xf32>
    %8 = vector.extract_strided_slice %0 {offsets = [7, 0], sizes = [1, 128], strides = [1, 1]} : vector<8x128xf32> to vector<1x128xf32>
    %c0_1 = arith.constant 0 : index
    %c0_2 = arith.constant 0 : index
    %c0_3 = arith.constant 0 : index
    %9 = vector.load %arg1[%c0_1, %c0_2, %c0_3] : memref<2x32x64xf32, #tpu.memory_space<vmem>>, vector<2x32x64xf32>
    %10 = vector.extract_strided_slice %9 {offsets = [0, 0, 0], sizes = [1, 32, 64], strides = [1, 1, 1]} : vector<2x32x64xf32> to vector<1x32x64xf32>
    %11 = vector.shape_cast %10 : vector<1x32x64xf32> to vector<32x64xf32>
    %12 = tpu.transpose %11, [1, 0] : vector<32x64xf32> -> vector<64x32xf32>
    %13 = vector.extract_strided_slice %9 {offsets = [1, 0, 0], sizes = [1, 32, 64], strides = [1, 1, 1]} : vector<2x32x64xf32> to vector<1x32x64xf32>
    %14 = vector.shape_cast %13 : vector<1x32x64xf32> to vector<32x64xf32>
    %15 = tpu.transpose %14, [1, 0] : vector<32x64xf32> -> vector<64x32xf32>
    %16 = tpu.concatenate %12, %15 in 0 : vector<64x32xf32>, vector<64x32xf32> -> vector<128x32xf32>
    %cst = arith.constant dense<0.000000e+00> : vector<128xf32>
    %17 = vector.multi_reduction <add>, %16, %cst [1] : vector<128x32xf32> to vector<128xf32>
    %18 = vector.shape_cast %17 : vector<128xf32> to vector<128x1xf32>
    %cst_4 = arith.constant 3.200000e+01 : f32
    %19 = vector.broadcast %cst_4 : f32 to vector<128x1xf32>
    %20 = arith.divf %18, %19 : vector<128x1xf32>
    %21 = vector.broadcast %20 : vector<128x1xf32> to vector<128x32xf32>
    %22 = arith.subf %16, %21 : vector<128x32xf32>
    %23 = arith.mulf %22, %22 : vector<128x32xf32>
    %cst_5 = arith.constant dense<0.000000e+00> : vector<128xf32>
    %24 = vector.multi_reduction <add>, %23, %cst_5 [1] : vector<128x32xf32> to vector<128xf32>
    %25 = vector.shape_cast %24 : vector<128xf32> to vector<128x1xf32>
    %cst_6 = arith.constant 3.200000e+01 : f32
    %26 = vector.broadcast %cst_6 : f32 to vector<128x1xf32>
    %27 = arith.divf %25, %26 : vector<128x1xf32>
    %28 = vector.broadcast %20 : vector<128x1xf32> to vector<128x32xf32>
    %29 = arith.subf %16, %28 : vector<128x32xf32>
    %cst_7 = arith.constant 9.99999974E-6 : f32
    %30 = vector.broadcast %cst_7 : f32 to vector<128x1xf32>
    %31 = arith.addf %27, %30 : vector<128x1xf32>
    %32 = math.rsqrt %31 : vector<128x1xf32>
    %33 = vector.broadcast %32 : vector<128x1xf32> to vector<128x32xf32>
    %34 = arith.mulf %29, %33 : vector<128x32xf32>
    %35 = vector.broadcast %1 : vector<1x32xf32> to vector<128x32xf32>
    %36 = arith.mulf %34, %35 : vector<128x32xf32>
    %37 = vector.broadcast %2 : vector<1x32xf32> to vector<128x32xf32>
    %38 = arith.addf %36, %37 : vector<128x32xf32>
    %c0_8 = arith.constant 0 : index
    %c0_9 = arith.constant 0 : index
    %39 = vector.load %arg2[%c0_8, %c0_9] : memref<32x256xf32, #tpu.memory_space<vmem>>, vector<32x96xf32>
    %cst_10 = arith.constant dense<0.000000e+00> : vector<128x96xf32>
    %40 = tpu.matmul %38, %39, %cst_10 {dimension_numbers = #tpu.dot_dimension_numbers<[1], [0], [0], [1], [0, 0, 1, 1], [], []>} : vector<128x32xf32>, vector<32x96xf32>, vector<128x96xf32> -> vector<128x96xf32>
    %41 = vector.broadcast %7 : vector<1x96xf32> to vector<128x96xf32>
    %42 = arith.addf %40, %41 : vector<128x96xf32>
    %c0_11 = arith.constant 0 : index
    %c96 = arith.constant 96 : index
    %43 = vector.load %arg2[%c0_11, %c96] : memref<32x256xf32, #tpu.memory_space<vmem>>, vector<32x32xf32>
    %cst_12 = arith.constant 0.000000e+00 : f32
    %44 = vector.broadcast %cst_12 : f32 to vector<128x32xf32>
    %45 = vector.extract_strided_slice %42 {offsets = [0, 0], sizes = [128, 8], strides = [1, 1]} : vector<128x96xf32> to vector<128x8xf32>
    %46 = vector.shape_cast %45 : vector<128x8xf32> to vector<2x64x8xf32>
    %47 = vector.extract_strided_slice %42 {offsets = [0, 32], sizes = [128, 8], strides = [1, 1]} : vector<128x96xf32> to vector<128x8xf32>
    %48 = vector.shape_cast %47 : vector<128x8xf32> to vector<2x64x8xf32>
    %49 = vector.extract_strided_slice %42 {offsets = [0, 64], sizes = [128, 8], strides = [1, 1]} : vector<128x96xf32> to vector<128x8xf32>
    %50 = vector.shape_cast %49 : vector<128x8xf32> to vector<2x64x8xf32>
    "tpu.trace_start"() <{level = 10 : i32, message = "bqd,bkd->bqk"}> : () -> ()
    %cst_13 = arith.constant dense<0.000000e+00> : vector<2x64x64xf32>
    %51 = tpu.matmul %46, %48, %cst_13 {dimension_numbers = #tpu.dot_dimension_numbers<[2], [2], [1], [1], [0, 0, 0, 1, 1, 1], [0], [0]>} : vector<2x64x8xf32>, vector<2x64x8xf32>, vector<2x64x64xf32> -> vector<2x64x64xf32>
    "tpu.trace_stop"() : () -> ()
    %cst_14 = arith.constant 0.176776692 : f32
    %52 = vector.broadcast %cst_14 : f32 to vector<2x64x64xf32>
    %53 = arith.mulf %51, %52 : vector<2x64x64xf32>
    %cst_15 = arith.constant dense<0xFF800000> : vector<2x64xf32>
    %54 = vector.multi_reduction <maximumf>, %53, %cst_15 [2] : vector<2x64x64xf32> to vector<2x64xf32>
    %55 = vector.shape_cast %54 : vector<2x64xf32> to vector<2x64x1xf32>
    %56 = vector.broadcast %55 : vector<2x64x1xf32> to vector<2x64x64xf32>
    %57 = arith.subf %53, %56 : vector<2x64x64xf32>
    %58 = math.exp %57 : vector<2x64x64xf32>
    %cst_16 = arith.constant dense<0.000000e+00> : vector<2x64xf32>
    %59 = vector.multi_reduction <add>, %58, %cst_16 [2] : vector<2x64x64xf32> to vector<2x64xf32>
    %60 = vector.shape_cast %59 : vector<2x64xf32> to vector<2x64x1xf32>
    %61 = tpu.reciprocal %60 {approx = true} : vector<2x64x1xf32> -> vector<2x64x1xf32>
    %62 = vector.broadcast %61 : vector<2x64x1xf32> to vector<2x64x64xf32>
    %63 = arith.mulf %58, %62 : vector<2x64x64xf32>
    "tpu.trace_start"() <{level = 10 : i32, message = "bqk,bkd->bqd"}> : () -> ()
    %cst_17 = arith.constant dense<0.000000e+00> : vector<2x64x8xf32>
    %64 = tpu.matmul %63, %50, %cst_17 {dimension_numbers = #tpu.dot_dimension_numbers<[2], [1], [1], [2], [0, 0, 0, 1, 1, 2], [0], [0]>} : vector<2x64x64xf32>, vector<2x64x8xf32>, vector<2x64x8xf32> -> vector<2x64x8xf32>
    "tpu.trace_stop"() : () -> ()
    %65 = vector.shape_cast %64 : vector<2x64x8xf32> to vector<128x8xf32>
    %66 = vector.extract_strided_slice %43 {offsets = [0, 0], sizes = [8, 32], strides = [1, 1]} : vector<32x32xf32> to vector<8x32xf32>
    %cst_18 = arith.constant dense<0.000000e+00> : vector<128x32xf32>
    %67 = tpu.matmul %65, %66, %cst_18 {dimension_numbers = #tpu.dot_dimension_numbers<[1], [0], [0], [1], [0, 0, 1, 1], [], []>} : vector<128x8xf32>, vector<8x32xf32>, vector<128x32xf32> -> vector<128x32xf32>
    %68 = arith.addf %44, %67 : vector<128x32xf32>
    %69 = vector.extract_strided_slice %42 {offsets = [0, 8], sizes = [128, 8], strides = [1, 1]} : vector<128x96xf32> to vector<128x8xf32>
    %70 = vector.shape_cast %69 : vector<128x8xf32> to vector<2x64x8xf32>
    %71 = vector.extract_strided_slice %42 {offsets = [0, 40], sizes = [128, 8], strides = [1, 1]} : vector<128x96xf32> to vector<128x8xf32>
    %72 = vector.shape_cast %71 : vector<128x8xf32> to vector<2x64x8xf32>
    %73 = vector.extract_strided_slice %42 {offsets = [0, 72], sizes = [128, 8], strides = [1, 1]} : vector<128x96xf32> to vector<128x8xf32>
    %74 = vector.shape_cast %73 : vector<128x8xf32> to vector<2x64x8xf32>
    "tpu.trace_start"() <{level = 10 : i32, message = "bqd,bkd->bqk"}> : () -> ()
    %cst_19 = arith.constant dense<0.000000e+00> : vector<2x64x64xf32>
    %75 = tpu.matmul %70, %72, %cst_19 {dimension_numbers = #tpu.dot_dimension_numbers<[2], [2], [1], [1], [0, 0, 0, 1, 1, 1], [0], [0]>} : vector<2x64x8xf32>, vector<2x64x8xf32>, vector<2x64x64xf32> -> vector<2x64x64xf32>
    "tpu.trace_stop"() : () -> ()
    %cst_20 = arith.constant 0.176776692 : f32
    %76 = vector.broadcast %cst_20 : f32 to vector<2x64x64xf32>
    %77 = arith.mulf %75, %76 : vector<2x64x64xf32>
    %cst_21 = arith.constant dense<0xFF800000> : vector<2x64xf32>
    %78 = vector.multi_reduction <maximumf>, %77, %cst_21 [2] : vector<2x64x64xf32> to vector<2x64xf32>
    %79 = vector.shape_cast %78 : vector<2x64xf32> to vector<2x64x1xf32>
    %80 = vector.broadcast %79 : vector<2x64x1xf32> to vector<2x64x64xf32>
    %81 = arith.subf %77, %80 : vector<2x64x64xf32>
    %82 = math.exp %81 : vector<2x64x64xf32>
    %cst_22 = arith.constant dense<0.000000e+00> : vector<2x64xf32>
    %83 = vector.multi_reduction <add>, %82, %cst_22 [2] : vector<2x64x64xf32> to vector<2x64xf32>
    %84 = vector.shape_cast %83 : vector<2x64xf32> to vector<2x64x1xf32>
    %85 = tpu.reciprocal %84 {approx = true} : vector<2x64x1xf32> -> vector<2x64x1xf32>
    %86 = vector.broadcast %85 : vector<2x64x1xf32> to vector<2x64x64xf32>
    %87 = arith.mulf %82, %86 : vector<2x64x64xf32>
    "tpu.trace_start"() <{level = 10 : i32, message = "bqk,bkd->bqd"}> : () -> ()
    %cst_23 = arith.constant dense<0.000000e+00> : vector<2x64x8xf32>
    %88 = tpu.matmul %87, %74, %cst_23 {dimension_numbers = #tpu.dot_dimension_numbers<[2], [1], [1], [2], [0, 0, 0, 1, 1, 2], [0], [0]>} : vector<2x64x64xf32>, vector<2x64x8xf32>, vector<2x64x8xf32> -> vector<2x64x8xf32>
    "tpu.trace_stop"() : () -> ()
    %89 = vector.shape_cast %88 : vector<2x64x8xf32> to vector<128x8xf32>
    %90 = vector.extract_strided_slice %43 {offsets = [8, 0], sizes = [8, 32], strides = [1, 1]} : vector<32x32xf32> to vector<8x32xf32>
    %cst_24 = arith.constant dense<0.000000e+00> : vector<128x32xf32>
    %91 = tpu.matmul %89, %90, %cst_24 {dimension_numbers = #tpu.dot_dimension_numbers<[1], [0], [0], [1], [0, 0, 1, 1], [], []>} : vector<128x8xf32>, vector<8x32xf32>, vector<128x32xf32> -> vector<128x32xf32>
    %92 = arith.addf %68, %91 : vector<128x32xf32>
    %93 = vector.extract_strided_slice %42 {offsets = [0, 16], sizes = [128, 8], strides = [1, 1]} : vector<128x96xf32> to vector<128x8xf32>
    %94 = vector.shape_cast %93 : vector<128x8xf32> to vector<2x64x8xf32>
    %95 = vector.extract_strided_slice %42 {offsets = [0, 48], sizes = [128, 8], strides = [1, 1]} : vector<128x96xf32> to vector<128x8xf32>
    %96 = vector.shape_cast %95 : vector<128x8xf32> to vector<2x64x8xf32>
    %97 = vector.extract_strided_slice %42 {offsets = [0, 80], sizes = [128, 8], strides = [1, 1]} : vector<128x96xf32> to vector<128x8xf32>
    %98 = vector.shape_cast %97 : vector<128x8xf32> to vector<2x64x8xf32>
    "tpu.trace_start"() <{level = 10 : i32, message = "bqd,bkd->bqk"}> : () -> ()
    %cst_25 = arith.constant dense<0.000000e+00> : vector<2x64x64xf32>
    %99 = tpu.matmul %94, %96, %cst_25 {dimension_numbers = #tpu.dot_dimension_numbers<[2], [2], [1], [1], [0, 0, 0, 1, 1, 1], [0], [0]>} : vector<2x64x8xf32>, vector<2x64x8xf32>, vector<2x64x64xf32> -> vector<2x64x64xf32>
    "tpu.trace_stop"() : () -> ()
    %cst_26 = arith.constant 0.176776692 : f32
    %100 = vector.broadcast %cst_26 : f32 to vector<2x64x64xf32>
    %101 = arith.mulf %99, %100 : vector<2x64x64xf32>
    %cst_27 = arith.constant dense<0xFF800000> : vector<2x64xf32>
    %102 = vector.multi_reduction <maximumf>, %101, %cst_27 [2] : vector<2x64x64xf32> to vector<2x64xf32>
    %103 = vector.shape_cast %102 : vector<2x64xf32> to vector<2x64x1xf32>
    %104 = vector.broadcast %103 : vector<2x64x1xf32> to vector<2x64x64xf32>
    %105 = arith.subf %101, %104 : vector<2x64x64xf32>
    %106 = math.exp %105 : vector<2x64x64xf32>
    %cst_28 = arith.constant dense<0.000000e+00> : vector<2x64xf32>
    %107 = vector.multi_reduction <add>, %106, %cst_28 [2] : vector<2x64x64xf32> to vector<2x64xf32>
    %108 = vector.shape_cast %107 : vector<2x64xf32> to vector<2x64x1xf32>
    %109 = tpu.reciprocal %108 {approx = true} : vector<2x64x1xf32> -> vector<2x64x1xf32>
    %110 = vector.broadcast %109 : vector<2x64x1xf32> to vector<2x64x64xf32>
    %111 = arith.mulf %106, %110 : vector<2x64x64xf32>
    "tpu.trace_start"() <{level = 10 : i32, message = "bqk,bkd->bqd"}> : () -> ()
    %cst_29 = arith.constant dense<0.000000e+00> : vector<2x64x8xf32>
    %112 = tpu.matmul %111, %98, %cst_29 {dimension_numbers = #tpu.dot_dimension_numbers<[2], [1], [1], [2], [0, 0, 0, 1, 1, 2], [0], [0]>} : vector<2x64x64xf32>, vector<2x64x8xf32>, vector<2x64x8xf32> -> vector<2x64x8xf32>
    "tpu.trace_stop"() : () -> ()
    %113 = vector.shape_cast %112 : vector<2x64x8xf32> to vector<128x8xf32>
    %114 = vector.extract_strided_slice %43 {offsets = [16, 0], sizes = [8, 32], strides = [1, 1]} : vector<32x32xf32> to vector<8x32xf32>
    %cst_30 = arith.constant dense<0.000000e+00> : vector<128x32xf32>
    %115 = tpu.matmul %113, %114, %cst_30 {dimension_numbers = #tpu.dot_dimension_numbers<[1], [0], [0], [1], [0, 0, 1, 1], [], []>} : vector<128x8xf32>, vector<8x32xf32>, vector<128x32xf32> -> vector<128x32xf32>
    %116 = arith.addf %92, %115 : vector<128x32xf32>
    %117 = vector.extract_strided_slice %42 {offsets = [0, 24], sizes = [128, 8], strides = [1, 1]} : vector<128x96xf32> to vector<128x8xf32>
    %118 = vector.shape_cast %117 : vector<128x8xf32> to vector<2x64x8xf32>
    %119 = vector.extract_strided_slice %42 {offsets = [0, 56], sizes = [128, 8], strides = [1, 1]} : vector<128x96xf32> to vector<128x8xf32>
    %120 = vector.shape_cast %119 : vector<128x8xf32> to vector<2x64x8xf32>
    %121 = vector.extract_strided_slice %42 {offsets = [0, 88], sizes = [128, 8], strides = [1, 1]} : vector<128x96xf32> to vector<128x8xf32>
    %122 = vector.shape_cast %121 : vector<128x8xf32> to vector<2x64x8xf32>
    "tpu.trace_start"() <{level = 10 : i32, message = "bqd,bkd->bqk"}> : () -> ()
    %cst_31 = arith.constant dense<0.000000e+00> : vector<2x64x64xf32>
    %123 = tpu.matmul %118, %120, %cst_31 {dimension_numbers = #tpu.dot_dimension_numbers<[2], [2], [1], [1], [0, 0, 0, 1, 1, 1], [0], [0]>} : vector<2x64x8xf32>, vector<2x64x8xf32>, vector<2x64x64xf32> -> vector<2x64x64xf32>
    "tpu.trace_stop"() : () -> ()
    %cst_32 = arith.constant 0.176776692 : f32
    %124 = vector.broadcast %cst_32 : f32 to vector<2x64x64xf32>
    %125 = arith.mulf %123, %124 : vector<2x64x64xf32>
    %cst_33 = arith.constant dense<0xFF800000> : vector<2x64xf32>
    %126 = vector.multi_reduction <maximumf>, %125, %cst_33 [2] : vector<2x64x64xf32> to vector<2x64xf32>
    %127 = vector.shape_cast %126 : vector<2x64xf32> to vector<2x64x1xf32>
    %128 = vector.broadcast %127 : vector<2x64x1xf32> to vector<2x64x64xf32>
    %129 = arith.subf %125, %128 : vector<2x64x64xf32>
    %130 = math.exp %129 : vector<2x64x64xf32>
    %cst_34 = arith.constant dense<0.000000e+00> : vector<2x64xf32>
    %131 = vector.multi_reduction <add>, %130, %cst_34 [2] : vector<2x64x64xf32> to vector<2x64xf32>
    %132 = vector.shape_cast %131 : vector<2x64xf32> to vector<2x64x1xf32>
    %133 = tpu.reciprocal %132 {approx = true} : vector<2x64x1xf32> -> vector<2x64x1xf32>
    %134 = vector.broadcast %133 : vector<2x64x1xf32> to vector<2x64x64xf32>
    %135 = arith.mulf %130, %134 : vector<2x64x64xf32>
    "tpu.trace_start"() <{level = 10 : i32, message = "bqk,bkd->bqd"}> : () -> ()
    %cst_35 = arith.constant dense<0.000000e+00> : vector<2x64x8xf32>
    %136 = tpu.matmul %135, %122, %cst_35 {dimension_numbers = #tpu.dot_dimension_numbers<[2], [1], [1], [2], [0, 0, 0, 1, 1, 2], [0], [0]>} : vector<2x64x64xf32>, vector<2x64x8xf32>, vector<2x64x8xf32> -> vector<2x64x8xf32>
    "tpu.trace_stop"() : () -> ()
    %137 = vector.shape_cast %136 : vector<2x64x8xf32> to vector<128x8xf32>
    %138 = vector.extract_strided_slice %43 {offsets = [24, 0], sizes = [8, 32], strides = [1, 1]} : vector<32x32xf32> to vector<8x32xf32>
    %cst_36 = arith.constant dense<0.000000e+00> : vector<128x32xf32>
    %139 = tpu.matmul %137, %138, %cst_36 {dimension_numbers = #tpu.dot_dimension_numbers<[1], [0], [0], [1], [0, 0, 1, 1], [], []>} : vector<128x8xf32>, vector<8x32xf32>, vector<128x32xf32> -> vector<128x32xf32>
    %140 = arith.addf %116, %139 : vector<128x32xf32>
    %141 = vector.broadcast %5 : vector<1x32xf32> to vector<128x32xf32>
    %142 = arith.addf %140, %141 : vector<128x32xf32>
    %143 = arith.addf %16, %142 : vector<128x32xf32>
    %cst_37 = arith.constant dense<0.000000e+00> : vector<128xf32>
    %144 = vector.multi_reduction <add>, %143, %cst_37 [1] : vector<128x32xf32> to vector<128xf32>
    %145 = vector.shape_cast %144 : vector<128xf32> to vector<128x1xf32>
    %cst_38 = arith.constant 3.200000e+01 : f32
    %146 = vector.broadcast %cst_38 : f32 to vector<128x1xf32>
    %147 = arith.divf %145, %146 : vector<128x1xf32>
    %148 = vector.broadcast %147 : vector<128x1xf32> to vector<128x32xf32>
    %149 = arith.subf %143, %148 : vector<128x32xf32>
    %150 = arith.mulf %149, %149 : vector<128x32xf32>
    %cst_39 = arith.constant dense<0.000000e+00> : vector<128xf32>
    %151 = vector.multi_reduction <add>, %150, %cst_39 [1] : vector<128x32xf32> to vector<128xf32>
    %152 = vector.shape_cast %151 : vector<128xf32> to vector<128x1xf32>
    %cst_40 = arith.constant 3.200000e+01 : f32
    %153 = vector.broadcast %cst_40 : f32 to vector<128x1xf32>
    %154 = arith.divf %152, %153 : vector<128x1xf32>
    %155 = vector.broadcast %147 : vector<128x1xf32> to vector<128x32xf32>
    %156 = arith.subf %143, %155 : vector<128x32xf32>
    %cst_41 = arith.constant 9.99999974E-6 : f32
    %157 = vector.broadcast %cst_41 : f32 to vector<128x1xf32>
    %158 = arith.addf %154, %157 : vector<128x1xf32>
    %159 = math.rsqrt %158 : vector<128x1xf32>
    %160 = vector.broadcast %159 : vector<128x1xf32> to vector<128x32xf32>
    %161 = arith.mulf %156, %160 : vector<128x32xf32>
    %162 = vector.broadcast %3 : vector<1x32xf32> to vector<128x32xf32>
    %163 = arith.mulf %161, %162 : vector<128x32xf32>
    %164 = vector.broadcast %4 : vector<1x32xf32> to vector<128x32xf32>
    %165 = arith.addf %163, %164 : vector<128x32xf32>
    %c0_42 = arith.constant 0 : index
    %c128 = arith.constant 128 : index
    %166 = vector.load %arg2[%c0_42, %c128] : memref<32x256xf32, #tpu.memory_space<vmem>>, vector<32x128xf32>
    %cst_43 = arith.constant dense<0.000000e+00> : vector<128x128xf32>
    %167 = tpu.matmul %165, %166, %cst_43 {dimension_numbers = #tpu.dot_dimension_numbers<[1], [0], [0], [1], [0, 0, 1, 1], [], []>} : vector<128x32xf32>, vector<32x128xf32>, vector<128x128xf32> -> vector<128x128xf32>
    %168 = vector.broadcast %8 : vector<1x128xf32> to vector<128x128xf32>
    %169 = arith.addf %167, %168 : vector<128x128xf32>
    %cst_44 = arith.constant 5.000000e-01 : f32
    %170 = vector.broadcast %cst_44 : f32 to vector<128x128xf32>
    %171 = arith.mulf %170, %169 : vector<128x128xf32>
    %cst_45 = arith.constant 0.707106769 : f32
    %172 = vector.broadcast %cst_45 : f32 to vector<128x128xf32>
    %173 = arith.mulf %169, %172 : vector<128x128xf32>
    %cst_46 = arith.constant 0.000000e+00 : f32
    %174 = vector.broadcast %cst_46 : f32 to vector<128x128xf32>
    %175 = arith.cmpf oge, %173, %174 : vector<128x128xf32>
    %cst_47 = arith.constant 1.000000e+00 : f32
    %cst_48 = arith.constant -1.000000e+00 : f32
    %176 = vector.broadcast %cst_47 : f32 to vector<128x128xf32>
    %177 = vector.broadcast %cst_48 : f32 to vector<128x128xf32>
    %178 = arith.select %175, %176, %177 : vector<128x128xi1>, vector<128x128xf32>
    %179 = math.absf %173 : vector<128x128xf32>
    %cst_49 = arith.constant 0.327591091 : f32
    %180 = vector.broadcast %cst_49 : f32 to vector<128x128xf32>
    %181 = arith.mulf %180, %179 : vector<128x128xf32>
    %cst_50 = arith.constant 1.000000e+00 : f32
    %182 = vector.broadcast %cst_50 : f32 to vector<128x128xf32>
    %183 = arith.addf %182, %181 : vector<128x128xf32>
    %cst_51 = arith.constant 1.000000e+00 : f32
    %184 = vector.broadcast %cst_51 : f32 to vector<128x128xf32>
    %185 = arith.divf %184, %183 : vector<128x128xf32>
    %cst_52 = arith.constant 1.06140542 : f32
    %186 = vector.broadcast %cst_52 : f32 to vector<128x128xf32>
    %187 = arith.mulf %186, %185 : vector<128x128xf32>
    %cst_53 = arith.constant -1.45315206 : f32
    %188 = vector.broadcast %cst_53 : f32 to vector<128x128xf32>
    %189 = arith.addf %187, %188 : vector<128x128xf32>
    %190 = arith.mulf %189, %185 : vector<128x128xf32>
    %cst_54 = arith.constant 1.42141378 : f32
    %191 = vector.broadcast %cst_54 : f32 to vector<128x128xf32>
    %192 = arith.addf %190, %191 : vector<128x128xf32>
    %193 = arith.mulf %192, %185 : vector<128x128xf32>
    %cst_55 = arith.constant -0.284496725 : f32
    %194 = vector.broadcast %cst_55 : f32 to vector<128x128xf32>
    %195 = arith.addf %193, %194 : vector<128x128xf32>
    %196 = arith.mulf %195, %185 : vector<128x128xf32>
    %cst_56 = arith.constant 0.254829586 : f32
    %197 = vector.broadcast %cst_56 : f32 to vector<128x128xf32>
    %198 = arith.addf %196, %197 : vector<128x128xf32>
    %199 = arith.mulf %198, %185 : vector<128x128xf32>
    %cst_57 = arith.constant 0.000000e+00 : f32
    %200 = vector.broadcast %cst_57 : f32 to vector<128x128xf32>
    %201 = arith.subf %200, %179 : vector<128x128xf32>
    %202 = arith.mulf %201, %179 : vector<128x128xf32>
    %203 = math.exp %202 : vector<128x128xf32>
    %204 = arith.mulf %199, %203 : vector<128x128xf32>
    %cst_58 = arith.constant 1.000000e+00 : f32
    %205 = vector.broadcast %cst_58 : f32 to vector<128x128xf32>
    %206 = arith.subf %205, %204 : vector<128x128xf32>
    %207 = arith.mulf %178, %206 : vector<128x128xf32>
    %cst_59 = arith.constant 1.000000e+00 : f32
    %208 = vector.broadcast %cst_59 : f32 to vector<128x128xf32>
    %209 = arith.addf %208, %207 : vector<128x128xf32>
    %210 = arith.mulf %171, %209 : vector<128x128xf32>
    %c0_60 = arith.constant 0 : index
    %c0_61 = arith.constant 0 : index
    %211 = vector.load %arg3[%c0_60, %c0_61] : memref<128x32xf32, #tpu.memory_space<vmem>>, vector<128x32xf32>
    %cst_62 = arith.constant dense<0.000000e+00> : vector<128x32xf32>
    %212 = tpu.matmul %210, %211, %cst_62 {dimension_numbers = #tpu.dot_dimension_numbers<[1], [0], [0], [1], [0, 0, 1, 1], [], []>} : vector<128x128xf32>, vector<128x32xf32>, vector<128x32xf32> -> vector<128x32xf32>
    %213 = vector.broadcast %6 : vector<1x32xf32> to vector<128x32xf32>
    %214 = arith.addf %212, %213 : vector<128x32xf32>
    %215 = arith.addf %165, %214 : vector<128x32xf32>
    %216 = vector.extract_strided_slice %215 {offsets = [0, 0], sizes = [64, 32], strides = [1, 1]} : vector<128x32xf32> to vector<64x32xf32>
    %217 = tpu.transpose %216, [1, 0] : vector<64x32xf32> -> vector<32x64xf32>
    %c0_63 = arith.constant 0 : index
    %c0_64 = arith.constant 0 : index
    %c0_65 = arith.constant 0 : index
    %218 = vector.load %arg5[%c0_63, %c0_64, %c0_65] : memref<2x32x64xf32, #tpu.memory_space<vmem>>, vector<1x32x64xf32>
    %219 = vector.shape_cast %218 : vector<1x32x64xf32> to vector<32x64xf32>
    %220 = vector.shape_cast %217 : vector<32x64xf32> to vector<1x32x64xf32>
    tpu.vector_store %arg5[%c0_63, %c0_64, %c0_65], %220 {strides = array<i32>} : memref<2x32x64xf32, #tpu.memory_space<vmem>>, vector<1x32x64xf32>,
    %221 = vector.extract_strided_slice %215 {offsets = [64, 0], sizes = [64, 32], strides = [1, 1]} : vector<128x32xf32> to vector<64x32xf32>
    %222 = tpu.transpose %221, [1, 0] : vector<64x32xf32> -> vector<32x64xf32>
    %c1 = arith.constant 1 : index
    %c0_66 = arith.constant 0 : index
    %c0_67 = arith.constant 0 : index
    %223 = vector.load %arg5[%c1, %c0_66, %c0_67] : memref<2x32x64xf32, #tpu.memory_space<vmem>>, vector<1x32x64xf32>
    %224 = vector.shape_cast %223 : vector<1x32x64xf32> to vector<32x64xf32>
    %225 = vector.shape_cast %222 : vector<32x64xf32> to vector<1x32x64xf32>
    tpu.vector_store %arg5[%c1, %c0_66, %c0_67], %225 {strides = array<i32>} : memref<2x32x64xf32, #tpu.memory_space<vmem>>, vector<1x32x64xf32>,
    return
  }
  func.func @transform_0(%arg0: i32) -> (i32, i32, i32) {
    %c0_i32 = arith.constant 0 : i32
    %c0_i32_0 = arith.constant 0 : i32
    %c0_i32_1 = arith.constant 0 : i32
    %c0_i32_2 = arith.constant 0 : i32
    return %c0_i32, %c0_i32_0, %c0_i32_1 : i32, i32, i32
  }
  func.func @transform_1(%arg0: i32) -> (i32, i32) {
    %c0_i32 = arith.constant 0 : i32
    %c0_i32_0 = arith.constant 0 : i32
    %c0_i32_1 = arith.constant 0 : i32
    return %c0_i32, %c0_i32_0 : i32, i32
  }
  func.func @transform_2(%arg0: i32) -> (i32, i32) {
    %c0_i32 = arith.constant 0 : i32
    %c0_i32_0 = arith.constant 0 : i32
    %c0_i32_1 = arith.constant 0 : i32
    return %c0_i32, %c0_i32_0 : i32, i32
  }
  func.func @transform_3(%arg0: i32) -> (i32, i32) {
    %c0_i32 = arith.constant 0 : i32
    %c0_i32_0 = arith.constant 0 : i32
    %c0_i32_1 = arith.constant 0 : i32
    return %c0_i32, %c0_i32_0 : i32, i32
  }
  func.func @transform_4(%arg0: i32) -> (i32, i32, i32) {
    %c0_i32 = arith.constant 0 : i32
    %c0_i32_0 = arith.constant 0 : i32
    %c0_i32_1 = arith.constant 0 : i32
    %c0_i32_2 = arith.constant 0 : i32
    return %c0_i32, %c0_i32_0, %c0_i32_1 : i32, i32, i32
  }
}

</mosaic_0001>

<bundles_post_ra>
// kernel: swin_block_forward.1
= control target key start
LH: loop header
LB: loop body
LE: loop exit
PB: predicated region body
PF: predicated region fallthrough
CT: control target
= control target key end

     0   :  { %vm90_vm0 = vcmask 261120   ;;  %vm565_vm1 = vcmask 64512   ;;  %s7646_s14 = smov 96   ;;  %s7647_s15 = smov 64   ;;  %vm880_vm2 = vcmask 523264   ;;  %s10425_s0 = inlined_call_operand.vmem [shape: f32[2,32,64], index: 0, kind: input, shape index: {}]   ;;  %s10426_s1 = inlined_call_operand.vmem [shape: f32[32,256], index: 1, kind: input, shape index: {}]   ;;  %s10427_s3 = inlined_call_operand.vmem [shape: f32[8,128], index: 3, kind: input, shape index: {}]   ;;  %s10428_s2 = inlined_call_operand.vmem [shape: f32[128,32], index: 2, kind: input, shape index: {}]   ;;  %s10429_s4 = inlined_call_operand.vmem [shape: f32[2,32,64], index: 4, kind: output, shape index: {}]  }
   0x1   :  { %v18_v0 = vld [vmem:[%s10425_s0] sm:$0xff]  ;;  %v19_v2 = vld [vmem:[%s10425_s0 + $0x8] sm:$0xff]  ;;  %v20_v4 = vld [vmem:[%s10425_s0 + $0x10] sm:$0xff]  ;;  %s7648_s16 = smov 88   ;;  %s7649_s17 = smov 120  }
   0x2   :  { %26 = vxpose.xlu0.b32.start [1/4] (short) (narrow) %v18_v0, 64  ;;  %v22_v1 = vld [vmem:[%s10425_s0 + $0x20] sm:$0xff]  ;;  %v23_v3 = vld [vmem:[%s10425_s0 + $0x28] sm:$0xff]  ;;  %v24_v5 = vld [vmem:[%s10425_s0 + $0x30] sm:$0xff]  ;;  %s7650_s18 = smov 56   ;;  %s7651_s21 = smov 32  }
   0x3   :  { %58 = vxpose.xlu1.b32.start [1/4] (short) (narrow) %v22_v1, 64  ;;  %v21_v6 = vld [vmem:[%s10425_s0 + $0x18] sm:$0xff]  ;;  %s7652_s22 = smov 80   ;;  %s7653_s25 = smov 112  }
   0x4   :  { %v25_v7 = vld [vmem:[%s10425_s0 + $0x38] sm:$0xff]  ;;  %s7654_s26 = smov 48   ;;  %s7655_s27 = smov 72  }
   0x5   :  { %s7656_s30 = smov 104   ;;  %s7657_s0 = smov 40  }
   0x6   :  { %27 = vxpose.xlu0.b32.cont [2/4] (short) (narrow) %v19_v2, 64 }
   0x7   :  { %59 = vxpose.xlu1.b32.cont [2/4] (short) (narrow) %v23_v3, 64 }
   0xa   :  { %28 = vxpose.xlu0.b32.cont [3/4] (short) (narrow) %v20_v4, 64 }
   0xb   :  { %60 = vxpose.xlu1.b32.cont [3/4] (short) (narrow) %v24_v5, 64 }
   0xe   :  { %29 = vxpose.xlu0.b32.end [4/4] (short) (narrow) %v21_v6, 64 }
   0xf   :  { %61 = vxpose.xlu1.b32.end [4/4] (short) (narrow) %v25_v7, 64 }
  0x7e   :  { %v7708_v8 = vpop.trf.xlu0 }
  0x7f   :  { %10452 = vst [vmem:[#allocation2_spill] sm:$0xff] %v7708_v8  ;;  %v91_v9 = vsel %vm90_vm0, %v7708_v8, 0.0  ;;  %v7712_v10 = vpop.trf.xlu1 }
  0x80   :  { %10453 = vst [vmem:[#allocation3_spill] sm:$0xff] %v7712_v10  ;;  %92 = vadd.xlane.f32.xlu0 %v91_v9  ;;  %v115_v27 = vsel %vm90_vm0, %v7712_v10, 0.0 }
  0x82   :  { %v7714_v11 = vpop.trf.xlu0 }
  0x83   :  { %10454 = vst [vmem:[#allocation4_spill] sm:$0xff] %v7714_v11  ;;  %v94_v12 = vsel %vm90_vm0, %v7714_v11, 0.0  ;;  %v7718_v13 = vpop.trf.xlu1 }
  0x84   :  { %10455 = vst [vmem:[#allocation5_spill] sm:$0xff] %v7718_v13  ;;  %95 = vadd.xlane.f32.xlu1 %v94_v12  ;;  %v118_v32 = vsel %vm90_vm0, %v7718_v13, 0.0 }
  0x86   :  { %v7720_v14 = vpop.trf.xlu0 }
  0x87   :  { %10456 = vst [vmem:[#allocation6_spill] sm:$0xff] %v7720_v14  ;;  %v97_v15 = vsel %vm90_vm0, %v7720_v14, 0.0  ;;  %v7724_v16 = vpop.trf.xlu1 }
  0x88   :  { %98 = vadd.xlane.f32.xlu1 %v97_v15  ;;  %10457 = vst [vmem:[#allocation7_spill] sm:$0xff] %v7724_v16  ;;  %v121_v31 = vsel %vm90_vm0, %v7724_v16, 0.0 }
  0x8a   :  { %v7726_v17 = vpop.trf.xlu0 }
  0x8b   :  { %10458 = vst [vmem:[#allocation8_spill] sm:$0xff] %v7726_v17  ;;  %v100_v18 = vsel %vm90_vm0, %v7726_v17, 0.0  ;;  %v7732_v20 = vpop.trf.xlu1 }
  0x8c   :  { %101 = vadd.xlane.f32.xlu1 %v100_v18  ;;  %10460 = vst [vmem:[#allocation10_spill] sm:$0xff] %v7732_v20  ;;  %v124_v35 = vsel %vm90_vm0, %v7732_v20, 0.0 }
  0x8e   :  { %v7730_v19 = vpop.trf.xlu0 }
  0x8f   :  { %10459 = vst [vmem:[#allocation9_spill] sm:$0xff] %v7730_v19  ;;  %v103_v21 = vsel %vm90_vm0, %v7730_v19, 0.0  ;;  %v7740_v24 = vpop.trf.xlu1 }
  0x90   :  { %104 = vadd.xlane.f32.xlu0 %v103_v21  ;;  %10462 = vst [vmem:[#allocation12_spill] sm:$0xff] %v7740_v24  ;;  %v127_v34 = vsel %vm90_vm0, %v7740_v24, 0.0 }
  0x92   :  { %v7736_v22 = vpop.trf.xlu0 }
  0x93   :  { %10461 = vst [vmem:[#allocation11_spill] sm:$0xff] %v7736_v22  ;;  %v106_v23 = vsel %vm90_vm0, %v7736_v22, 0.0  ;;  %v7750_v29 = vpop.trf.xlu1 }
  0x94   :  { %107 = vadd.xlane.f32.xlu1 %v106_v23  ;;  %10465 = vst [vmem:[#allocation15_spill] sm:$0xff] %v7750_v29  ;;  %v130_v37 = vsel %vm90_vm0, %v7750_v29, 0.0 }
  0x96   :  { %v7742_v25 = vpop.trf.xlu0 }
  0x97   :  { %10463 = vst [vmem:[#allocation13_spill] sm:$0xff] %v7742_v25  ;;  %v109_v26 = vsel %vm90_vm0, %v7742_v25, 0.0  ;;  %v7758_v33 = vpop.trf.xlu1 }
  0x98   :  { %110 = vadd.xlane.f32.xlu0 %v109_v26  ;;  %10466 = vst [vmem:[#allocation16_spill] sm:$0xff] %v7758_v33  ;;  %v133_v36 = vsel %vm90_vm0, %v7758_v33, 0.0 }
  0x9a   :  { %v7748_v28 = vpop.trf.xlu0 }
  0x9b   :  { %10464 = vst [vmem:[#allocation14_spill] sm:$0xff] %v7748_v28  ;;  %v112_v30 = vsel %vm90_vm0, %v7748_v28, 0.0  ;;  %v7768_v38 = vpop.trf.xlu1 }
  0x9c   :  { %116 = vadd.xlane.f32.xlu0 %v115_v27  ;;  %113 = vadd.xlane.f32.xlu1 %v112_v30  ;;  %10467 = vst [vmem:[#allocation17_spill] sm:$0xff] %v7768_v38  ;;  %v136_v39 = vsel %vm90_vm0, %v7768_v38, 0.0 }
  0xa0   :  { %122 = vadd.xlane.f32.xlu0 %v121_v31  ;;  %119 = vadd.xlane.f32.xlu1 %v118_v32 }
  0xa4   :  { %128 = vadd.xlane.f32.xlu0 %v127_v34  ;;  %125 = vadd.xlane.f32.xlu1 %v124_v35 }
  0xa8   :  { %134 = vadd.xlane.f32.xlu0 %v133_v36  ;;  %131 = vadd.xlane.f32.xlu1 %v130_v37 }
  0xac   :  { %137 = vadd.xlane.f32.xlu1 %v136_v39 }
 0x109   :  { %v93_v40 = vpop.xlane.xlu0 %92 }
 0x10a   :  { %v140_v41 = vmul.f32 0.03125, %v93_v40 }
 0x10c   :  { %v7773_v42 = vsub.f32 %v7708_v8, %v140_v41 }
 0x10d   :  { %v96_v43 = vpop.xlane.xlu1 %95 }
 0x10e   :  { %v141_v44 = vmul.f32 0.03125, %v96_v43  ;;  %v172_v45 = vmul.f32 %v7773_v42, %v7773_v42 }
 0x110   :  { %v7778_v46 = vsub.f32 %v7714_v11, %v141_v44  ;;  %v188_v47 = vsel %vm90_vm0, %v172_v45, 0.0 }
 0x111   :  { %v99_v48 = vpop.xlane.xlu1 %98  ;;  %189 = vadd.xlane.f32.xlu0 %v188_v47 }
 0x112   :  { %v142_v49 = vmul.f32 0.03125, %v99_v48  ;;  %v173_v50 = vmul.f32 %v7778_v46, %v7778_v46 }
 0x114   :  { %v7784_v51 = vsub.f32 %v7720_v14, %v142_v49  ;;  %v191_v52 = vsel %vm90_vm0, %v173_v50, 0.0 }
 0x115   :  { %v102_v53 = vpop.xlane.xlu1 %101  ;;  %192 = vadd.xlane.f32.xlu1 %v191_v52  ;;  %v343_v52 = vld [vmem:[%s10426_s1 + $0x30] sm:$0xff] }
 0x116   :  { %v143_v54 = vmul.f32 0.03125, %v102_v53  ;;  %v174_v55 = vmul.f32 %v7784_v51, %v7784_v51  ;;  %6554 = vmatprep.subr.mxu0 %v343_v52 }
 0x117   :  { %6555 = vmatpush3.msra.mxu0 %v343_v52 }
 0x118   :  { %v7790_v56 = vsub.f32 %v7726_v17, %v143_v54  ;;  %v194_v57 = vsel %vm90_vm0, %v174_v55, 0.0 }
 0x119   :  { %195 = vadd.xlane.f32.xlu0 %v194_v57  ;;  %v105_v58 = vpop.xlane.xlu0 %104 }
 0x11a   :  { %v144_v59 = vmul.f32 0.03125, %v105_v58  ;;  %v175_v60 = vmul.f32 %v7790_v56, %v7790_v56  ;;  %v342_v58 = vld [vmem:[%s10426_s1 + $0x20] sm:$0xff] }
 0x11b   :  { %6556 = vmatprep.subr.mxu0 %v342_v58 }
 0x11c   :  { %v7796_v61 = vsub.f32 %v7730_v19, %v144_v59  ;;  %v197_v62 = vsel %vm90_vm0, %v175_v60, 0.0  ;;  %6557 = vmatpush3.msra.mxu0 %v342_v58 }
 0x11d   :  { %v108_v63 = vpop.xlane.xlu1 %107  ;;  %198 = vadd.xlane.f32.xlu1 %v197_v62 }
 0x11e   :  { %v145_v0 = vmul.f32 0.03125, %v108_v63  ;;  %v176_v1 = vmul.f32 %v7796_v61, %v7796_v61 }
 0x120   :  { %v7802_v2 = vsub.f32 %v7736_v22, %v145_v0  ;;  %v200_v3 = vsel %vm90_vm0, %v176_v1, 0.0 }
 0x121   :  { %201 = vadd.xlane.f32.xlu0 %v200_v3  ;;  %v111_v4 = vpop.xlane.xlu0 %110  ;;  %v341_v3 = vld [vmem:[%s10426_s1 + $0x10] sm:$0xff] }
 0x122   :  { %v146_v5 = vmul.f32 0.03125, %v111_v4  ;;  %v177_v6 = vmul.f32 %v7802_v2, %v7802_v2  ;;  %6558 = vmatprep.subr.mxu0 %v341_v3 }
 0x123   :  { %6559 = vmatpush3.msra.mxu0 %v341_v3 }
 0x124   :  { %v7808_v7 = vsub.f32 %v7742_v25, %v146_v5  ;;  %v203_v9 = vsel %vm90_vm0, %v177_v6, 0.0 }
 0x125   :  { %204 = vadd.xlane.f32.xlu1 %v203_v9  ;;  %v114_v12 = vpop.xlane.xlu1 %113  ;;  %v117_v15 = vpop.xlane.xlu0 %116 }
 0x126   :  { %v147_v18 = vmul.f32 0.03125, %v114_v12  ;;  %v148_v21 = vmul.f32 0.03125, %v117_v15  ;;  %v178_v23 = vmul.f32 %v7808_v7, %v7808_v7  ;;  %v340_v12 = vld [vmem:[%s10426_s1] sm:$0xff] }
 0x127   :  { %6560 = vmatprep.subr.mxu0 %v340_v12 }
 0x128   :  { %v7814_v26 = vsub.f32 %v7748_v28, %v147_v18  ;;  %v7817_v27 = vsub.f32 %v7712_v10, %v148_v21  ;;  %v206_v30 = vsel %vm90_vm0, %v178_v23, 0.0  ;;  %6561 = vmatpush3.msra.mxu0 %v340_v12 }
 0x129   :  { %v120_v31 = vpop.xlane.xlu1 %119  ;;  %207 = vadd.xlane.f32.xlu0 %v206_v30  ;;  %v123_v32 = vpop.xlane.xlu0 %122 }
 0x12a   :  { %v149_v34 = vmul.f32 0.03125, %v120_v31  ;;  %v150_v35 = vmul.f32 0.03125, %v123_v32  ;;  %v179_v36 = vmul.f32 %v7814_v26, %v7814_v26  ;;  %v180_v37 = vmul.f32 %v7817_v27, %v7817_v27 }
 0x12c   :  { %v7825_v39 = vsub.f32 %v7718_v13, %v149_v34  ;;  %v7828_v40 = vsub.f32 %v7724_v16, %v150_v35  ;;  %v209_v41 = vsel %vm90_vm0, %v179_v36, 0.0  ;;  %v212_v43 = vsel %vm90_vm0, %v180_v37, 0.0 }
 0x12d   :  { %210 = vadd.xlane.f32.xlu1 %v209_v41  ;;  %v126_v44 = vpop.xlane.xlu1 %125  ;;  %213 = vadd.xlane.f32.xlu0 %v212_v43  ;;  %v129_v45 = vpop.xlane.xlu0 %128 }
 0x12e   :  { %v151_v47 = vmul.f32 0.03125, %v126_v44  ;;  %v152_v48 = vmul.f32 0.03125, %v129_v45  ;;  %v181_v49 = vmul.f32 %v7825_v39, %v7825_v39  ;;  %v182_v50 = vmul.f32 %v7828_v40, %v7828_v40 }
 0x12f   :  { %v300_v45 = vlaneseq }
 0x130   :  { %v7840_v53 = vsub.f32 %v7732_v20, %v151_v47  ;;  %v7843_v54 = vsub.f32 %v7740_v24, %v152_v48  ;;  %v215_v55 = vsel %vm90_vm0, %v181_v49, 0.0  ;;  %v218_v57 = vsel %vm90_vm0, %v182_v50, 0.0 }
 0x131   :  { %216 = vadd.xlane.f32.xlu1 %v215_v55  ;;  %v132_v59 = vpop.xlane.xlu1 %131  ;;  %219 = vadd.xlane.f32.xlu0 %v218_v57  ;;  %v135_v60 = vpop.xlane.xlu0 %134  ;;  %v7880_v50 = vshrl.u32 %v300_v45, 7 }
 0x132   :  { %v153_v62 = vmul.f32 0.03125, %v132_v59  ;;  %v154_v63 = vmul.f32 0.03125, %v135_v60  ;;  %v183_v0 = vmul.f32 %v7840_v53, %v7840_v53  ;;  %v184_v1 = vmul.f32 %v7843_v54, %v7843_v54  ;;  %v7886_v59 = vld [vmem:[%s10427_s3] sm:$0xff] }
 0x133   :  { %10468 = vst [vmem:[#allocation18_spill] sm:$0xff] %v7880_v50  ;;  %v302_v58 = vsub.s32 0, %v7880_v50 }
 0x134   :  { %v7858_v4 = vsub.f32 %v7750_v29, %v153_v62  ;;  %v7861_v5 = vsub.f32 %v7758_v33, %v154_v63  ;;  %v221_v6 = vsel %vm90_vm0, %v183_v0, 0.0  ;;  %v224_v9 = vsel %vm90_vm0, %v184_v1, 0.0 }
 0x135   :  { %222 = vadd.xlane.f32.xlu1 %v221_v6  ;;  %v138_v15 = vpop.xlane.xlu1 %137  ;;  %225 = vadd.xlane.f32.xlu0 %v224_v9  ;;  %v322_v62 = vsub.s32 1, %v7880_v50  ;;  %v7890_v1 = vrot.slane %v7886_v59, %v302_v58 }
 0x136   :  { %v155_v18 = vmul.f32 0.03125, %v138_v15  ;;  %v185_v21 = vmul.f32 %v7858_v4, %v7858_v4  ;;  %v186_v23 = vmul.f32 %v7861_v5, %v7861_v5 }
 0x137   :  { %v7894_v12 = vrot.slane %v7886_v59, %v322_v62 }
 0x138   :  { %v7873_v30 = vsub.f32 %v7768_v38, %v155_v18  ;;  %v227_v31 = vsel %vm90_vm0, %v185_v21, 0.0  ;;  %v230_v32 = vsel %vm90_vm0, %v186_v23, 0.0 }
 0x139   :  { %228 = vadd.xlane.f32.xlu1 %v227_v31  ;;  %231 = vadd.xlane.f32.xlu0 %v230_v32 }
 0x13a   :  { %v187_v34 = vmul.f32 %v7873_v30, %v7873_v30 }
 0x13c   :  { %v233_v35 = vsel %vm90_vm0, %v187_v34, 0.0 }
 0x13d   :  { %234 = vadd.xlane.f32.xlu1 %v233_v35 }
 0x19a   :  { %v190_v36 = vpop.xlane.xlu0 %189 }
 0x19b   :  { %v236_v37 = vmul.f32 0.03125, %v190_v36 }
 0x19d   :  { %v252_v41 = vadd.f32 1e-05, %v236_v37 }
 0x19e   :  { %v193_v43 = vpop.xlane.xlu1 %192 }
 0x19f   :  { %7256 = vrsqrt.f32 %v252_v41  ;;  %v237_v44 = vmul.f32 0.03125, %v193_v43 }
 0x1a1   :  { %v253_v47 = vadd.f32 1e-05, %v237_v44 }
 0x1a2   :  { %v196_v48 = vpop.xlane.xlu0 %195 }
 0x1a3   :  { %7258 = vrsqrt.f32 %v253_v47  ;;  %v238_v49 = vmul.f32 0.03125, %v196_v48 }
 0x1a5   :  { %v254_v52 = vadd.f32 1e-05, %v238_v49 }
 0x1a6   :  { %v199_v55 = vpop.xlane.xlu1 %198 }
 0x1a7   :  { %7260 = vrsqrt.f32 %v254_v52  ;;  %v239_v57 = vmul.f32 0.03125, %v199_v55 }
 0x1a9   :  { %v255_v60 = vadd.f32 1e-05, %v239_v57 }
 0x1aa   :  { %v202_v63 = vpop.xlane.xlu0 %201 }
 0x1ab   :  { %7262 = vrsqrt.f32 %v255_v60  ;;  %v240_v0 = vmul.f32 0.03125, %v202_v63 }
 0x1ac   :  { %v7257_v3 = vpop.eup %7256 }
 0x1ad   :  { %v256_v6 = vadd.f32 1e-05, %v240_v0  ;;  %v284_v9 = vmul.f32 %v7257_v3, %v7773_v42 }
 0x1ae   :  { %v205_v15 = vpop.xlane.xlu1 %204 }
 0x1af   :  { %7264 = vrsqrt.f32 %v256_v6  ;;  %v241_v18 = vmul.f32 0.03125, %v205_v15  ;;  %v304_v21 = vmul.f32 %v7890_v1, %v284_v9 }
 0x1b0   :  { %v7259_v23 = vpop.eup %7258 }
 0x1b1   :  { %v257_v31 = vadd.f32 1e-05, %v241_v18  ;;  %v324_v32 = vadd.f32 %v7894_v12, %v304_v21  ;;  %v285_v34 = vmul.f32 %v7259_v23, %v7778_v46 }
 0x1b2   :  { %v208_v35 = vpop.xlane.xlu0 %207 }
 0x1b3   :  { %7266 = vrsqrt.f32 %v257_v31  ;;  %v242_v36 = vmul.f32 0.03125, %v208_v35  ;;  %6562 = vmatprep.mubr.msk.f32.mxu0 %vm90_vm0, %v324_v32  ;;  %v305_v42 = vmul.f32 %v7890_v1, %v285_v34 }
 0x1b4   :  { %v7261_v37 = vpop.eup %7260 }
 0x1b5   :  { %v258_v41 = vadd.f32 1e-05, %v242_v36  ;;  %v325_v43 = vadd.f32 %v7894_v12, %v305_v42  ;;  %v286_v44 = vmul.f32 %v7261_v37, %v7784_v51 }
 0x1b6   :  { %v211_v45 = vpop.xlane.xlu1 %210  ;;  %v214_v47 = vpop.xlane.xlu0 %213 }
 0x1b7   :  { %7268 = vrsqrt.f32 %v258_v41  ;;  %v243_v48 = vmul.f32 0.03125, %v211_v45  ;;  %v244_v49 = vmul.f32 0.03125, %v214_v47  ;;  %6563 = vmatmul.mubr.msk.f32.vlgmr.msra.gmra.mxu0 %vm90_vm0, %v325_v43  ;;  %v306_v46 = vmul.f32 %v7890_v1, %v286_v44 }
 0x1b8   :  { %v7263_v52 = vpop.eup %7262 }
 0x1b9   :  { %v259_v55 = vadd.f32 1e-05, %v243_v48  ;;  %v260_v57 = vadd.f32 1e-05, %v244_v49  ;;  %v326_v58 = vadd.f32 %v7894_v12, %v306_v46  ;;  %v287_v60 = vmul.f32 %v7263_v52, %v7790_v56 }
 0x1ba   :  { %v217_v62 = vpop.xlane.xlu1 %216  ;;  %v220_v63 = vpop.xlane.xlu0 %219 }
 0x1bb   :  { %7270 = vrsqrt.f32 %v259_v55  ;;  %v245_v51 = vmul.f32 0.03125, %v217_v62  ;;  %v246_v0 = vmul.f32 0.03125, %v220_v63  ;;  %6565 = vmatprep.mubr.msk.f32.mxu0 %vm90_vm0, %v326_v58  ;;  %v307_v3 = vmul.f32 %v7890_v1, %v287_v60 }
 0x1bc   :  { %v7265_v6 = vpop.eup %7264  ;;  %7272 = vrsqrt.f32 %v260_v57 }
 0x1bd   :  { %v261_v9 = vadd.f32 1e-05, %v245_v51  ;;  %v262_v15 = vadd.f32 1e-05, %v246_v0  ;;  %v327_v18 = vadd.f32 %v7894_v12, %v307_v3  ;;  %v288_v21 = vmul.f32 %v7265_v6, %v7796_v61 }
 0x1be   :  { %v223_v23 = vpop.xlane.xlu1 %222  ;;  %v226_v31 = vpop.xlane.xlu0 %225 }
 0x1bf   :  { %7274 = vrsqrt.f32 %v261_v9  ;;  %v247_v56 = vmul.f32 0.03125, %v223_v23  ;;  %v248_v32 = vmul.f32 0.03125, %v226_v31  ;;  %6566 = vmatmul.mubr.msk.f32.gmra.mxu0 %vm90_vm0, %v327_v18  ;;  %v308_v34 = vmul.f32 %v7890_v1, %v288_v21 }
 0x1c0   :  { %v7267_v35 = vpop.eup %7266  ;;  %7276 = vrsqrt.f32 %v262_v15 }
 0x1c1   :  { %v263_v36 = vadd.f32 1e-05, %v247_v56  ;;  %v264_v42 = vadd.f32 1e-05, %v248_v32  ;;  %v328_v37 = vadd.f32 %v7894_v12, %v308_v34  ;;  %v289_v41 = vmul.f32 %v7267_v35, %v7802_v2 }
 0x1c2   :  { %v229_v43 = vpop.xlane.xlu1 %228  ;;  %v232_v44 = vpop.xlane.xlu0 %231 }
 0x1c3   :  { %7278 = vrsqrt.f32 %v263_v36  ;;  %v249_v61 = vmul.f32 0.03125, %v229_v43  ;;  %v250_v45 = vmul.f32 0.03125, %v232_v44  ;;  %6568 = vmatprep.mubr.msk.f32.mxu0 %vm90_vm0, %v328_v37  ;;  %v309_v47 = vmul.f32 %v7890_v1, %v289_v41 }
 0x1c4   :  { %v7269_v48 = vpop.eup %7268  ;;  %7280 = vrsqrt.f32 %v264_v42 }
 0x1c5   :  { %v265_v49 = vadd.f32 1e-05, %v249_v61  ;;  %v266_v46 = vadd.f32 1e-05, %v250_v45  ;;  %v329_v52 = vadd.f32 %v7894_v12, %v309_v47  ;;  %v290_v55 = vmul.f32 %v7269_v48, %v7808_v7 }
 0x1c6   :  { %v235_v57 = vpop.xlane.xlu1 %234 }
 0x1c7   :  { %7282 = vrsqrt.f32 %v265_v49  ;;  %v251_v2 = vmul.f32 0.03125, %v235_v57  ;;  %6569 = vmatmul.mubr.msk.f32.gmra.mxu0 %vm90_vm0, %v329_v52  ;;  %v310_v58 = vmul.f32 %v7890_v1, %v290_v55  ;;  %v346_v52 = vsub.s32 6, %v7880_v50 }
 0x1c8   :  { %v7271_v60 = vpop.eup %7270  ;;  %7284 = vrsqrt.f32 %v266_v46 }
 0x1c9   :  { %v7273_v62 = vpop.eup %7272  ;;  %v267_v63 = vadd.f32 1e-05, %v251_v2  ;;  %v330_v51 = vadd.f32 %v7894_v12, %v310_v58  ;;  %v291_v0 = vmul.f32 %v7271_v60, %v7814_v26  ;;  %v347_v57 = vrot.slane %v7886_v59, %v346_v52 }
 0x1ca   :  { %v292_v3 = vmul.f32 %v7273_v62, %v7817_v27 }
 0x1cb   :  { %7286 = vrsqrt.f32 %v267_v63  ;;  %6571 = vmatprep.mubr.msk.f32.mxu0 %vm90_vm0, %v330_v51  ;;  %v311_v7 = vmul.f32 %v7890_v1, %v291_v0 }
 0x1cc   :  { %v7275_v6 = vpop.eup %7274  ;;  %v312_v9 = vmul.f32 %v7890_v1, %v292_v3 }
 0x1cd   :  { %v7277_v15 = vpop.eup %7276  ;;  %v331_v18 = vadd.f32 %v7894_v12, %v311_v7  ;;  %v293_v21 = vmul.f32 %v7275_v6, %v7825_v39 }
 0x1ce   :  { %v332_v23 = vadd.f32 %v7894_v12, %v312_v9  ;;  %v294_v31 = vmul.f32 %v7277_v15, %v7828_v40 }
 0x1cf   :  { %6572 = vmatmul.mubr.msk.f32.gmra.mxu0 %vm90_vm0, %v331_v18  ;;  %v313_v26 = vmul.f32 %v7890_v1, %v293_v21 }
 0x1d0   :  { %v7279_v27 = vpop.eup %7278  ;;  %6574 = vmatprep.mubr.msk.f32.mxu0 %vm90_vm0, %v332_v23  ;;  %v314_v56 = vmul.f32 %v7890_v1, %v294_v31 }
 0x1d1   :  { %v7281_v32 = vpop.eup %7280  ;;  %v333_v34 = vadd.f32 %v7894_v12, %v313_v26  ;;  %v295_v35 = vmul.f32 %v7279_v27, %v7840_v53 }
 0x1d2   :  { %v334_v39 = vadd.f32 %v7894_v12, %v314_v56  ;;  %v296_v36 = vmul.f32 %v7281_v32, %v7843_v54 }
 0x1d3   :  { %6575 = vmatmul.mubr.msk.f32.gmra.mxu0 %vm90_vm0, %v333_v34  ;;  %v315_v40 = vmul.f32 %v7890_v1, %v295_v35 }
 0x1d4   :  { %v7283_v42 = vpop.eup %7282  ;;  %6577 = vmatprep.mubr.msk.f32.mxu0 %vm90_vm0, %v334_v39  ;;  %v316_v37 = vmul.f32 %v7890_v1, %v296_v36 }
 0x1d5   :  { %v7285_v41 = vpop.eup %7284  ;;  %v335_v43 = vadd.f32 %v7894_v12, %v315_v40  ;;  %v297_v44 = vmul.f32 %v7283_v42, %v7858_v4 }
 0x1d6   :  { %v336_v53 = vadd.f32 %v7894_v12, %v316_v37  ;;  %v298_v61 = vmul.f32 %v7285_v41, %v7861_v5 }
 0x1d7   :  { %6578 = vmatmul.mubr.msk.f32.gmra.mxu0 %vm90_vm0, %v335_v43  ;;  %v317_v54 = vmul.f32 %v7890_v1, %v297_v44 }
 0x1d8   :  { %v7287_v45 = vpop.eup %7286  ;;  %6580 = vmatprep.mubr.msk.f32.mxu0 %vm90_vm0, %v336_v53  ;;  %v318_v47 = vmul.f32 %v7890_v1, %v298_v61 }
 0x1d9   :  { %v337_v48 = vadd.f32 %v7894_v12, %v317_v54  ;;  %v299_v49 = vmul.f32 %v7287_v45, %v7873_v30 }
 0x1da   :  { %v338_v46 = vadd.f32 %v7894_v12, %v318_v47 }
 0x1db   :  { %6581 = vmatmul.mubr.msk.f32.gmra.mxu0 %vm90_vm0, %v337_v48  ;;  %v319_v4 = vmul.f32 %v7890_v1, %v299_v49 }
 0x1dc   :  { %6583 = vmatprep.mubr.msk.f32.mxu0 %vm90_vm0, %v338_v46 }
 0x1dd   :  { %v339_v5 = vadd.f32 %v7894_v12, %v319_v4 }
 0x1df   :  { %6584 = vmatmul.mubr.msk.f32.gmra.mxu0 %vm90_vm0, %v339_v5 }
 0x277   :  { %v6564_v55 = vpop.f32.mrf.mxu0 }
 0x278   :  { %v7995_v34 = vadd.f32 %v6564_v55, %v347_v57 }
 0x279   :  { %v462_v2 = vpop.f32.mrf.mxu0 }
 0x27a   :  { %v7961_v30 = vadd.f32 %v462_v2, %v347_v57 }
 0x27c   :  { %6602 = vmatprep.mubr.msk.f32.mxu1 %vm565_vm1, %v7961_v30 }
 0x27f   :  { %v6567_v58 = vpop.f32.mrf.mxu0 }
 0x280   :  { %v7985_v21 = vadd.f32 %v6567_v58, %v347_v57 }
 0x281   :  { %v472_v1 = vpop.f32.mrf.mxu0 }
 0x282   :  { %v7989_v26 = vadd.f32 %v472_v1, %v347_v57 }
 0x287   :  { %v6570_v60 = vpop.f32.mrf.mxu0 }
 0x288   :  { %v7975_v6 = vadd.f32 %v6570_v60, %v347_v57 }
 0x289   :  { %v482_v62 = vpop.f32.mrf.mxu0 }
 0x28a   :  { %v7971_v3 = vadd.f32 %v482_v62, %v347_v57 }
 0x28f   :  { %v6573_v63 = vpop.f32.mrf.mxu0 }
 0x290   :  { %v7965_v12 = vadd.f32 %v6573_v63, %v347_v57 }
 0x291   :  { %v492_v51 = vpop.f32.mrf.mxu0 }
 0x292   :  { %v7967_v0 = vadd.f32 %v492_v51, %v347_v57  ;;  %563 = vrot.lane.b32.xlu0 %v7965_v12, %s7646_s14 }
 0x293   :  { %v6576_v59 = vpop.f32.mrf.mxu0 }
 0x294   :  { %561 = vrot.lane.b32.xlu1 %v7967_v0, %s7646_s14  ;;  %v8017_v42 = vadd.f32 %v6576_v59, %v347_v57 }
 0x295   :  { %v502_v7 = vpop.f32.mrf.mxu0 }
 0x296   :  { %v7977_v9 = vadd.f32 %v502_v7, %v347_v57  ;;  %557 = vrot.lane.b32.xlu0 %v7971_v3, %s7646_s14 }
 0x297   :  { %v6579_v15 = vpop.f32.mrf.mxu0 }
 0x298   :  { %559 = vrot.lane.b32.xlu1 %v7975_v6, %s7646_s14  ;;  %6630 = vmatprep.mubr.msk.f32.mxu0 %vm565_vm1, %v7977_v9  ;;  %v8009_v36 = vadd.f32 %v6579_v15, %v347_v57 }
 0x299   :  { %v512_v18 = vpop.f32.mrf.mxu0 }
 0x29a   :  { %v8021_v37 = vadd.f32 %v512_v18, %v347_v57 }
 0x29b   :  { %v6582_v23 = vpop.f32.mrf.mxu0 }
 0x29c   :  { %555 = vrot.lane.b32.xlu1 %v7985_v21, %s7646_s14  ;;  %v8005_v39 = vadd.f32 %v6582_v23, %v347_v57 }
 0x29d   :  { %v522_v31 = vpop.f32.mrf.mxu0 }
 0x29e   :  { %v8013_v40 = vadd.f32 %v522_v31, %v347_v57 }
 0x29f   :  { %v6585_v27 = vpop.f32.mrf.mxu0 }
 0x2a0   :  { %v7991_v56 = vadd.f32 %v6585_v27, %v347_v57  ;;  %553 = vrot.lane.b32.xlu1 %v7989_v26, %s7646_s14 }
 0x2a1   :  { %v532_v32 = vpop.f32.mrf.mxu0 }
 0x2a2   :  { %725 = vrot.lane.b32.xlu0 %v7991_v56, %s7646_s14  ;;  %v7999_v35 = vadd.f32 %v532_v32, %v347_v57 }
 0x2a4   :  { %551 = vrot.lane.b32.xlu1 %v7995_v34, %s7646_s14 }
 0x2a6   :  { %723 = vrot.lane.b32.xlu0 %v7999_v35, %s7646_s14 }
 0x2a8   :  { %549 = vrot.lane.b32.xlu1 %v7961_v30, %s7646_s14 }
 0x2aa   :  { %721 = vrot.lane.b32.xlu0 %v8005_v39, %s7646_s14 }
 0x2ac   :  { %717 = vrot.lane.b32.xlu1 %v8009_v36, %s7646_s14 }
 0x2ae   :  { %719 = vrot.lane.b32.xlu0 %v8013_v40, %s7646_s14 }
 0x2b0   :  { %713 = vrot.lane.b32.xlu1 %v8017_v42, %s7646_s14 }
 0x2b2   :  { %715 = vrot.lane.b32.xlu0 %v8021_v37, %s7646_s14 }
 0x2b4   :  { %1069 = vrot.lane.b32.xlu1 %v7967_v0, %s7647_s15 }
 0x2b6   :  { %711 = vrot.lane.b32.xlu0 %v7977_v9, %s7646_s14 }
 0x2b8   :  { %1065 = vrot.lane.b32.xlu1 %v7971_v3, %s7647_s15 }
 0x2ba   :  { %1071 = vrot.lane.b32.xlu0 %v7965_v12, %s7647_s15 }
 0x2bc   :  { %1061 = vrot.lane.b32.xlu1 %v7989_v26, %s7647_s15 }
 0x2be   :  { %1067 = vrot.lane.b32.xlu0 %v7975_v6, %s7647_s15 }
 0x2c0   :  { %1059 = vrot.lane.b32.xlu1 %v7995_v34, %s7647_s15 }
 0x2c2   :  { %1063 = vrot.lane.b32.xlu0 %v7985_v21, %s7647_s15 }
 0x2c4   :  { %1224 = vrot.lane.b32.xlu1 %v7991_v56, %s7647_s15 }
 0x2c6   :  { %1057 = vrot.lane.b32.xlu0 %v7961_v30, %s7647_s15 }
 0x2c8   :  { %1220 = vrot.lane.b32.xlu1 %v8005_v39, %s7647_s15 }
 0x2ca   :  { %1393 = vrot.lane.b32.xlu0 %v7965_v12, %s7648_s16 }
 0x2cc   :  { %1391 = vrot.lane.b32.xlu1 %v7967_v0, %s7648_s16 }
 0x2ce   :  { %1218 = vrot.lane.b32.xlu0 %v8013_v40, %s7647_s15 }
 0x2d0   :  { %1389 = vrot.lane.b32.xlu1 %v7975_v6, %s7648_s16 }
 0x2d2   :  { %1216 = vrot.lane.b32.xlu0 %v8009_v36, %s7647_s15 }
 0x2d4   :  { %1214 = vrot.lane.b32.xlu1 %v8021_v37, %s7647_s15 }
 0x2d6   :  { %1212 = vrot.lane.b32.xlu0 %v8017_v42, %s7647_s15 }
 0x2d8   :  { %1387 = vrot.lane.b32.xlu1 %v7971_v3, %s7648_s16 }
 0x2da   :  { %1210 = vrot.lane.b32.xlu0 %v7977_v9, %s7647_s15 }
 0x2dc   :  { %1562 = vrot.lane.b32.xlu1 %v7991_v56, %s7648_s16 }
 0x2de   :  { %1385 = vrot.lane.b32.xlu0 %v7985_v21, %s7648_s16 }
 0x2e0   :  { %1383 = vrot.lane.b32.xlu1 %v7989_v26, %s7648_s16 }
 0x2e2   :  { %1558 = vrot.lane.b32.xlu0 %v8005_v39, %s7648_s16 }
 0x2e4   :  { %1381 = vrot.lane.b32.xlu1 %v7995_v34, %s7648_s16 }
 0x2e6   :  { %1556 = vrot.lane.b32.xlu0 %v8013_v40, %s7648_s16 }
 0x2e8   :  { %1379 = vrot.lane.b32.xlu1 %v7961_v30, %s7648_s16 }
 0x2ea   :  { %1365 = vrot.lane.b32.xlu0 %v7995_v34, %s7649_s17 }
 0x2ec   :  { %1363 = vrot.lane.b32.xlu1 %v7961_v30, %s7649_s17 }
 0x2ee   :  { %1367 = vrot.lane.b32.xlu0 %v7989_v26, %s7649_s17 }
 0x2f0   :  { %1554 = vrot.lane.b32.xlu1 %v8009_v36, %s7648_s16 }
 0x2f2   :  { %1552 = vrot.lane.b32.xlu0 %v8021_v37, %s7648_s16 }
 0x2f4   :  { %1369 = vrot.lane.b32.xlu1 %v7985_v21, %s7649_s17 }
 0x2f6   :  { %1560 = vrot.lane.b32.xlu0 %v7999_v35, %s7648_s16 }
 0x2f8   :  { %1371 = vrot.lane.b32.xlu1 %v7971_v3, %s7649_s17 }
 0x2fc   :  { %1222 = vrot.lane.b32.xlu1 %v7999_v35, %s7647_s15 }
 0x304   :  { %v564_v41 = vpop.permute.xlu0 %563 }
 0x305   :  { %6586 = vmatprep.subr.msk.mxu1 %vm565_vm1, %v564_v41 }
 0x306   :  { %v562_v43 = vpop.permute.xlu1 %561  ;;  %6587 = vmatpush3.xpose.msk.msra.mxu1 %vm565_vm1, %v564_v41 }
 0x307   :  { %6588 = vmatprep.subr.msk.mxu1 %vm565_vm1, %v562_v43 }
 0x308   :  { %v558_v53 = vpop.permute.xlu0 %557 }
 0x30a   :  { %v560_v44 = vpop.permute.xlu1 %559  ;;  %6589 = vmatpush3.xpose.msk.msra.mxu1 %vm565_vm1, %v562_v43 }
 0x30b   :  { %6590 = vmatprep.subr.msk.mxu1 %vm565_vm1, %v560_v44 }
 0x30e   :  { %v556_v61 = vpop.permute.xlu1 %555  ;;  %6591 = vmatpush3.xpose.msk.msra.mxu1 %vm565_vm1, %v560_v44 }
 0x30f   :  { %6592 = vmatprep.subr.msk.mxu1 %vm565_vm1, %v558_v53 }
 0x312   :  { %v554_v54 = vpop.permute.xlu1 %553  ;;  %6593 = vmatpush3.xpose.msk.msra.mxu1 %vm565_vm1, %v558_v53 }
 0x313   :  { %6594 = vmatprep.subr.msk.mxu1 %vm565_vm1, %v556_v61 }
 0x314   :  { %v726_v45 = vpop.permute.xlu0 %725 }
 0x315   :  { %6614 = vmatprep.subr.msk.mxu0 %vm565_vm1, %v726_v45 }
 0x316   :  { %v552_v47 = vpop.permute.xlu1 %551  ;;  %6595 = vmatpush3.xpose.msk.msra.mxu1 %vm565_vm1, %v556_v61  ;;  %6615 = vmatpush3.xpose.msk.msra.mxu0 %vm565_vm1, %v726_v45 }
 0x317   :  { %6596 = vmatprep.subr.msk.mxu1 %vm565_vm1, %v554_v54 }
 0x318   :  { %v724_v48 = vpop.permute.xlu0 %723 }
 0x319   :  { %6616 = vmatprep.subr.msk.mxu0 %vm565_vm1, %v724_v48 }
 0x31a   :  { %v550_v49 = vpop.permute.xlu1 %549  ;;  %6597 = vmatpush3.xpose.msk.msra.mxu1 %vm565_vm1, %v554_v54  ;;  %6617 = vmatpush3.xpose.msk.msra.mxu0 %vm565_vm1, %v724_v48 }
 0x31b   :  { %6598 = vmatprep.subr.msk.mxu1 %vm565_vm1, %v552_v47 }
 0x31c   :  { %v722_v46 = vpop.permute.xlu0 %721 }
 0x31d   :  { %6618 = vmatprep.subr.msk.mxu0 %vm565_vm1, %v722_v46 }
 0x31e   :  { %v718_v4 = vpop.permute.xlu1 %717  ;;  %6599 = vmatpush3.xpose.msk.msra.mxu1 %vm565_vm1, %v552_v47  ;;  %6619 = vmatpush3.xpose.msk.msra.mxu0 %vm565_vm1, %v722_v46 }
 0x31f   :  { %6600 = vmatprep.subr.msk.mxu1 %vm565_vm1, %v550_v49 }
 0x320   :  { %v720_v5 = vpop.permute.xlu0 %719 }
 0x321   :  { %6620 = vmatprep.subr.msk.mxu0 %vm565_vm1, %v720_v5 }
 0x322   :  { %v714_v52 = vpop.permute.xlu1 %713  ;;  %6601 = vmatpush3.xpose.msk.msra.mxu1 %vm565_vm1, %v550_v49  ;;  %6621 = vmatpush3.xpose.msk.msra.mxu0 %vm565_vm1, %v720_v5 }
 0x323   :  { %6622 = vmatprep.subr.msk.mxu0 %vm565_vm1, %v718_v4 }
 0x324   :  { %v716_v55 = vpop.permute.xlu0 %715 }
 0x325   :  { %6603 = vmatmul.mubr.msk.f32.vlgmr.msra.gmra.mxu1 %vm565_vm1, %v7995_v34 }
 0x326   :  { %v1070_v57 = vpop.permute.xlu1 %1069  ;;  %6605 = vmatprep.mubr.msk.f32.mxu1 %vm565_vm1, %v7989_v26  ;;  %6623 = vmatpush3.xpose.msk.msra.mxu0 %vm565_vm1, %v718_v4 }
 0x327   :  { %6624 = vmatprep.subr.msk.mxu0 %vm565_vm1, %v716_v55 }
 0x328   :  { %v712_v2 = vpop.permute.xlu0 %711 }
 0x329   :  { %6606 = vmatmul.mubr.msk.f32.gmra.mxu1 %vm565_vm1, %v7985_v21 }
 0x32a   :  { %v1066_v58 = vpop.permute.xlu1 %1065  ;;  %6608 = vmatprep.mubr.msk.f32.mxu1 %vm565_vm1, %v7971_v3  ;;  %6625 = vmatpush3.xpose.msk.msra.mxu0 %vm565_vm1, %v716_v55 }
 0x32b   :  { %6626 = vmatprep.subr.msk.mxu0 %vm565_vm1, %v714_v52 }
 0x32c   :  { %v1072_v1 = vpop.permute.xlu0 %1071 }
 0x32d   :  { %6609 = vmatmul.mubr.msk.f32.gmra.mxu1 %vm565_vm1, %v7975_v6  ;;  %6642 = vmatprep.subr.mxu1 %v1072_v1 }
 0x32e   :  { %v1062_v60 = vpop.permute.xlu1 %1061  ;;  %6611 = vmatprep.mubr.msk.f32.mxu1 %vm565_vm1, %v7967_v0  ;;  %6627 = vmatpush3.xpose.msk.msra.mxu0 %vm565_vm1, %v714_v52 }
 0x32f   :  { %6643 = vmatpush3.msra.mxu1 %v1072_v1  ;;  %6628 = vmatprep.subr.msk.mxu0 %vm565_vm1, %v712_v2 }
 0x330   :  { %6644 = vmatprep.subr.mxu1 %v1070_v57  ;;  %v1068_v62 = vpop.permute.xlu0 %1067 }
 0x331   :  { %6645 = vmatpush3.msra.mxu1 %v1070_v57 }
 0x332   :  { %6612 = vmatmul.mubr.msk.f32.gmra.mxu1 %vm565_vm1, %v7965_v12  ;;  %6646 = vmatprep.subr.mxu1 %v1068_v62  ;;  %v1060_v63 = vpop.permute.xlu1 %1059 }
 0x333   :  { %6629 = vmatpush3.xpose.msk.msra.mxu0 %vm565_vm1, %v712_v2  ;;  %6647 = vmatpush3.msra.mxu1 %v1068_v62 }
 0x334   :  { %6648 = vmatprep.subr.mxu1 %v1066_v58  ;;  %v1064_v51 = vpop.permute.xlu0 %1063 }
 0x335   :  { %6649 = vmatpush3.msra.mxu1 %v1066_v58 }
 0x336   :  { %6631 = vmatmul.mubr.msk.f32.vlgmr.msra.gmra.mxu0 %vm565_vm1, %v8017_v42  ;;  %6650 = vmatprep.subr.mxu1 %v1064_v51  ;;  %v1225_v59 = vpop.permute.xlu1 %1224 }
 0x337   :  { %6633 = vmatprep.mubr.msk.f32.mxu0 %vm565_vm1, %v8021_v37  ;;  %6651 = vmatpush3.msra.mxu1 %v1064_v51 }
 0x338   :  { %6652 = vmatprep.subr.mxu1 %v1062_v60  ;;  %6670 = vmatprep.subr.mxu0 %v1225_v59  ;;  %v1058_v7 = vpop.permute.xlu0 %1057 }
 0x339   :  { %6653 = vmatpush3.msra.mxu1 %v1062_v60  ;;  %6671 = vmatpush3.msra.mxu0 %v1225_v59 }
 0x33a   :  { %6634 = vmatmul.mubr.msk.f32.gmra.mxu0 %vm565_vm1, %v8009_v36  ;;  %6654 = vmatprep.subr.mxu1 %v1060_v63  ;;  %v1221_v15 = vpop.permute.xlu1 %1220 }
 0x33b   :  { %6636 = vmatprep.mubr.msk.f32.mxu0 %vm565_vm1, %v8013_v40  ;;  %6655 = vmatpush3.msra.mxu1 %v1060_v63 }
 0x33c   :  { %6656 = vmatprep.subr.mxu1 %v1058_v7  ;;  %v8153_v18 = vpop.permute.xlu0 %1393 }
 0x33d   :  { %6657 = vmatpush3.msra.mxu1 %v1058_v7 }
 0x33e   :  { %6637 = vmatmul.mubr.msk.f32.gmra.mxu0 %vm565_vm1, %v8005_v39  ;;  %6698 = vmatprep.subr.msk.mxu1 %vm565_vm1, %v8153_v18  ;;  %v8159_v23 = vpop.permute.xlu1 %1391 }
 0x33f   :  { %6639 = vmatprep.mubr.msk.f32.mxu0 %vm565_vm1, %v7999_v35 }
 0x340   :  { %v1219_v47 = vpop.permute.xlu0 %1218 }
 0x342   :  { %6640 = vmatmul.mubr.msk.f32.gmra.mxu0 %vm565_vm1, %v7991_v56  ;;  %v8165_v31 = vpop.permute.xlu1 %1389 }
 0x344   :  { %v1217_v49 = vpop.permute.xlu0 %1216 }
 0x346   :  { %v1215_v27 = vpop.permute.xlu1 %1214 }
 0x348   :  { %v1213_v4 = vpop.permute.xlu0 %1212 }
 0x34a   :  { %v8167_v32 = vpop.permute.xlu1 %1387 }
 0x34c   :  { %v1211_v5 = vpop.permute.xlu0 %1210 }
 0x34e   :  { %v8169_v41 = vpop.permute.xlu1 %1562 }
 0x352   :  { %v8171_v43 = vpop.permute.xlu1 %1383 }
 0x356   :  { %v8173_v44 = vpop.permute.xlu1 %1381 }
 0x35a   :  { %v8175_v53 = vpop.permute.xlu1 %1379 }
 0x35e   :  { %v8177_v61 = vpop.permute.xlu1 %1363 }
 0x362   :  { %v8179_v54 = vpop.permute.xlu1 %1554 }
 0x366   :  { %v8181_v45 = vpop.permute.xlu1 %1369 }
 0x36a   :  { %v8183_v48 = vpop.permute.xlu1 %1371 }
 0x36e   :  { %v1223_v46 = vpop.permute.xlu1 %1222 }
 0x36f   :  { %6672 = vmatprep.subr.mxu0 %v1223_v46 }
 0x370   :  { %6673 = vmatpush3.msra.mxu0 %v1223_v46 }
 0x371   :  { %6674 = vmatprep.subr.mxu0 %v1221_v15 }
 0x372   :  { %6675 = vmatpush3.msra.mxu0 %v1221_v15 }
 0x373   :  { %6676 = vmatprep.subr.mxu0 %v1219_v47 }
 0x374   :  { %6677 = vmatpush3.msra.mxu0 %v1219_v47 }
 0x375   :  { %6678 = vmatprep.subr.mxu0 %v1217_v49 }
 0x376   :  { %6679 = vmatpush3.msra.mxu0 %v1217_v49 }
 0x377   :  { %6680 = vmatprep.subr.mxu0 %v1215_v27 }
 0x378   :  { %6681 = vmatpush3.msra.mxu0 %v1215_v27 }
 0x379   :  { %6682 = vmatprep.subr.mxu0 %v1213_v4 }
 0x37a   :  { %6683 = vmatpush3.msra.mxu0 %v1213_v4 }
 0x37b   :  { %6684 = vmatprep.subr.mxu0 %v1211_v5 }
 0x37c   :  { %6685 = vmatpush3.msra.mxu0 %v1211_v5 }
 0x37d   :  { %6726 = vmatprep.subr.msk.mxu0 %vm565_vm1, %v8169_v41 }
 0x3e5   :  { %v6604_v52 = vpop.f32.mrf.mxu1 }
 0x3e6   :  { %v8187_v55 = vmul.f32 0.17677669, %v6604_v52 }
 0x3e7   :  { %v664_v57 = vpop.f32.mrf.mxu1 }
 0x3e8   :  { %v8189_v2 = vmul.f32 0.17677669, %v664_v57  ;;  %v884_v58 = vsel %vm880_vm2, %v8187_v55, -inf }
 0x3e9   :  { %885 = vmax.xlane.f32.xlu0 %v884_v58  ;;  %v6607_v1 = vpop.f32.mrf.mxu1 }
 0x3ea   :  { %v8193_v60 = vmul.f32 0.17677669, %v6607_v1  ;;  %v881_v62 = vsel %vm880_vm2, %v8189_v2, -inf }
 0x3eb   :  { %882 = vmax.xlane.f32.xlu1 %v881_v62  ;;  %v674_v63 = vpop.f32.mrf.mxu1 }
 0x3ec   :  { %v8197_v51 = vmul.f32 0.17677669, %v674_v63  ;;  %v890_v15 = vsel %vm880_vm2, %v8193_v60, -inf }
 0x3ed   :  { %v6610_v59 = vpop.f32.mrf.mxu1 }
 0x3ee   :  { %v8199_v7 = vmul.f32 0.17677669, %v6610_v59  ;;  %v887_v27 = vsel %vm880_vm2, %v8197_v51, -inf }
 0x3ef   :  { %891 = vmax.xlane.f32.xlu1 %v890_v15  ;;  %888 = vmax.xlane.f32.xlu0 %v887_v27  ;;  %v684_v47 = vpop.f32.mrf.mxu1 }
 0x3f0   :  { %v8205_v49 = vmul.f32 0.17677669, %v684_v47  ;;  %v896_v4 = vsel %vm880_vm2, %v8199_v7, -inf }
 0x3f2   :  { %v6613_v46 = vpop.f32.mrf.mxu1  ;;  %v893_v5 = vsel %vm880_vm2, %v8205_v49, -inf }
 0x3f3   :  { %v8211_v52 = vmul.f32 0.17677669, %v6613_v46  ;;  %897 = vmax.xlane.f32.xlu1 %v896_v4  ;;  %894 = vmax.xlane.f32.xlu0 %v893_v5 }
 0x3f4   :  { %v694_v57 = vpop.f32.mrf.mxu1 }
 0x3f5   :  { %v8213_v58 = vmul.f32 0.17677669, %v694_v57  ;;  %v902_v62 = vsel %vm880_vm2, %v8211_v52, -inf }
 0x3f6   :  { %v6632_v1 = vpop.f32.mrf.mxu0 }
 0x3f7   :  { %v8217_v63 = vmul.f32 0.17677669, %v6632_v1  ;;  %903 = vmax.xlane.f32.xlu1 %v902_v62  ;;  %v899_v59 = vsel %vm880_vm2, %v8213_v58, -inf }
 0x3f8   :  { %900 = vmax.xlane.f32.xlu0 %v899_v59  ;;  %v825_v15 = vpop.f32.mrf.mxu0 }
 0x3f9   :  { %v8221_v27 = vmul.f32 0.17677669, %v825_v15  ;;  %v908_v46 = vsel %vm880_vm2, %v8217_v63, -inf }
 0x3fa   :  { %v6635_v47 = vpop.f32.mrf.mxu0 }
 0x3fb   :  { %v8225_v4 = vmul.f32 0.17677669, %v6635_v47  ;;  %909 = vmax.xlane.f32.xlu1 %v908_v46  ;;  %v905_v5 = vsel %vm880_vm2, %v8221_v27, -inf }
 0x3fc   :  { %906 = vmax.xlane.f32.xlu0 %v905_v5  ;;  %v835_v57 = vpop.f32.mrf.mxu0 }
 0x3fd   :  { %v8229_v1 = vmul.f32 0.17677669, %v835_v57  ;;  %v914_v59 = vsel %vm880_vm2, %v8225_v4, -inf }
 0x3fe   :  { %v6638_v62 = vpop.f32.mrf.mxu0 }
 0x3ff   :  { %v8233_v15 = vmul.f32 0.17677669, %v6638_v62  ;;  %915 = vmax.xlane.f32.xlu1 %v914_v59  ;;  %v911_v33 = vsel %vm880_vm2, %v8229_v1, -inf }
 0x400   :  { %912 = vmax.xlane.f32.xlu0 %v911_v33  ;;  %v845_v47 = vpop.f32.mrf.mxu0 }
 0x401   :  { %v8237_v46 = vmul.f32 0.17677669, %v845_v47  ;;  %v920_v5 = vsel %vm880_vm2, %v8233_v15, -inf }
 0x402   :  { %v6641_v38 = vpop.f32.mrf.mxu0 }
 0x403   :  { %v8241_v57 = vmul.f32 0.17677669, %v6641_v38  ;;  %921 = vmax.xlane.f32.xlu1 %v920_v5  ;;  %v917_v24 = vsel %vm880_vm2, %v8237_v46, -inf  ;;  %v8255_v38 = vpop.permute.xlu0 %1385 }
 0x404   :  { %918 = vmax.xlane.f32.xlu0 %v917_v24  ;;  %v855_v62 = vpop.f32.mrf.mxu0 }
 0x405   :  { %v8245_v59 = vmul.f32 0.17677669, %v855_v62  ;;  %v926_v33 = vsel %vm880_vm2, %v8241_v57, -inf }
 0x407   :  { %927 = vmax.xlane.f32.xlu1 %v926_v33  ;;  %v923_v47 = vsel %vm880_vm2, %v8245_v59, -inf  ;;  %v8257_v24 = vpop.permute.xlu0 %1558 }
 0x408   :  { %924 = vmax.xlane.f32.xlu0 %v923_v47 }
 0x40b   :  { %v8259_v5 = vpop.permute.xlu0 %1556 }
 0x40f   :  { %v8261_v62 = vpop.permute.xlu0 %1365 }
 0x413   :  { %v8263_v29 = vpop.permute.xlu0 %1367 }
 0x417   :  { %v8265_v33 = vpop.permute.xlu0 %1552 }
 0x418   :  { %1550 = vrot.lane.b32.xlu1 %v8017_v42, %s7648_s16  ;;  %10469 = vst [vmem:[#allocation19_spill] sm:$0xff] %v8265_v33 }
 0x41b   :  { %v8267_v16 = vpop.permute.xlu0 %1560 }
 0x41e   :  { %1373 = vrot.lane.b32.xlu0 %v7975_v6, %s7649_s17 }
 0x472   :  { %v886_v47 = vpop.xlane.xlu0 %885 }
 0x473   :  { %v930_v20 = vsub.f32 %v8187_v55, %v886_v47 }
 0x474   :  { %v883_v10 = vpop.xlane.xlu1 %882 }
 0x475   :  { %v947_v13 = vmul.f32 1.442695, %v930_v20  ;;  %v929_v25 = vsub.f32 %v8189_v2, %v883_v10 }
 0x477   :  { %7288 = vpow2.f32 %v947_v13  ;;  %v945_v28 = vmul.f32 1.442695, %v929_v25 }
 0x478   :  { %v892_v19 = vpop.xlane.xlu1 %891  ;;  %v889_v22 = vpop.xlane.xlu0 %888 }
 0x479   :  { %7290 = vpow2.f32 %v945_v28  ;;  %v932_v14 = vsub.f32 %v8193_v60, %v892_v19  ;;  %v931_v17 = vsub.f32 %v8197_v51, %v889_v22 }
 0x47b   :  { %v951_v8 = vmul.f32 1.442695, %v932_v14  ;;  %v949_v11 = vmul.f32 1.442695, %v931_v17 }
 0x47c   :  { %v898_v50 = vpop.xlane.xlu1 %897  ;;  %v895_v33 = vpop.xlane.xlu0 %894 }
 0x47d   :  { %7292 = vpow2.f32 %v951_v8  ;;  %v934_v55 = vsub.f32 %v8199_v7, %v898_v50  ;;  %v933_v20 = vsub.f32 %v8205_v49, %v895_v33 }
 0x47e   :  { %7294 = vpow2.f32 %v949_v11 }
 0x47f   :  { %v955_v10 = vmul.f32 1.442695, %v934_v55  ;;  %v953_v13 = vmul.f32 1.442695, %v933_v20 }
 0x480   :  { %v904_v25 = vpop.xlane.xlu1 %903 }
 0x481   :  { %v936_v2 = vsub.f32 %v8211_v52, %v904_v25  ;;  %v901_v28 = vpop.xlane.xlu0 %900  ;;  %7296 = vpow2.f32 %v953_v13 }
 0x482   :  { %v935_v19 = vsub.f32 %v8213_v58, %v901_v28  ;;  %7298 = vpow2.f32 %v955_v10 }
 0x483   :  { %v959_v14 = vmul.f32 1.442695, %v936_v2 }
 0x484   :  { %v8277_v17 = vpop.eup %7288  ;;  %v957_v22 = vmul.f32 1.442695, %v935_v19  ;;  %v910_v8 = vpop.xlane.xlu1 %909 }
 0x485   :  { %v938_v50 = vsub.f32 %v8217_v63, %v910_v8  ;;  %v980_v11 = vsel %vm880_vm2, %v8277_v17, 0.0 }
 0x486   :  { %v8282_v60 = vpop.eup %7290  ;;  %7300 = vpow2.f32 %v957_v22  ;;  %981 = vadd.xlane.f32.xlu1 %v980_v11 }
 0x487   :  { %7302 = vpow2.f32 %v959_v14  ;;  %v963_v51 = vmul.f32 1.442695, %v938_v50  ;;  %v977_v7 = vsel %vm880_vm2, %v8282_v60, 0.0  ;;  %v907_v14 = vpop.xlane.xlu0 %906 }
 0x488   :  { %978 = vadd.xlane.f32.xlu0 %v977_v7  ;;  %v916_v22 = vpop.xlane.xlu1 %915  ;;  %v937_v8 = vsub.f32 %v8221_v27, %v907_v14 }
 0x489   :  { %7304 = vpow2.f32 %v963_v51 }
 0x48a   :  { %v8286_v49 = vpop.eup %7292  ;;  %v961_v11 = vmul.f32 1.442695, %v937_v8 }
 0x48b   :  { %v986_v52 = vsel %vm880_vm2, %v8286_v49, 0.0  ;;  %v8290_v58 = vpop.eup %7294  ;;  %v913_v50 = vpop.xlane.xlu0 %912 }
 0x48c   :  { %987 = vadd.xlane.f32.xlu0 %v986_v52  ;;  %v983_v33 = vsel %vm880_vm2, %v8290_v58, 0.0  ;;  %v939_v51 = vsub.f32 %v8229_v1, %v913_v50  ;;  %v922_v7 = vpop.xlane.xlu1 %921  ;;  %v940_v52 = vsub.f32 %v8225_v4, %v916_v22  ;;  %7306 = vpow2.f32 %v961_v11 }
 0x48e   :  { %v8292_v63 = vpop.eup %7296 }
 0x48f   :  { %v8296_v47 = vpop.eup %7298  ;;  %v989_v55 = vsel %vm880_vm2, %v8292_v63, 0.0 }
 0x490   :  { %984 = vadd.xlane.f32.xlu0 %v983_v33  ;;  %990 = vadd.xlane.f32.xlu1 %v989_v55  ;;  %v992_v10 = vsel %vm880_vm2, %v8296_v47, 0.0  ;;  %v965_v33 = vmul.f32 1.442695, %v939_v51  ;;  %v942_v55 = vsub.f32 %v8233_v15, %v922_v7 }
 0x492   :  { %7308 = vpow2.f32 %v965_v33  ;;  %v971_v27 = vmul.f32 1.442695, %v942_v55 }
 0x493   :  { %v8300_v20 = vpop.eup %7300 }
 0x494   :  { %v8304_v13 = vpop.eup %7302  ;;  %993 = vadd.xlane.f32.xlu0 %v992_v10  ;;  %v995_v25 = vsel %vm880_vm2, %v8300_v20, 0.0  ;;  %v919_v10 = vpop.xlane.xlu0 %918 }
 0x495   :  { %996 = vadd.xlane.f32.xlu1 %v995_v25  ;;  %v998_v2 = vsel %vm880_vm2, %v8304_v13, 0.0  ;;  %v967_v25 = vmul.f32 1.442695, %v940_v52 }
 0x496   :  { %v8310_v28 = vpop.eup %7304 }
 0x497   :  { %v1004_v19 = vsel %vm880_vm2, %v8310_v28, 0.0  ;;  %7310 = vpow2.f32 %v967_v25 }
 0x498   :  { %999 = vadd.xlane.f32.xlu0 %v998_v2  ;;  %v941_v2 = vsub.f32 %v8237_v46, %v919_v10  ;;  %7312 = vpow2.f32 %v971_v27  ;;  %v925_v10 = vpop.xlane.xlu0 %924 }
 0x499   :  { %v8324_v50 = vpop.eup %7306  ;;  %v943_v25 = vsub.f32 %v8245_v59, %v925_v10 }
 0x49a   :  { %v969_v14 = vmul.f32 1.442695, %v941_v2  ;;  %v1001_v4 = vsel %vm880_vm2, %v8324_v50, 0.0 }
 0x49b   :  { %v973_v2 = vmul.f32 1.442695, %v943_v25 }
 0x49c   :  { %1005 = vadd.xlane.f32.xlu0 %v1004_v19  ;;  %v928_v19 = vpop.xlane.xlu1 %927  ;;  %7314 = vpow2.f32 %v969_v14  ;;  %v8373_v14 = vpop.permute.xlu0 %1373 }
 0x49d   :  { %v944_v8 = vsub.f32 %v8241_v57, %v928_v19 }
 0x49f   :  { %v975_v1 = vmul.f32 1.442695, %v944_v8  ;;  %v8328_v15 = vpop.eup %7308 }
 0x4a0   :  { %v1007_v22 = vsel %vm880_vm2, %v8328_v15, 0.0  ;;  %v8369_v19 = vpop.permute.xlu1 %1550 }
 0x4a1   :  { %7316 = vpow2.f32 %v975_v1 }
 0x4a2   :  { %7318 = vpow2.f32 %v973_v2 }
 0x4a4   :  { %v8330_v46 = vpop.eup %7310 }
 0x4a5   :  { %v8334_v11 = vpop.eup %7312  ;;  %v1010_v57 = vsel %vm880_vm2, %v8330_v46, 0.0 }
 0x4a6   :  { %1377 = vrot.lane.b32.xlu1 %v7965_v12, %s7649_s17  ;;  %v1016_v7 = vsel %vm880_vm2, %v8334_v11, 0.0 }
 0x4a9   :  { %v8338_v51 = vpop.eup %7314 }
 0x4aa   :  { %v1013_v52 = vsel %vm880_vm2, %v8338_v51, 0.0 }
 0x4ae   :  { %v8344_v33 = vpop.eup %7316 }
 0x4af   :  { %v1022_v55 = vsel %vm880_vm2, %v8344_v33, 0.0  ;;  %v8361_v27 = vpop.eup %7318 }
 0x4b0   :  { %v1019_v59 = vsel %vm880_vm2, %v8361_v27, 0.0 }
 0x4b2   :  { %1375 = vrot.lane.b32.xlu0 %v7967_v0, %s7649_s17 }
 0x4ca   :  { %1002 = vadd.xlane.f32.xlu1 %v1001_v4 }
 0x4ce   :  { %1008 = vadd.xlane.f32.xlu1 %v1007_v22 }
 0x4d1   :  { %1011 = vadd.xlane.f32.xlu0 %v1010_v57 }
 0x4d2   :  { %1017 = vadd.xlane.f32.xlu1 %v1016_v7 }
 0x4d5   :  { %1014 = vadd.xlane.f32.xlu0 %v1013_v52 }
 0x4d9   :  { %1023 = vadd.xlane.f32.xlu0 %v1022_v55 }
 0x4e3   :  { %1532 = vrot.lane.b32.xlu1 %v7977_v9, %s7649_s17 }
 0x4ef   :  { %1548 = vrot.lane.b32.xlu0 %v7977_v9, %s7648_s16 }
 0x4f3   :  { %1534 = vrot.lane.b32.xlu0 %v8017_v42, %s7649_s17 }
 0x4f7   :  { %1538 = vrot.lane.b32.xlu0 %v8009_v36, %s7649_s17 }
 0x4fb   :  { %1542 = vrot.lane.b32.xlu0 %v8005_v39, %s7649_s17 }
 0x4ff   :  { %1546 = vrot.lane.b32.xlu0 %v7991_v56, %s7649_s17 }
 0x503   :  { %1907 = vrot.lane.b32.xlu0 %v7965_v12, %s7650_s18 }
 0x507   :  { %1020 = vadd.xlane.f32.xlu1 %v1019_v59  ;;  %1903 = vrot.lane.b32.xlu0 %v7975_v6, %s7650_s18 }
 0x50b   :  { %1899 = vrot.lane.b32.xlu0 %v7985_v21, %s7650_s18 }
 0x50f   :  { %v982_v8 = vpop.xlane.xlu1 %981  ;;  %1895 = vrot.lane.b32.xlu0 %v7995_v34, %s7650_s18 }
 0x510   :  { %7320 = vrcp.f32 %v982_v8 }
 0x511   :  { %v979_v1 = vpop.xlane.xlu0 %978 }
 0x512   :  { %7322 = vrcp.f32 %v979_v1 }
 0x513   :  { %2060 = vrot.lane.b32.xlu0 %v7991_v56, %s7650_s18 }
 0x515   :  { %v988_v4 = vpop.xlane.xlu0 %987 }
 0x516   :  { %7324 = vrcp.f32 %v988_v4 }
 0x517   :  { %2054 = vrot.lane.b32.xlu0 %v8013_v40, %s7650_s18 }
 0x518   :  { %1536 = vrot.lane.b32.xlu1 %v8021_v37, %s7649_s17 }
 0x519   :  { %v985_v22 = vpop.xlane.xlu0 %984  ;;  %v991_v57 = vpop.xlane.xlu1 %990 }
 0x51a   :  { %7326 = vrcp.f32 %v985_v22 }
 0x51b   :  { %7328 = vrcp.f32 %v991_v57 }
 0x51c   :  { %1540 = vrot.lane.b32.xlu1 %v8013_v40, %s7649_s17 }
 0x51d   :  { %v994_v7 = vpop.xlane.xlu0 %993  ;;  %v7321_v52 = vpop.eup %7320 }
 0x51e   :  { %v997_v55 = vpop.xlane.xlu1 %996  ;;  %7330 = vrcp.f32 %v994_v7  ;;  %v1042_v2 = vmul.f32 %v7321_v52, %v8277_v17 }
 0x51f   :  { %v7323_v10 = vpop.eup %7322  ;;  %7332 = vrcp.f32 %v997_v55 }
 0x520   :  { %1544 = vrot.lane.b32.xlu1 %v7999_v35, %s7649_s17  ;;  %v1041_v25 = vmul.f32 %v7323_v10, %v8282_v60 }
 0x521   :  { %v1000_v59 = vpop.xlane.xlu0 %999 }
 0x522   :  { %7334 = vrcp.f32 %v1000_v59  ;;  %6658 = vmatprep.mubr.msk.f32.mxu1 %vm880_vm2, %v1041_v25 }
 0x523   :  { %6659 = vmatmul.mubr.msk.f32.vlgmr.msra.gmra.mxu1 %vm880_vm2, %v1042_v2  ;;  %v7325_v8 = vpop.eup %7324 }
 0x524   :  { %1905 = vrot.lane.b32.xlu1 %v7967_v0, %s7650_s18  ;;  %6699 = vmatpush3.xpose.msk.msra.mxu1 %vm565_vm1, %v8153_v18  ;;  %v1044_v4 = vmul.f32 %v7325_v8, %v8286_v49 }
 0x525   :  { %6700 = vmatprep.subr.msk.mxu1 %vm565_vm1, %v8159_v23 }
 0x527   :  { %v7327_v1 = vpop.eup %7326 }
 0x528   :  { %v7329_v60 = vpop.eup %7328  ;;  %1901 = vrot.lane.b32.xlu1 %v7971_v3, %s7650_s18  ;;  %6701 = vmatpush3.xpose.msk.msra.mxu1 %vm565_vm1, %v8159_v23  ;;  %v1043_v17 = vmul.f32 %v7327_v1, %v8290_v58 }
 0x529   :  { %6702 = vmatprep.subr.msk.mxu1 %vm565_vm1, %v8165_v31  ;;  %v1045_v22 = vmul.f32 %v7329_v60, %v8292_v63 }
 0x52a   :  { %6661 = vmatprep.mubr.msk.f32.mxu1 %vm880_vm2, %v1043_v17 }
 0x52b   :  { %v7331_v18 = vpop.eup %7330  ;;  %6662 = vmatmul.mubr.msk.f32.gmra.mxu1 %vm880_vm2, %v1044_v4 }
 0x52c   :  { %v7333_v57 = vpop.eup %7332  ;;  %1897 = vrot.lane.b32.xlu1 %v7989_v26, %s7650_s18  ;;  %6703 = vmatpush3.xpose.msk.msra.mxu1 %vm565_vm1, %v8165_v31  ;;  %v1046_v23 = vmul.f32 %v7331_v18, %v8296_v47 }
 0x52d   :  { %6664 = vmatprep.mubr.msk.f32.mxu1 %vm880_vm2, %v1045_v22  ;;  %6704 = vmatprep.subr.msk.mxu1 %vm565_vm1, %v8167_v32  ;;  %v1047_v58 = vmul.f32 %v7333_v57, %v8300_v20 }
 0x52f   :  { %v7335_v49 = vpop.eup %7334  ;;  %6665 = vmatmul.mubr.msk.f32.gmra.mxu1 %vm880_vm2, %v1046_v23 }
 0x530   :  { %1893 = vrot.lane.b32.xlu1 %v7961_v30, %s7650_s18  ;;  %6705 = vmatpush3.xpose.msk.msra.mxu1 %vm565_vm1, %v8167_v32  ;;  %v1048_v31 = vmul.f32 %v7335_v49, %v8304_v13  ;;  %v1006_v32 = vpop.xlane.xlu0 %1005 }
 0x531   :  { %6667 = vmatprep.mubr.msk.f32.mxu1 %vm880_vm2, %v1047_v58  ;;  %6706 = vmatprep.subr.msk.mxu1 %vm565_vm1, %v8255_v38  ;;  %7336 = vrcp.f32 %v1006_v32 }
 0x533   :  { %6668 = vmatmul.mubr.msk.f32.gmra.mxu1 %vm880_vm2, %v1048_v31 }
 0x534   :  { %2058 = vrot.lane.b32.xlu1 %v7999_v35, %s7650_s18  ;;  %6707 = vmatpush3.xpose.msk.msra.mxu1 %vm565_vm1, %v8255_v38 }
 0x535   :  { %6708 = vmatprep.subr.msk.mxu1 %vm565_vm1, %v8171_v43  ;;  %6714 = vmatprep.mubr.msk.f32.mxu1 %vm565_vm1, %v8177_v61 }
 0x538   :  { %2056 = vrot.lane.b32.xlu1 %v8005_v39, %s7650_s18  ;;  %6709 = vmatpush3.xpose.msk.msra.mxu1 %vm565_vm1, %v8171_v43  ;;  %v1376_v43 = vpop.permute.xlu0 %1375 }
 0x539   :  { %6710 = vmatprep.subr.msk.mxu1 %vm565_vm1, %v8173_v44 }
 0x53c   :  { %6711 = vmatpush3.xpose.msk.msra.mxu1 %vm565_vm1, %v8173_v44  ;;  %v1378_v44 = vpop.permute.xlu1 %1377 }
 0x53d   :  { %6712 = vmatprep.subr.msk.mxu1 %vm565_vm1, %v8175_v53 }
 0x540   :  { %6713 = vmatpush3.xpose.msk.msra.mxu1 %vm565_vm1, %v8175_v53 }
 0x543   :  { %6715 = vmatmul.mubr.msk.f32.vlgmr.msra.gmra.mxu1 %vm565_vm1, %v8261_v62 }
 0x544   :  { %6717 = vmatprep.mubr.msk.f32.mxu1 %vm565_vm1, %v8263_v29 }
 0x547   :  { %6718 = vmatmul.mubr.msk.f32.gmra.mxu1 %vm565_vm1, %v8181_v45 }
 0x548   :  { %6720 = vmatprep.mubr.msk.f32.mxu1 %vm565_vm1, %v8183_v48  ;;  %v7337_v48 = vpop.eup %7336 }
 0x549   :  { %v1050_v20 = vmul.f32 %v7337_v48, %v8310_v28 }
 0x54b   :  { %6721 = vmatmul.mubr.msk.f32.gmra.mxu1 %vm565_vm1, %v8373_v14 }
 0x54c   :  { %6723 = vmatprep.mubr.msk.f32.mxu1 %vm565_vm1, %v1376_v43 }
 0x54f   :  { %6724 = vmatmul.mubr.msk.f32.gmra.mxu1 %vm565_vm1, %v1378_v44 }
 0x553   :  { %v1003_v53 = vpop.xlane.xlu1 %1002 }
 0x554   :  { %7338 = vrcp.f32 %v1003_v53 }
 0x557   :  { %v1009_v29 = vpop.xlane.xlu1 %1008 }
 0x558   :  { %7340 = vrcp.f32 %v1009_v29 }
 0x55a   :  { %v1012_v61 = vpop.xlane.xlu0 %1011 }
 0x55b   :  { %v1018_v38 = vpop.xlane.xlu1 %1017  ;;  %7342 = vrcp.f32 %v1012_v61 }
 0x55c   :  { %7344 = vrcp.f32 %v1018_v38 }
 0x55e   :  { %v1015_v45 = vpop.xlane.xlu0 %1014 }
 0x55f   :  { %7346 = vrcp.f32 %v1015_v45  ;;  %v1533_v59 = vpop.permute.xlu1 %1532 }
 0x561   :  { %v7339_v62 = vpop.eup %7338 }
 0x562   :  { %v1024_v63 = vpop.xlane.xlu0 %1023  ;;  %v1049_v47 = vmul.f32 %v7339_v62, %v8324_v50 }
 0x563   :  { %7348 = vrcp.f32 %v1024_v63 }
 0x564   :  { %6686 = vmatprep.mubr.msk.f32.mxu0 %vm880_vm2, %v1049_v47 }
 0x565   :  { %v7341_v13 = vpop.eup %7340  ;;  %6687 = vmatmul.mubr.msk.f32.vlgmr.msra.gmra.mxu0 %vm880_vm2, %v1050_v20 }
 0x566   :  { %6727 = vmatpush3.xpose.msk.msra.mxu0 %vm565_vm1, %v8169_v41  ;;  %v1549_v14 = vpop.permute.xlu0 %1548  ;;  %v1051_v7 = vmul.f32 %v7341_v13, %v8328_v15 }
 0x567   :  { %6728 = vmatprep.subr.msk.mxu0 %vm565_vm1, %v8267_v16 }
 0x568   :  { %v7343_v52 = vpop.eup %7342  ;;  %6689 = vmatprep.mubr.msk.f32.mxu0 %vm880_vm2, %v1051_v7 }
 0x569   :  { %v1052_v50 = vmul.f32 %v7343_v52, %v8330_v46  ;;  %v7345_v55 = vpop.eup %7344  ;;  %v10470_v46 = vld [vmem:[#allocation19_spill] sm:$0xff] }
 0x56a   :  { %6729 = vmatpush3.xpose.msk.msra.mxu0 %vm565_vm1, %v8267_v16  ;;  %v1535_v28 = vpop.permute.xlu0 %1534  ;;  %v1054_v25 = vmul.f32 %v7345_v55, %v8334_v11 }
 0x56b   :  { %6730 = vmatprep.subr.msk.mxu0 %vm565_vm1, %v8257_v24  ;;  %6690 = vmatmul.mubr.msk.f32.gmra.mxu0 %vm880_vm2, %v1052_v50 }
 0x56c   :  { %v7347_v41 = vpop.eup %7346 }
 0x56d   :  { %v1053_v15 = vmul.f32 %v7347_v41, %v8338_v51 }
 0x56e   :  { %6731 = vmatpush3.xpose.msk.msra.mxu0 %vm565_vm1, %v8257_v24  ;;  %v1539_v10 = vpop.permute.xlu0 %1538 }
 0x56f   :  { %6732 = vmatprep.subr.msk.mxu0 %vm565_vm1, %v8259_v5  ;;  %6692 = vmatprep.mubr.msk.f32.mxu0 %vm880_vm2, %v1053_v15 }
 0x570   :  { %6693 = vmatmul.mubr.msk.f32.gmra.mxu0 %vm880_vm2, %v1054_v25  ;;  %v7349_v4 = vpop.eup %7348 }
 0x571   :  { %v1056_v57 = vmul.f32 %v7349_v4, %v8344_v33 }
 0x572   :  { %6733 = vmatpush3.xpose.msk.msra.mxu0 %vm565_vm1, %v8259_v5  ;;  %v1543_v16 = vpop.permute.xlu0 %1542 }
 0x573   :  { %6734 = vmatprep.subr.msk.mxu0 %vm565_vm1, %v8179_v54 }
 0x576   :  { %6735 = vmatpush3.xpose.msk.msra.mxu0 %vm565_vm1, %v8179_v54  ;;  %v1547_v24 = vpop.permute.xlu0 %1546 }
 0x577   :  { %6736 = vmatprep.subr.msk.mxu0 %vm565_vm1, %v10470_v46 }
 0x57a   :  { %6737 = vmatpush3.xpose.msk.msra.mxu0 %vm565_vm1, %v10470_v46  ;;  %v1908_v11 = vpop.permute.xlu0 %1907 }
 0x57b   :  { %6738 = vmatprep.subr.msk.mxu0 %vm565_vm1, %v8369_v19  ;;  %6754 = vmatprep.subr.mxu1 %v1908_v11 }
 0x57c   :  { %6755 = vmatpush3.msra.mxu1 %v1908_v11 }
 0x57e   :  { %6739 = vmatpush3.xpose.msk.msra.mxu0 %vm565_vm1, %v8369_v19  ;;  %v1904_v5 = vpop.permute.xlu0 %1903 }
 0x57f   :  { %6740 = vmatprep.subr.msk.mxu0 %vm565_vm1, %v1549_v14 }
 0x582   :  { %6741 = vmatpush3.xpose.msk.msra.mxu0 %vm565_vm1, %v1549_v14  ;;  %v1900_v54 = vpop.permute.xlu0 %1899 }
 0x586   :  { %v1896_v51 = vpop.permute.xlu0 %1895 }
 0x58a   :  { %v8499_v2 = vpop.permute.xlu0 %2060 }
 0x58b   :  { %6782 = vmatprep.subr.mxu0 %v8499_v2 }
 0x58e   :  { %v8523_v31 = vpop.permute.xlu0 %2054 }
 0x590   :  { %v1021_v8 = vpop.xlane.xlu1 %1020 }
 0x591   :  { %7350 = vrcp.f32 %v1021_v8 }
 0x594   :  { %v1537_v1 = vpop.permute.xlu1 %1536 }
 0x598   :  { %v1541_v60 = vpop.permute.xlu1 %1540 }
 0x59c   :  { %v1545_v17 = vpop.permute.xlu1 %1544 }
 0x59e   :  { %v7351_v19 = vpop.eup %7350 }
 0x59f   :  { %v1055_v18 = vmul.f32 %v7351_v19, %v8361_v27 }
 0x5a0   :  { %v1906_v22 = vpop.permute.xlu1 %1905 }
 0x5a1   :  { %6695 = vmatprep.mubr.msk.f32.mxu0 %vm880_vm2, %v1055_v18  ;;  %6756 = vmatprep.subr.mxu1 %v1906_v22 }
 0x5a2   :  { %6696 = vmatmul.mubr.msk.f32.gmra.mxu0 %vm880_vm2, %v1056_v57  ;;  %6757 = vmatpush3.msra.mxu1 %v1906_v22 }
 0x5a3   :  { %6742 = vmatprep.mubr.msk.f32.mxu0 %vm565_vm1, %v1533_v59  ;;  %6758 = vmatprep.subr.mxu1 %v1904_v5 }
 0x5a4   :  { %v1902_v23 = vpop.permute.xlu1 %1901  ;;  %6759 = vmatpush3.msra.mxu1 %v1904_v5 }
 0x5a5   :  { %6760 = vmatprep.subr.mxu1 %v1902_v23 }
 0x5a6   :  { %6743 = vmatmul.mubr.msk.f32.vlgmr.msra.gmra.mxu0 %vm565_vm1, %v1535_v28  ;;  %6761 = vmatpush3.msra.mxu1 %v1902_v23 }
 0x5a7   :  { %6783 = vmatpush3.msra.mxu0 %v8499_v2  ;;  %6745 = vmatprep.mubr.msk.f32.mxu0 %vm565_vm1, %v1537_v1 }
 0x5a8   :  { %6762 = vmatprep.subr.mxu1 %v1900_v54  ;;  %v1898_v33 = vpop.permute.xlu1 %1897 }
 0x5a9   :  { %6763 = vmatpush3.msra.mxu1 %v1900_v54 }
 0x5aa   :  { %6764 = vmatprep.subr.mxu1 %v1898_v33  ;;  %6746 = vmatmul.mubr.msk.f32.gmra.mxu0 %vm565_vm1, %v1539_v10 }
 0x5ab   :  { %6765 = vmatpush3.msra.mxu1 %v1898_v33  ;;  %6748 = vmatprep.mubr.msk.f32.mxu0 %vm565_vm1, %v1541_v60 }
 0x5ac   :  { %6766 = vmatprep.subr.mxu1 %v1896_v51  ;;  %v1894_v27 = vpop.permute.xlu1 %1893 }
 0x5ad   :  { %6767 = vmatpush3.msra.mxu1 %v1896_v51 }
 0x5ae   :  { %6768 = vmatprep.subr.mxu1 %v1894_v27  ;;  %6749 = vmatmul.mubr.msk.f32.gmra.mxu0 %vm565_vm1, %v1543_v16 }
 0x5af   :  { %6769 = vmatpush3.msra.mxu1 %v1894_v27  ;;  %6751 = vmatprep.mubr.msk.f32.mxu0 %vm565_vm1, %v1545_v17 }
 0x5b0   :  { %7226 = vmatprep.subr.mxu1 %v8499_v2  ;;  %v8515_v49 = vpop.permute.xlu1 %2058 }
 0x5b1   :  { %6784 = vmatprep.subr.mxu0 %v8515_v49 }
 0x5b2   :  { %6752 = vmatmul.mubr.msk.f32.gmra.mxu0 %vm565_vm1, %v1547_v24 }
 0x5b3   :  { %6785 = vmatpush3.msra.mxu0 %v8515_v49 }
 0x5b4   :  { %v8520_v58 = vpop.permute.xlu1 %2056 }
 0x5b5   :  { %6786 = vmatprep.subr.mxu0 %v8520_v58 }
 0x5b6   :  { %6787 = vmatpush3.msra.mxu0 %v8520_v58 }
 0x5b7   :  { %6788 = vmatprep.subr.mxu0 %v8523_v31 }
 0x5b8   :  { %6789 = vmatpush3.msra.mxu0 %v8523_v31 }
 0x5e3   :  { %v8528_v32 = vpop.f32.mrf.mxu1 }
 0x5e5   :  { %v8530_v43 = vpop.f32.mrf.mxu1 }
 0x5eb   :  { %v8532_v44 = vpop.f32.mrf.mxu1 }
 0x5ed   :  { %v8534_v53 = vpop.f32.mrf.mxu1 }
 0x5ef   :  { %v8536_v29 = vpop.f32.mrf.mxu1 }
 0x5f1   :  { %v8538_v61 = vpop.f32.mrf.mxu1 }
 0x5f3   :  { %v8540_v38 = vpop.f32.mrf.mxu1 }
 0x5f5   :  { %v8542_v45 = vpop.f32.mrf.mxu1 }
 0x603   :  { %v6716_v48 = vpop.f32.mrf.mxu1 }
 0x604   :  { %v8544_v62 = vmul.f32 0.17677669, %v6716_v48 }
 0x605   :  { %v1493_v63 = vpop.f32.mrf.mxu1 }
 0x606   :  { %v8546_v47 = vmul.f32 0.17677669, %v1493_v63  ;;  %v1720_v20 = vsel %vm880_vm2, %v8544_v62, -inf }
 0x607   :  { %1721 = vmax.xlane.f32.xlu0 %v1720_v20  ;;  %v6719_v13 = vpop.f32.mrf.mxu1 }
 0x608   :  { %v8550_v14 = vmul.f32 0.17677669, %v6719_v13  ;;  %v1717_v7 = vsel %vm880_vm2, %v8546_v47, -inf }
 0x609   :  { %1718 = vmax.xlane.f32.xlu1 %v1717_v7  ;;  %v1503_v52 = vpop.f32.mrf.mxu1 }
 0x60a   :  { %v8554_v50 = vmul.f32 0.17677669, %v1503_v52  ;;  %v1726_v41 = vsel %vm880_vm2, %v8550_v14, -inf }
 0x60b   :  { %v6722_v28 = vpop.f32.mrf.mxu1 }
 0x60c   :  { %v8556_v55 = vmul.f32 0.17677669, %v6722_v28  ;;  %v1723_v15 = vsel %vm880_vm2, %v8554_v50, -inf }
 0x60d   :  { %1727 = vmax.xlane.f32.xlu1 %v1726_v41  ;;  %1724 = vmax.xlane.f32.xlu0 %v1723_v15  ;;  %v1513_v10 = vpop.f32.mrf.mxu1 }
 0x60e   :  { %v8562_v25 = vmul.f32 0.17677669, %v1513_v10  ;;  %v1732_v46 = vsel %vm880_vm2, %v8556_v55, -inf }
 0x60f   :  { %v6725_v16 = vpop.f32.mrf.mxu1 }
 0x610   :  { %v8564_v24 = vmul.f32 0.17677669, %v6725_v16  ;;  %v1729_v11 = vsel %vm880_vm2, %v8562_v25, -inf }
 0x611   :  { %1733 = vmax.xlane.f32.xlu1 %v1732_v46  ;;  %1730 = vmax.xlane.f32.xlu0 %v1729_v11  ;;  %v1523_v5 = vpop.f32.mrf.mxu1 }
 0x612   :  { %v8570_v54 = vmul.f32 0.17677669, %v1523_v5  ;;  %v1738_v51 = vsel %vm880_vm2, %v8564_v24, -inf }
 0x614   :  { %v1735_v59 = vsel %vm880_vm2, %v8570_v54, -inf }
 0x615   :  { %1739 = vmax.xlane.f32.xlu1 %v1738_v51  ;;  %1736 = vmax.xlane.f32.xlu0 %v1735_v59 }
 0x625   :  { %v8576_v8 = vpop.f32.mrf.mxu0 }
 0x627   :  { %v8578_v1 = vpop.f32.mrf.mxu0 }
 0x62b   :  { %v8580_v60 = vpop.f32.mrf.mxu0 }
 0x62d   :  { %v8582_v17 = vpop.f32.mrf.mxu0 }
 0x630   :  { %v8584_v4 = vpop.f32.mrf.mxu0 }
 0x631   :  { %10471 = vst [vmem:[#allocation19_spill] sm:$0xff] %v8584_v4 }
 0x632   :  { %v8586_v19 = vpop.f32.mrf.mxu0 }
 0x662   :  { %v8588_v18 = vpop.f32.mrf.mxu0 }
 0x663   :  { %10472 = vst [vmem:[#allocation20_spill] sm:$0xff] %v8588_v18 }
 0x664   :  { %v8590_v22 = vpop.f32.mrf.mxu0 }
 0x665   :  { %10473 = vst [vmem:[#allocation21_spill] sm:$0xff] %v8590_v22 }
 0x666   :  { %v6744_v57 = vpop.f32.mrf.mxu0 }
 0x667   :  { %v8592_v23 = vmul.f32 0.17677669, %v6744_v57 }
 0x668   :  { %v1662_v33 = vpop.f32.mrf.mxu0 }
 0x669   :  { %v8594_v27 = vmul.f32 0.17677669, %v1662_v33  ;;  %v1744_v48 = vsel %vm880_vm2, %v8592_v23, -inf }
 0x66a   :  { %1745 = vmax.xlane.f32.xlu1 %v1744_v48  ;;  %v6747_v63 = vpop.f32.mrf.mxu0 }
 0x66b   :  { %v8598_v20 = vmul.f32 0.17677669, %v6747_v63  ;;  %v1741_v13 = vsel %vm880_vm2, %v8594_v27, -inf }
 0x66c   :  { %1742 = vmax.xlane.f32.xlu0 %v1741_v13  ;;  %v1672_v7 = vpop.f32.mrf.mxu0 }
 0x66d   :  { %v8602_v52 = vmul.f32 0.17677669, %v1672_v7  ;;  %v1750_v28 = vsel %vm880_vm2, %v8598_v20, -inf }
 0x66e   :  { %1751 = vmax.xlane.f32.xlu1 %v1750_v28  ;;  %v6750_v41 = vpop.f32.mrf.mxu0 }
 0x66f   :  { %v8606_v15 = vmul.f32 0.17677669, %v6750_v41  ;;  %v1747_v10 = vsel %vm880_vm2, %v8602_v52, -inf }
 0x670   :  { %1748 = vmax.xlane.f32.xlu0 %v1747_v10  ;;  %v1682_v16 = vpop.f32.mrf.mxu0 }
 0x671   :  { %v8610_v46 = vmul.f32 0.17677669, %v1682_v16  ;;  %v1756_v11 = vsel %vm880_vm2, %v8606_v15, -inf }
 0x672   :  { %1757 = vmax.xlane.f32.xlu1 %v1756_v11  ;;  %v6753_v5 = vpop.f32.mrf.mxu0 }
 0x673   :  { %v8614_v51 = vmul.f32 0.17677669, %v6753_v5  ;;  %v1753_v59 = vsel %vm880_vm2, %v8610_v46, -inf }
 0x674   :  { %1754 = vmax.xlane.f32.xlu0 %v1753_v59  ;;  %v1692_v57 = vpop.f32.mrf.mxu0 }
 0x675   :  { %v8618_v33 = vmul.f32 0.17677669, %v1692_v57  ;;  %v1762_v48 = vsel %vm880_vm2, %v8614_v51, -inf }
 0x676   :  { %1763 = vmax.xlane.f32.xlu1 %v1762_v48 }
 0x677   :  { %v1759_v63 = vsel %vm880_vm2, %v8618_v33, -inf }
 0x678   :  { %1760 = vmax.xlane.f32.xlu0 %v1759_v63 }
 0x687   :  { %2052 = vrot.lane.b32.xlu1 %v8009_v36, %s7650_s18 }
 0x68e   :  { %2050 = vrot.lane.b32.xlu0 %v8021_v37, %s7650_s18 }
 0x690   :  { %v1722_v13 = vpop.xlane.xlu0 %1721 }
 0x691   :  { %v1766_v7 = vsub.f32 %v8544_v62, %v1722_v13 }
 0x692   :  { %v1719_v28 = vpop.xlane.xlu1 %1718 }
 0x693   :  { %v1765_v41 = vsub.f32 %v8546_v47, %v1719_v28  ;;  %v1783_v10 = vmul.f32 1.442695, %v1766_v7 }
 0x695   :  { %v1781_v59 = vmul.f32 1.442695, %v1765_v41  ;;  %7352 = vpow2.f32 %v1783_v10 }
 0x696   :  { %v1728_v16 = vpop.xlane.xlu1 %1727  ;;  %v1725_v11 = vpop.xlane.xlu0 %1724 }
 0x697   :  { %v1768_v5 = vsub.f32 %v8550_v14, %v1728_v16  ;;  %v1767_v57 = vsub.f32 %v8554_v50, %v1725_v11  ;;  %7354 = vpow2.f32 %v1781_v59 }
 0x699   :  { %v1787_v48 = vmul.f32 1.442695, %v1768_v5  ;;  %v1785_v4 = vmul.f32 1.442695, %v1767_v57 }
 0x69a   :  { %v1734_v63 = vpop.xlane.xlu1 %1733  ;;  %v1731_v18 = vpop.xlane.xlu0 %1730 }
 0x69b   :  { %v1770_v22 = vsub.f32 %v8556_v55, %v1734_v63  ;;  %v1769_v62 = vsub.f32 %v8562_v25, %v1731_v18  ;;  %7356 = vpow2.f32 %v1787_v48 }
 0x69c   :  { %7358 = vpow2.f32 %v1785_v4 }
 0x69d   :  { %v1791_v47 = vmul.f32 1.442695, %v1770_v22  ;;  %v1789_v14 = vmul.f32 1.442695, %v1769_v62 }
 0x69e   :  { %v1740_v13 = vpop.xlane.xlu1 %1739  ;;  %v1737_v7 = vpop.xlane.xlu0 %1736 }
 0x69f   :  { %v1772_v28 = vsub.f32 %v8564_v24, %v1740_v13  ;;  %v1771_v50 = vsub.f32 %v8570_v54, %v1737_v7  ;;  %7360 = vpow2.f32 %v1791_v47 }
 0x6a0   :  { %7362 = vpow2.f32 %v1789_v14 }
 0x6a1   :  { %v1795_v41 = vmul.f32 1.442695, %v1772_v28  ;;  %v1793_v10 = vmul.f32 1.442695, %v1771_v50 }
 0x6a2   :  { %v8636_v55 = vpop.eup %7352 }
 0x6a3   :  { %7364 = vpow2.f32 %v1795_v41  ;;  %v1816_v25 = vsel %vm880_vm2, %v8636_v55, 0.0 }
 0x6a4   :  { %7366 = vpow2.f32 %v1793_v10  ;;  %v8638_v16 = vpop.eup %7354 }
 0x6a5   :  { %v1813_v24 = vsel %vm880_vm2, %v8638_v16, 0.0 }
 0x6a8   :  { %v8642_v18 = vpop.eup %7356 }
 0x6a9   :  { %v8646_v54 = vpop.eup %7358  ;;  %v1822_v4 = vsel %vm880_vm2, %v8642_v18, 0.0 }
 0x6aa   :  { %v1819_v11 = vsel %vm880_vm2, %v8646_v54, 0.0 }
 0x6ab   :  { %1817 = vadd.xlane.f32.xlu1 %v1816_v25 }
 0x6ac   :  { %v8650_v22 = vpop.eup %7360 }
 0x6ad   :  { %1814 = vadd.xlane.f32.xlu0 %v1813_v24  ;;  %v8654_v5 = vpop.eup %7362  ;;  %v1828_v59 = vsel %vm880_vm2, %v8650_v22, 0.0 }
 0x6ae   :  { %v1825_v48 = vsel %vm880_vm2, %v8654_v5, 0.0 }
 0x6af   :  { %1823 = vadd.xlane.f32.xlu1 %v1822_v4 }
 0x6b0   :  { %v8658_v57 = vpop.eup %7364 }
 0x6b1   :  { %1820 = vadd.xlane.f32.xlu0 %v1819_v11  ;;  %v8662_v63 = vpop.eup %7366  ;;  %v1834_v62 = vsel %vm880_vm2, %v8658_v57, 0.0 }
 0x6b2   :  { %v1831_v47 = vsel %vm880_vm2, %v8662_v63, 0.0 }
 0x6b3   :  { %1829 = vadd.xlane.f32.xlu1 %v1828_v59 }
 0x6b5   :  { %1826 = vadd.xlane.f32.xlu0 %v1825_v48 }
 0x6b7   :  { %1835 = vadd.xlane.f32.xlu1 %v1834_v62 }
 0x6b9   :  { %1832 = vadd.xlane.f32.xlu0 %v1831_v47 }
 0x6f3   :  { %v1746_v13 = vpop.xlane.xlu1 %1745 }
 0x6f4   :  { %v1774_v7 = vsub.f32 %v8592_v23, %v1746_v13 }
 0x6f5   :  { %v1743_v28 = vpop.xlane.xlu0 %1742 }
 0x6f6   :  { %v1799_v14 = vmul.f32 1.442695, %v1774_v7  ;;  %v1773_v50 = vsub.f32 %v8594_v27, %v1743_v28 }
 0x6f7   :  { %v1752_v41 = vpop.xlane.xlu1 %1751 }
 0x6f8   :  { %7368 = vpow2.f32 %v1799_v14  ;;  %v1797_v10 = vmul.f32 1.442695, %v1773_v50  ;;  %v1776_v25 = vsub.f32 %v8598_v20, %v1752_v41 }
 0x6f9   :  { %v1749_v24 = vpop.xlane.xlu0 %1748 }
 0x6fa   :  { %7370 = vpow2.f32 %v1797_v10  ;;  %v1803_v4 = vmul.f32 1.442695, %v1776_v25  ;;  %v1775_v11 = vsub.f32 %v8602_v52, %v1749_v24 }
 0x6fb   :  { %v1758_v59 = vpop.xlane.xlu1 %1757 }
 0x6fc   :  { %7372 = vpow2.f32 %v1803_v4  ;;  %v1801_v48 = vmul.f32 1.442695, %v1775_v11  ;;  %v1778_v62 = vsub.f32 %v8606_v15, %v1758_v59 }
 0x6fd   :  { %v1755_v23 = vpop.xlane.xlu0 %1754 }
 0x6fe   :  { %7374 = vpow2.f32 %v1801_v48  ;;  %v1807_v47 = vmul.f32 1.442695, %v1778_v62  ;;  %v1777_v27 = vsub.f32 %v8610_v46, %v1755_v23 }
 0x6ff   :  { %v1764_v13 = vpop.xlane.xlu1 %1763 }
 0x700   :  { %7376 = vpow2.f32 %v1807_v47  ;;  %v1805_v7 = vmul.f32 1.442695, %v1777_v27  ;;  %v1780_v20 = vsub.f32 %v8614_v51, %v1764_v13 }
 0x701   :  { %v1761_v28 = vpop.xlane.xlu0 %1760 }
 0x702   :  { %7378 = vpow2.f32 %v1805_v7  ;;  %v1811_v14 = vmul.f32 1.442695, %v1780_v20  ;;  %v1779_v52 = vsub.f32 %v8618_v33, %v1761_v28  ;;  %v7640_v20 = vld [vmem:[%s10426_s1 + $0x10] sm:$0xff] }
 0x703   :  { %v8676_v50 = vpop.permute.xlu1 %2052 }
 0x704   :  { %7380 = vpow2.f32 %v1811_v14  ;;  %v1809_v41 = vmul.f32 1.442695, %v1779_v52  ;;  %6790 = vmatprep.subr.mxu0 %v8676_v50  ;;  %v7641_v14 = vld [vmem:[%s10426_s1] sm:$0xff] }
 0x705   :  { %v8679_v15 = vpop.eup %7368  ;;  %6791 = vmatpush3.msra.mxu0 %v8676_v50  ;;  %v8682_v46 = vpop.permute.xlu0 %2050 }
 0x706   :  { %7382 = vpow2.f32 %v1809_v41  ;;  %6792 = vmatprep.subr.mxu0 %v8682_v46  ;;  %v1840_v51 = vsel %vm880_vm2, %v8679_v15, 0.0 }
 0x707   :  { %v8687_v10 = vpop.eup %7370  ;;  %1841 = vadd.xlane.f32.xlu0 %v1840_v51  ;;  %6793 = vmatpush3.msra.mxu0 %v8682_v46 }
 0x708   :  { %v1837_v33 = vsel %vm880_vm2, %v8687_v10, 0.0 }
 0x709   :  { %v8692_v25 = vpop.eup %7372  ;;  %1838 = vadd.xlane.f32.xlu1 %v1837_v33 }
 0x70a   :  { %v1846_v24 = vsel %vm880_vm2, %v8692_v25, 0.0 }
 0x70b   :  { %v8696_v4 = vpop.eup %7374  ;;  %1847 = vadd.xlane.f32.xlu0 %v1846_v24 }
 0x70c   :  { %v1843_v11 = vsel %vm880_vm2, %v8696_v4, 0.0 }
 0x70d   :  { %v8700_v59 = vpop.eup %7376  ;;  %1844 = vadd.xlane.f32.xlu1 %v1843_v11 }
 0x70e   :  { %v1852_v48 = vsel %vm880_vm2, %v8700_v59, 0.0 }
 0x70f   :  { %v8704_v62 = vpop.eup %7378  ;;  %1853 = vadd.xlane.f32.xlu0 %v1852_v48 }
 0x710   :  { %v1849_v23 = vsel %vm880_vm2, %v8704_v62, 0.0 }
 0x711   :  { %v8708_v47 = vpop.eup %7380  ;;  %1850 = vadd.xlane.f32.xlu1 %v1849_v23 }
 0x712   :  { %v1858_v27 = vsel %vm880_vm2, %v8708_v47, 0.0 }
 0x713   :  { %v8712_v13 = vpop.eup %7382  ;;  %1859 = vadd.xlane.f32.xlu0 %v1858_v27 }
 0x714   :  { %v1855_v7 = vsel %vm880_vm2, %v8712_v13, 0.0 }
 0x715   :  { %1856 = vadd.xlane.f32.xlu1 %v1855_v7 }
 0x726   :  { %2048 = vrot.lane.b32.xlu1 %v8017_v42, %s7650_s18 }
 0x729   :  { %2046 = vrot.lane.b32.xlu0 %v7977_v9, %s7650_s18 }
 0x72a   :  { %2200 = vrot.lane.b32.xlu1 %v7640_v20, %s7651_s21 }
 0x72d   :  { %2623 = vrot.lane.b32.xlu0 %v7965_v12, %s7652_s22 }
 0x72e   :  { %2621 = vrot.lane.b32.xlu1 %v7967_v0, %s7652_s22 }
 0x731   :  { %2619 = vrot.lane.b32.xlu0 %v7975_v6, %s7652_s22 }
 0x732   :  { %2617 = vrot.lane.b32.xlu1 %v7971_v3, %s7652_s22 }
 0x734   :  { %v1818_v28 = vpop.xlane.xlu1 %1817 }
 0x735   :  { %2397 = vrot.lane.b32.xlu0 %v7641_v14, %s7651_s21  ;;  %7384 = vrcp.f32 %v1818_v28 }
 0x736   :  { %2615 = vrot.lane.b32.xlu1 %v7985_v21, %s7652_s22  ;;  %v1815_v52 = vpop.xlane.xlu0 %1814 }
 0x737   :  { %7386 = vrcp.f32 %v1815_v52 }
 0x738   :  { %v1824_v41 = vpop.xlane.xlu1 %1823 }
 0x739   :  { %2792 = vrot.lane.b32.xlu0 %v7991_v56, %s7652_s22  ;;  %7388 = vrcp.f32 %v1824_v41 }
 0x73a   :  { %2613 = vrot.lane.b32.xlu1 %v7989_v26, %s7652_s22  ;;  %v1821_v51 = vpop.xlane.xlu0 %1820 }
 0x73b   :  { %7390 = vrcp.f32 %v1821_v51 }
 0x73c   :  { %v1830_v33 = vpop.xlane.xlu1 %1829 }
 0x73d   :  { %2790 = vrot.lane.b32.xlu0 %v7999_v35, %s7652_s22  ;;  %7392 = vrcp.f32 %v1830_v33 }
 0x73e   :  { %2611 = vrot.lane.b32.xlu1 %v7995_v34, %s7652_s22  ;;  %v1827_v24 = vpop.xlane.xlu0 %1826 }
 0x73f   :  { %7394 = vrcp.f32 %v1827_v24 }
 0x740   :  { %v1836_v11 = vpop.xlane.xlu1 %1835 }
 0x741   :  { %2788 = vrot.lane.b32.xlu0 %v8005_v39, %s7652_s22  ;;  %7396 = vrcp.f32 %v1836_v11 }
 0x742   :  { %2609 = vrot.lane.b32.xlu1 %v7961_v30, %s7652_s22  ;;  %v1833_v48 = vpop.xlane.xlu0 %1832  ;;  %v7385_v23 = vpop.eup %7384 }
 0x743   :  { %7398 = vrcp.f32 %v1833_v48  ;;  %v1878_v20 = vmul.f32 %v7385_v23, %v8636_v55 }
 0x744   :  { %v7387_v27 = vpop.eup %7386 }
 0x745   :  { %2786 = vrot.lane.b32.xlu0 %v8013_v40, %s7652_s22  ;;  %v1877_v7 = vmul.f32 %v7387_v27, %v8638_v16 }
 0x746   :  { %2593 = vrot.lane.b32.xlu1 %v7961_v30, %s7653_s25  ;;  %v7389_v28 = vpop.eup %7388 }
 0x747   :  { %6770 = vmatprep.mubr.msk.f32.mxu1 %vm880_vm2, %v1877_v7  ;;  %v1880_v55 = vmul.f32 %v7389_v28, %v8642_v18 }
 0x748   :  { %v7391_v14 = vpop.eup %7390  ;;  %6771 = vmatmul.mubr.msk.f32.vlgmr.msra.gmra.mxu1 %vm880_vm2, %v1878_v20 }
 0x749   :  { %7234 = vmatpush3.msra.mxu1 %v8499_v2  ;;  %2595 = vrot.lane.b32.xlu0 %v7995_v34, %s7653_s25  ;;  %v1879_v52 = vmul.f32 %v7391_v14, %v8646_v54 }
 0x74a   :  { %7227 = vmatprep.subr.mxu1 %v8515_v49  ;;  %2784 = vrot.lane.b32.xlu1 %v8009_v36, %s7652_s22  ;;  %v7393_v16 = vpop.eup %7392 }
 0x74b   :  { %7235 = vmatpush3.msra.mxu1 %v8515_v49  ;;  %6773 = vmatprep.mubr.msk.f32.mxu1 %vm880_vm2, %v1879_v52  ;;  %v1882_v49 = vmul.f32 %v7393_v16, %v8650_v22 }
 0x74c   :  { %v7395_v41 = vpop.eup %7394  ;;  %7228 = vmatprep.subr.mxu1 %v8520_v58  ;;  %6774 = vmatmul.mubr.msk.f32.gmra.mxu1 %vm880_vm2, %v1880_v55 }
 0x74d   :  { %7236 = vmatpush3.msra.mxu1 %v8520_v58  ;;  %2597 = vrot.lane.b32.xlu0 %v7989_v26, %s7653_s25  ;;  %v1881_v2 = vmul.f32 %v7395_v41, %v8654_v5 }
 0x74e   :  { %7229 = vmatprep.subr.mxu1 %v8523_v31  ;;  %2599 = vrot.lane.b32.xlu1 %v7985_v21, %s7653_s25  ;;  %v7397_v18 = vpop.eup %7396 }
 0x74f   :  { %7237 = vmatpush3.msra.mxu1 %v8523_v31  ;;  %6776 = vmatprep.mubr.msk.f32.mxu1 %vm880_vm2, %v1881_v2  ;;  %v1884_v31 = vmul.f32 %v7397_v18, %v8658_v57 }
 0x750   :  { %v7399_v54 = vpop.eup %7398  ;;  %7230 = vmatprep.subr.mxu1 %v8676_v50  ;;  %6777 = vmatmul.mubr.msk.f32.gmra.mxu1 %vm880_vm2, %v1882_v49 }
 0x751   :  { %7238 = vmatpush3.msra.mxu1 %v8676_v50  ;;  %2782 = vrot.lane.b32.xlu0 %v8021_v37, %s7652_s22  ;;  %v1883_v58 = vmul.f32 %v7399_v54, %v8662_v63 }
 0x752   :  { %7231 = vmatprep.subr.mxu1 %v8682_v46  ;;  %2601 = vrot.lane.b32.xlu1 %v7971_v3, %s7653_s25 }
 0x753   :  { %7239 = vmatpush3.msra.mxu1 %v8682_v46  ;;  %6779 = vmatprep.mubr.msk.f32.mxu1 %vm880_vm2, %v1883_v58 }
 0x754   :  { %6780 = vmatmul.mubr.msk.f32.gmra.mxu1 %vm880_vm2, %v1884_v31 }
 0x755   :  { %2603 = vrot.lane.b32.xlu0 %v7975_v6, %s7653_s25 }
 0x756   :  { %2780 = vrot.lane.b32.xlu1 %v8017_v42, %s7652_s22 }
 0x759   :  { %2605 = vrot.lane.b32.xlu0 %v7967_v0, %s7653_s25 }
 0x75a   :  { %2607 = vrot.lane.b32.xlu1 %v7965_v12, %s7653_s25 }
 0x75d   :  { %2778 = vrot.lane.b32.xlu0 %v7977_v9, %s7652_s22 }
 0x75e   :  { %2762 = vrot.lane.b32.xlu1 %v7977_v9, %s7653_s25 }
 0x761   :  { %2764 = vrot.lane.b32.xlu0 %v8017_v42, %s7653_s25 }
 0x762   :  { %2766 = vrot.lane.b32.xlu1 %v8021_v37, %s7653_s25 }
 0x765   :  { %2768 = vrot.lane.b32.xlu0 %v8009_v36, %s7653_s25 }
 0x766   :  { %2770 = vrot.lane.b32.xlu1 %v8013_v40, %s7653_s25 }
 0x769   :  { %2772 = vrot.lane.b32.xlu0 %v8005_v39, %s7653_s25 }
 0x76a   :  { %2774 = vrot.lane.b32.xlu1 %v7999_v35, %s7653_s25 }
 0x76d   :  { %2776 = vrot.lane.b32.xlu0 %v7991_v56, %s7653_s25 }
 0x76e   :  { %3135 = vrot.lane.b32.xlu1 %v7967_v0, %s7654_s26 }
 0x771   :  { %3137 = vrot.lane.b32.xlu0 %v7965_v12, %s7654_s26 }
 0x772   :  { %3131 = vrot.lane.b32.xlu1 %v7971_v3, %s7654_s26 }
 0x775   :  { %3133 = vrot.lane.b32.xlu0 %v7975_v6, %s7654_s26 }
 0x776   :  { %3127 = vrot.lane.b32.xlu1 %v7989_v26, %s7654_s26 }
 0x779   :  { %3129 = vrot.lane.b32.xlu0 %v7985_v21, %s7654_s26 }
 0x790   :  { %v1842_v22 = vpop.xlane.xlu0 %1841 }
 0x792   :  { %v1839_v5 = vpop.xlane.xlu1 %1838 }
 0x793   :  { %7400 = vrcp.f32 %v1839_v5  ;;  %v10476_v5 = vld [vmem:[#allocation20_spill] sm:$0xff] }
 0x794   :  { %v1848_v57 = vpop.xlane.xlu0 %1847  ;;  %7402 = vrcp.f32 %v1842_v22  ;;  %v10474_v22 = vld [vmem:[#allocation19_spill] sm:$0xff] }
 0x795   :  { %7404 = vrcp.f32 %v1848_v57 }
 0x796   :  { %v1845_v63 = vpop.xlane.xlu1 %1844 }
 0x797   :  { %7406 = vrcp.f32 %v1845_v63 }
 0x798   :  { %v1854_v50 = vpop.xlane.xlu0 %1853 }
 0x799   :  { %7408 = vrcp.f32 %v1854_v50 }
 0x79a   :  { %v1851_v46 = vpop.xlane.xlu1 %1850 }
 0x79b   :  { %7410 = vrcp.f32 %v1851_v46 }
 0x79c   :  { %v1860_v51 = vpop.xlane.xlu0 %1859 }
 0x79d   :  { %7412 = vrcp.f32 %v1860_v51 }
 0x79e   :  { %v1857_v33 = vpop.xlane.xlu1 %1856 }
 0x79f   :  { %7414 = vrcp.f32 %v1857_v33 }
 0x7a0   :  { %v7401_v24 = vpop.eup %7400  ;;  %v2047_v11 = vpop.permute.xlu0 %2046 }
 0x7a1   :  { %v1885_v48 = vmul.f32 %v7401_v24, %v8687_v10  ;;  %v7403_v23 = vpop.eup %7402 }
 0x7a2   :  { %v2049_v27 = vpop.permute.xlu1 %2048  ;;  %v7405_v7 = vpop.eup %7404  ;;  %v1886_v14 = vmul.f32 %v7403_v23, %v8679_v15 }
 0x7a3   :  { %6794 = vmatprep.subr.mxu0 %v2049_v27  ;;  %7232 = vmatprep.subr.mxu1 %v2049_v27  ;;  %v1888_v16 = vmul.f32 %v7405_v7, %v8692_v25 }
 0x7a4   :  { %v7407_v20 = vpop.eup %7406  ;;  %6798 = vmatprep.mubr.msk.f32.mxu0 %vm880_vm2, %v1885_v48  ;;  %6795 = vmatpush3.msra.mxu0 %v2049_v27  ;;  %v8833_v28 = vpop.permute.xlu0 %2623 }
 0x7a5   :  { %7240 = vmatpush3.msra.mxu1 %v2049_v27  ;;  %6796 = vmatprep.subr.mxu0 %v2047_v11  ;;  %v1887_v52 = vmul.f32 %v7407_v20, %v8696_v4 }
 0x7a6   :  { %7233 = vmatprep.subr.mxu1 %v2047_v11  ;;  %v2201_v55 = vpop.permute.xlu1 %2200  ;;  %6797 = vmatpush3.msra.mxu0 %v2047_v11  ;;  %v7409_v10 = vpop.eup %7408 }
 0x7a7   :  { %7241 = vmatpush3.msra.mxu1 %v2047_v11  ;;  %6799 = vmatmul.mubr.msk.f32.vlgmr.msra.gmra.mxu0 %vm880_vm2, %v1886_v14  ;;  %v1890_v49 = vmul.f32 %v7409_v10, %v8700_v59 }
 0x7a8   :  { %v7411_v41 = vpop.eup %7410  ;;  %6801 = vmatprep.mubr.msk.f32.mxu1 %vm880_vm2, %v1887_v52  ;;  %6810 = vmatprep.subr.mxu1 %v2201_v55  ;;  %v8840_v2 = vpop.permute.xlu0 %2619 }
 0x7a9   :  { %6802 = vmatmul.mubr.msk.f32.vlgmr.msra.gmra.mxu1 %vm880_vm2, %v1888_v16  ;;  %6838 = vmatprep.mubr.msk.f32.mxu0 %vm565_vm1, %v8530_v43  ;;  %v1889_v15 = vmul.f32 %v7411_v41, %v8704_v62 }
 0x7aa   :  { %6811 = vmatpush3.msra.mxu1 %v2201_v55  ;;  %v8846_v4 = vpop.permute.xlu1 %2621  ;;  %v7413_v25 = vpop.eup %7412 }
 0x7ab   :  { %6862 = vmatprep.subr.msk.mxu1 %vm565_vm1, %v8833_v28  ;;  %6804 = vmatprep.mubr.msk.f32.mxu1 %vm880_vm2, %v1889_v15  ;;  %v1892_v62 = vmul.f32 %v7413_v25, %v8708_v47 }
 0x7ac   :  { %v7415_v18 = vpop.eup %7414  ;;  %v2398_v54 = vpop.permute.xlu0 %2397 }
 0x7ad   :  { %6805 = vmatmul.mubr.msk.f32.gmra.mxu1 %vm880_vm2, %v1890_v49  ;;  %6836 = vmatprep.subr.mxu0 %v2398_v54  ;;  %v1891_v43 = vmul.f32 %v7415_v18, %v8712_v13 }
 0x7ae   :  { %v8854_v58 = vpop.permute.xlu1 %2617  ;;  %6837 = vmatpush3.msra.mxu0 %v2398_v54 }
 0x7af   :  { %6807 = vmatprep.mubr.msk.f32.mxu1 %vm880_vm2, %v1891_v43  ;;  %6839 = vmatmul.mubr.msk.f32.vlgmr.msra.gmra.mxu0 %vm565_vm1, %v8528_v32 }
 0x7b0   :  { %6841 = vmatprep.mubr.msk.f32.mxu0 %vm565_vm1, %v8534_v53  ;;  %v2793_v59 = vpop.permute.xlu0 %2792 }
 0x7b1   :  { %6808 = vmatmul.mubr.msk.f32.gmra.mxu1 %vm880_vm2, %v1892_v62  ;;  %6890 = vmatprep.subr.msk.mxu0 %vm565_vm1, %v2793_v59 }
 0x7b2   :  { %v8864_v31 = vpop.permute.xlu1 %2615  ;;  %6891 = vmatpush3.xpose.msk.msra.mxu0 %vm565_vm1, %v2793_v59 }
 0x7b3   :  { %6842 = vmatmul.mubr.msk.f32.gmra.mxu0 %vm565_vm1, %v8532_v44 }
 0x7b4   :  { %6844 = vmatprep.mubr.msk.f32.mxu0 %vm565_vm1, %v8538_v61  ;;  %v2791_v32 = vpop.permute.xlu0 %2790 }
 0x7b5   :  { %6892 = vmatprep.subr.msk.mxu0 %vm565_vm1, %v2791_v32 }
 0x7b6   :  { %v8872_v47 = vpop.permute.xlu1 %2613  ;;  %6893 = vmatpush3.xpose.msk.msra.mxu0 %vm565_vm1, %v2791_v32 }
 0x7b7   :  { %6845 = vmatmul.mubr.msk.f32.gmra.mxu0 %vm565_vm1, %v8536_v29 }
 0x7b8   :  { %6847 = vmatprep.mubr.msk.f32.mxu0 %vm565_vm1, %v8542_v45  ;;  %v2789_v53 = vpop.permute.xlu0 %2788 }
 0x7b9   :  { %6894 = vmatprep.subr.msk.mxu0 %vm565_vm1, %v2789_v53 }
 0x7ba   :  { %v8880_v44 = vpop.permute.xlu1 %2611  ;;  %6895 = vmatpush3.xpose.msk.msra.mxu0 %vm565_vm1, %v2789_v53 }
 0x7bb   :  { %6848 = vmatmul.mubr.msk.f32.gmra.mxu0 %vm565_vm1, %v8540_v38 }
 0x7bc   :  { %6850 = vmatprep.mubr.msk.f32.mxu0 %vm565_vm1, %v8578_v1  ;;  %v2787_v61 = vpop.permute.xlu0 %2786 }
 0x7bd   :  { %6896 = vmatprep.subr.msk.mxu0 %vm565_vm1, %v2787_v61 }
 0x7be   :  { %v8888_v29 = vpop.permute.xlu1 %2609  ;;  %6897 = vmatpush3.xpose.msk.msra.mxu0 %vm565_vm1, %v2787_v61 }
 0x7bf   :  { %6851 = vmatmul.mubr.msk.f32.gmra.mxu0 %vm565_vm1, %v8576_v8  ;;  %v10475_v8 = vld [vmem:[#allocation21_spill] sm:$0xff] }
 0x7c0   :  { %6853 = vmatprep.mubr.msk.f32.mxu0 %vm565_vm1, %v8582_v17  ;;  %v8895_v45 = vpop.permute.xlu0 %2595 }
 0x7c2   :  { %v8897_v13 = vpop.permute.xlu1 %2593 }
 0x7c3   :  { %6854 = vmatmul.mubr.msk.f32.gmra.mxu0 %vm565_vm1, %v8580_v60 }
 0x7c4   :  { %6856 = vmatprep.mubr.msk.f32.mxu0 %vm565_vm1, %v8586_v19  ;;  %v8903_v38 = vpop.permute.xlu0 %2597 }
 0x7c6   :  { %v2785_v1 = vpop.permute.xlu1 %2784 }
 0x7c7   :  { %6857 = vmatmul.mubr.msk.f32.gmra.mxu0 %vm565_vm1, %v10474_v22  ;;  %6898 = vmatprep.subr.msk.mxu0 %vm565_vm1, %v2785_v1 }
 0x7c8   :  { %6859 = vmatprep.mubr.msk.f32.mxu0 %vm565_vm1, %v10475_v8  ;;  %6899 = vmatpush3.xpose.msk.msra.mxu0 %vm565_vm1, %v2785_v1  ;;  %v2783_v17 = vpop.permute.xlu0 %2782 }
 0x7c9   :  { %6900 = vmatprep.subr.msk.mxu0 %vm565_vm1, %v2783_v17 }
 0x7ca   :  { %v8912_v60 = vpop.permute.xlu1 %2599 }
 0x7cb   :  { %6860 = vmatmul.mubr.msk.f32.gmra.mxu0 %vm565_vm1, %v10476_v5 }
 0x7cc   :  { %6901 = vmatpush3.xpose.msk.msra.mxu0 %vm565_vm1, %v2783_v17  ;;  %v8917_v19 = vpop.permute.xlu0 %2603 }
 0x7ce   :  { %v8919_v57 = vpop.permute.xlu1 %2601 }
 0x7d0   :  { %v8921_v63 = vpop.permute.xlu0 %2605 }
 0x7d2   :  { %v2781_v50 = vpop.permute.xlu1 %2780 }
 0x7d3   :  { %6902 = vmatprep.subr.msk.mxu0 %vm565_vm1, %v2781_v50 }
 0x7d4   :  { %6903 = vmatpush3.xpose.msk.msra.mxu0 %vm565_vm1, %v2781_v50  ;;  %v2779_v46 = vpop.permute.xlu0 %2778 }
 0x7d5   :  { %6904 = vmatprep.subr.msk.mxu0 %vm565_vm1, %v2779_v46 }
 0x7d6   :  { %v8926_v51 = vpop.permute.xlu1 %2607 }
 0x7d8   :  { %6905 = vmatpush3.xpose.msk.msra.mxu0 %vm565_vm1, %v2779_v46  ;;  %v2765_v33 = vpop.permute.xlu0 %2764 }
 0x7da   :  { %v2763_v24 = vpop.permute.xlu1 %2762 }
 0x7db   :  { %6906 = vmatprep.mubr.msk.f32.mxu0 %vm565_vm1, %v2763_v24 }
 0x7dc   :  { %6907 = vmatmul.mubr.msk.f32.vlgmr.msra.gmra.mxu0 %vm565_vm1, %v2765_v33  ;;  %v2769_v11 = vpop.permute.xlu0 %2768 }
 0x7de   :  { %v2767_v48 = vpop.permute.xlu1 %2766 }
 0x7df   :  { %6909 = vmatprep.mubr.msk.f32.mxu0 %vm565_vm1, %v2767_v48 }
 0x7e0   :  { %6910 = vmatmul.mubr.msk.f32.gmra.mxu0 %vm565_vm1, %v2769_v11  ;;  %v2773_v23 = vpop.permute.xlu0 %2772 }
 0x7e2   :  { %v2771_v27 = vpop.permute.xlu1 %2770 }
 0x7e3   :  { %6912 = vmatprep.mubr.msk.f32.mxu0 %vm565_vm1, %v2771_v27 }
 0x7e4   :  { %6913 = vmatmul.mubr.msk.f32.gmra.mxu0 %vm565_vm1, %v2773_v23  ;;  %v2777_v20 = vpop.permute.xlu0 %2776 }
 0x7e6   :  { %v2775_v7 = vpop.permute.xlu1 %2774 }
 0x7e7   :  { %6915 = vmatprep.mubr.msk.f32.mxu0 %vm565_vm1, %v2775_v7 }
 0x7e8   :  { %6916 = vmatmul.mubr.msk.f32.gmra.mxu0 %vm565_vm1, %v2777_v20 }
 0x808   :  { %v6772_v14 = vpop.f32.mrf.mxu1 }
 0x80a   :  { %v2007_v52 = vpop.f32.mrf.mxu1 }
 0x80b   :  { %6812 = vmatprep.mubr.msk.f32.mxu1 %vm565_vm1, %v2007_v52 }
 0x80c   :  { %v6775_v55 = vpop.f32.mrf.mxu1  ;;  %6813 = vmatmul.mubr.msk.f32.vlgmr.msra.gmra.mxu1 %vm565_vm1, %v6772_v14 }
 0x80d   :  { %6863 = vmatpush3.xpose.msk.msra.mxu1 %vm565_vm1, %v8833_v28 }
 0x80e   :  { %6864 = vmatprep.subr.msk.mxu1 %vm565_vm1, %v8846_v4  ;;  %v2017_v10 = vpop.f32.mrf.mxu1 }
 0x80f   :  { %6815 = vmatprep.mubr.msk.f32.mxu1 %vm565_vm1, %v2017_v10 }
 0x810   :  { %v6778_v16 = vpop.f32.mrf.mxu1  ;;  %6816 = vmatmul.mubr.msk.f32.gmra.mxu1 %vm565_vm1, %v6775_v55 }
 0x811   :  { %6865 = vmatpush3.xpose.msk.msra.mxu1 %vm565_vm1, %v8846_v4 }
 0x812   :  { %6866 = vmatprep.subr.msk.mxu1 %vm565_vm1, %v8840_v2  ;;  %v2027_v41 = vpop.f32.mrf.mxu1 }
 0x813   :  { %6818 = vmatprep.mubr.msk.f32.mxu1 %vm565_vm1, %v2027_v41 }
 0x814   :  { %v6781_v15 = vpop.f32.mrf.mxu1  ;;  %6819 = vmatmul.mubr.msk.f32.gmra.mxu1 %vm565_vm1, %v6778_v16 }
 0x815   :  { %6867 = vmatpush3.xpose.msk.msra.mxu1 %vm565_vm1, %v8840_v2  ;;  %v3138_v2 = vpop.permute.xlu0 %3137 }
 0x816   :  { %6868 = vmatprep.subr.msk.mxu1 %vm565_vm1, %v8854_v58  ;;  %v2037_v28 = vpop.f32.mrf.mxu1 }
 0x817   :  { %6821 = vmatprep.mubr.msk.f32.mxu1 %vm565_vm1, %v2037_v28 }
 0x818   :  { %6822 = vmatmul.mubr.msk.f32.gmra.mxu1 %vm565_vm1, %v6781_v15 }
 0x819   :  { %6869 = vmatpush3.xpose.msk.msra.mxu1 %vm565_vm1, %v8854_v58  ;;  %v3134_v1 = vpop.permute.xlu0 %3133 }
 0x81a   :  { %6870 = vmatprep.subr.msk.mxu1 %vm565_vm1, %v8864_v31 }
 0x81d   :  { %6871 = vmatpush3.xpose.msk.msra.mxu1 %vm565_vm1, %v8864_v31 }
 0x81e   :  { %6872 = vmatprep.subr.msk.mxu1 %vm565_vm1, %v8872_v47 }
 0x821   :  { %6873 = vmatpush3.xpose.msk.msra.mxu1 %vm565_vm1, %v8872_v47 }
 0x822   :  { %6874 = vmatprep.subr.msk.mxu1 %vm565_vm1, %v8880_v44 }
 0x825   :  { %6875 = vmatpush3.xpose.msk.msra.mxu1 %vm565_vm1, %v8880_v44  ;;  %v3136_v44 = vpop.permute.xlu1 %3135 }
 0x826   :  { %6876 = vmatprep.subr.msk.mxu1 %vm565_vm1, %v8888_v29 }
 0x829   :  { %6877 = vmatpush3.xpose.msk.msra.mxu1 %vm565_vm1, %v8888_v29  ;;  %v3132_v8 = vpop.permute.xlu1 %3131 }
 0x82a   :  { %6918 = vmatprep.subr.mxu1 %v3138_v2 }
 0x867   :  { %v6800_v4 = vpop.f32.mrf.mxu0 }
 0x869   :  { %v6803_v25 = vpop.f32.mrf.mxu1  ;;  %v2160_v49 = vpop.f32.mrf.mxu0 }
 0x86a   :  { %6824 = vmatprep.mubr.msk.f32.mxu1 %vm565_vm1, %v2160_v49 }
 0x86b   :  { %v2170_v18 = vpop.f32.mrf.mxu1  ;;  %6825 = vmatmul.mubr.msk.f32.gmra.mxu1 %vm565_vm1, %v6800_v4 }
 0x86c   :  { %6827 = vmatprep.mubr.msk.f32.mxu1 %vm565_vm1, %v2170_v18 }
 0x86d   :  { %v6806_v54 = vpop.f32.mrf.mxu1 }
 0x86f   :  { %v2180_v43 = vpop.f32.mrf.mxu1  ;;  %6828 = vmatmul.mubr.msk.f32.gmra.mxu1 %vm565_vm1, %v6803_v25  ;;  %v8979_v58 = vpop.f32.mrf.mxu0 }
 0x870   :  { %6830 = vmatprep.mubr.msk.f32.mxu1 %vm565_vm1, %v2180_v43 }
 0x871   :  { %v6809_v62 = vpop.f32.mrf.mxu1  ;;  %v8982_v59 = vpop.f32.mrf.mxu0 }
 0x873   :  { %v2190_v31 = vpop.f32.mrf.mxu1  ;;  %6831 = vmatmul.mubr.msk.f32.gmra.mxu1 %vm565_vm1, %v6806_v54  ;;  %v8985_v32 = vpop.f32.mrf.mxu0 }
 0x874   :  { %6833 = vmatprep.mubr.msk.f32.mxu1 %vm565_vm1, %v2190_v31 }
 0x875   :  { %v8988_v47 = vpop.f32.mrf.mxu0 }
 0x877   :  { %6834 = vmatmul.mubr.msk.f32.gmra.mxu1 %vm565_vm1, %v6809_v62  ;;  %v8991_v53 = vpop.f32.mrf.mxu0 }
 0x878   :  { %6878 = vmatprep.mubr.msk.f32.mxu1 %vm565_vm1, %v8897_v13 }
 0x879   :  { %v8995_v61 = vpop.f32.mrf.mxu0 }
 0x87b   :  { %v8997_v29 = vpop.f32.mrf.mxu0  ;;  %6879 = vmatmul.mubr.msk.f32.vlgmr.msra.gmra.mxu1 %vm565_vm1, %v8895_v45  ;;  %v3130_v45 = vpop.permute.xlu0 %3129 }
 0x87c   :  { %6919 = vmatpush3.msra.mxu1 %v3138_v2  ;;  %6881 = vmatprep.mubr.msk.f32.mxu1 %vm565_vm1, %v8903_v38  ;;  %v3128_v38 = vpop.permute.xlu1 %3127 }
 0x87d   :  { %6920 = vmatprep.subr.mxu1 %v3136_v44  ;;  %v9003_v22 = vpop.f32.mrf.mxu0 }
 0x87e   :  { %10477 = vst [vmem:[#allocation19_spill] sm:$0xff] %v9003_v22  ;;  %6921 = vmatpush3.msra.mxu1 %v3136_v44 }
 0x87f   :  { %6922 = vmatprep.subr.mxu1 %v3134_v1  ;;  %v9005_v17 = vpop.f32.mrf.mxu0  ;;  %6882 = vmatmul.mubr.msk.f32.gmra.mxu1 %vm565_vm1, %v8912_v60 }
 0x880   :  { %10478 = vst [vmem:[#allocation21_spill] sm:$0xff] %v9005_v17  ;;  %6923 = vmatpush3.msra.mxu1 %v3134_v1  ;;  %6884 = vmatprep.mubr.msk.f32.mxu1 %vm565_vm1, %v8919_v57 }
 0x881   :  { %6924 = vmatprep.subr.mxu1 %v3132_v8  ;;  %v9011_v13 = vpop.f32.mrf.mxu0 }
 0x882   :  { %10479 = vst [vmem:[#allocation20_spill] sm:$0xff] %v9011_v13  ;;  %6925 = vmatpush3.msra.mxu1 %v3132_v8 }
 0x883   :  { %6926 = vmatprep.subr.mxu1 %v3130_v45  ;;  %6885 = vmatmul.mubr.msk.f32.gmra.mxu1 %vm565_vm1, %v8917_v19  ;;  %v9017_v60 = vpop.f32.mrf.mxu0 }
 0x884   :  { %6927 = vmatpush3.msra.mxu1 %v3130_v45  ;;  %6887 = vmatprep.mubr.msk.f32.mxu1 %vm565_vm1, %v8921_v63  ;;  %10480 = vst [vmem:[#allocation22_spill] sm:$0xff] %v9017_v60 }
 0x885   :  { %6928 = vmatprep.subr.mxu1 %v3128_v38  ;;  %v9021_v5 = vpop.f32.mrf.mxu0 }
 0x886   :  { %6929 = vmatpush3.msra.mxu1 %v3128_v38  ;;  %10481 = vst [vmem:[#allocation23_spill] sm:$0xff] %v9021_v5 }
 0x887   :  { %6888 = vmatmul.mubr.msk.f32.gmra.mxu1 %vm565_vm1, %v8926_v51  ;;  %v9023_v57 = vpop.f32.mrf.mxu0 }
 0x888   :  { %10482 = vst [vmem:[#allocation24_spill] sm:$0xff] %v9023_v57 }
 0x889   :  { %v9025_v50 = vpop.f32.mrf.mxu0 }
 0x88a   :  { %10483 = vst [vmem:[#allocation25_spill] sm:$0xff] %v9025_v50 }
 0x88b   :  { %v9027_v46 = vpop.f32.mrf.mxu0 }
 0x88c   :  { %10484 = vst [vmem:[#allocation26_spill] sm:$0xff] %v9027_v46 }
 0x88d   :  { %v9029_v19 = vpop.f32.mrf.mxu0 }
 0x88e   :  { %10485 = vst [vmem:[#allocation27_spill] sm:$0xff] %v9029_v19 }
 0x89c   :  { %v6908_v33 = vpop.f32.mrf.mxu0 }
 0x89d   :  { %v2940_v24 = vmul.f32 0.17677669, %v6908_v33 }
 0x89e   :  { %v2892_v63 = vpop.f32.mrf.mxu0 }
 0x89f   :  { %v2939_v11 = vmul.f32 0.17677669, %v2892_v63  ;;  %v2974_v48 = vsel %vm880_vm2, %v2940_v24, -inf }
 0x8a0   :  { %2975 = vmax.xlane.f32.xlu1 %v2974_v48  ;;  %v6911_v23 = vpop.f32.mrf.mxu0 }
 0x8a1   :  { %v2942_v27 = vmul.f32 0.17677669, %v6911_v23  ;;  %v2971_v51 = vsel %vm880_vm2, %v2939_v11, -inf }
 0x8a2   :  { %2972 = vmax.xlane.f32.xlu0 %v2971_v51  ;;  %v2902_v7 = vpop.f32.mrf.mxu0 }
 0x8a3   :  { %v2941_v20 = vmul.f32 0.17677669, %v2902_v7  ;;  %v2980_v14 = vsel %vm880_vm2, %v2942_v27, -inf }
 0x8a4   :  { %2981 = vmax.xlane.f32.xlu1 %v2980_v14  ;;  %v6914_v52 = vpop.f32.mrf.mxu0 }
 0x8a5   :  { %v2944_v55 = vmul.f32 0.17677669, %v6914_v52  ;;  %v2977_v10 = vsel %vm880_vm2, %v2941_v20, -inf }
 0x8a6   :  { %2978 = vmax.xlane.f32.xlu0 %v2977_v10  ;;  %v2912_v16 = vpop.f32.mrf.mxu0 }
 0x8a7   :  { %v2943_v41 = vmul.f32 0.17677669, %v2912_v16  ;;  %v2986_v15 = vsel %vm880_vm2, %v2944_v55, -inf }
 0x8a8   :  { %2987 = vmax.xlane.f32.xlu1 %v2986_v15  ;;  %v6917_v28 = vpop.f32.mrf.mxu0 }
 0x8a9   :  { %v9036_v2 = vmul.f32 0.17677669, %v6917_v28  ;;  %v2983_v4 = vsel %vm880_vm2, %v2943_v41, -inf }
 0x8aa   :  { %2984 = vmax.xlane.f32.xlu0 %v2983_v4  ;;  %v2922_v25 = vpop.f32.mrf.mxu0 }
 0x8ab   :  { %v9039_v49 = vmul.f32 0.17677669, %v2922_v25  ;;  %v2992_v18 = vsel %vm880_vm2, %v9036_v2, -inf }
 0x8ac   :  { %2993 = vmax.xlane.f32.xlu1 %v2992_v18 }
 0x8ad   :  { %v2989_v54 = vsel %vm880_vm2, %v9039_v49, -inf }
 0x8ae   :  { %2990 = vmax.xlane.f32.xlu0 %v2989_v54 }
 0x8cc   :  { %v9045_v43 = vpop.f32.mrf.mxu1 }
 0x8ce   :  { %v9047_v62 = vpop.f32.mrf.mxu1 }
 0x8d0   :  { %v9049_v31 = vpop.f32.mrf.mxu1 }
 0x8d2   :  { %v9051_v44 = vpop.f32.mrf.mxu1 }
 0x8d4   :  { %v9053_v1 = vpop.f32.mrf.mxu1 }
 0x8d6   :  { %v9055_v8 = vpop.f32.mrf.mxu1 }
 0x8d8   :  { %v9057_v45 = vpop.f32.mrf.mxu1 }
 0x8da   :  { %v9059_v38 = vpop.f32.mrf.mxu1 }
 0x8db   :  { %10486 = vst [vmem:[#allocation28_spill] sm:$0xff] %v9059_v38 }
 0x929   :  { %v2976_v33 = vpop.xlane.xlu1 %2975 }
 0x92a   :  { %v3004_v63 = vsub.f32 %v2940_v24, %v2976_v33 }
 0x92b   :  { %v9061_v48 = vpop.f32.mrf.mxu1  ;;  %v2973_v23 = vpop.xlane.xlu0 %2972 }
 0x92c   :  { %10487 = vst [vmem:[#allocation29_spill] sm:$0xff] %v9061_v48  ;;  %v3029_v51 = vmul.f32 1.442695, %v3004_v63  ;;  %v3003_v7 = vsub.f32 %v2939_v11, %v2973_v23 }
 0x92d   :  { %v9063_v14 = vpop.f32.mrf.mxu1  ;;  %v2982_v52 = vpop.xlane.xlu1 %2981 }
 0x92e   :  { %10488 = vst [vmem:[#allocation30_spill] sm:$0xff] %v9063_v14  ;;  %7416 = vpow2.f32 %v3029_v51  ;;  %v3027_v10 = vmul.f32 1.442695, %v3003_v7  ;;  %v3006_v16 = vsub.f32 %v2942_v27, %v2982_v52 }
 0x92f   :  { %v9065_v15 = vpop.f32.mrf.mxu1  ;;  %v2979_v28 = vpop.xlane.xlu0 %2978 }
 0x930   :  { %10489 = vst [vmem:[#allocation31_spill] sm:$0xff] %v9065_v15  ;;  %7418 = vpow2.f32 %v3027_v10  ;;  %v3033_v4 = vmul.f32 1.442695, %v3006_v16  ;;  %v3005_v25 = vsub.f32 %v2941_v20, %v2979_v28 }
 0x931   :  { %v9067_v18 = vpop.f32.mrf.mxu1  ;;  %v2988_v24 = vpop.xlane.xlu1 %2987 }
 0x932   :  { %10490 = vst [vmem:[#allocation32_spill] sm:$0xff] %v9067_v18  ;;  %7420 = vpow2.f32 %v3033_v4  ;;  %v3031_v54 = vmul.f32 1.442695, %v3005_v25  ;;  %v3008_v33 = vsub.f32 %v2944_v55, %v2988_v24 }
 0x933   :  { %v9069_v63 = vpop.f32.mrf.mxu1  ;;  %v2985_v11 = vpop.xlane.xlu0 %2984 }
 0x934   :  { %10491 = vst [vmem:[#allocation33_spill] sm:$0xff] %v9069_v63  ;;  %7422 = vpow2.f32 %v3031_v54  ;;  %v3037_v23 = vmul.f32 1.442695, %v3008_v33  ;;  %v3007_v51 = vsub.f32 %v2943_v41, %v2985_v11 }
 0x935   :  { %v9071_v7 = vpop.f32.mrf.mxu1 }
 0x936   :  { %10492 = vst [vmem:[#allocation34_spill] sm:$0xff] %v9071_v7  ;;  %7424 = vpow2.f32 %v3037_v23  ;;  %v3035_v27 = vmul.f32 1.442695, %v3007_v51 }
 0x937   :  { %v9073_v52 = vpop.f32.mrf.mxu1 }
 0x938   :  { %10493 = vst [vmem:[#allocation35_spill] sm:$0xff] %v9073_v52  ;;  %7426 = vpow2.f32 %v3035_v27 }
 0x939   :  { %v9075_v20 = vpop.f32.mrf.mxu1 }
 0x93a   :  { %10494 = vst [vmem:[#allocation36_spill] sm:$0xff] %v9075_v20 }
 0x93b   :  { %v9077_v10 = vpop.eup %7416  ;;  %v6880_v16 = vpop.f32.mrf.mxu1 }
 0x93c   :  { %v3070_v55 = vsel %vm880_vm2, %v9077_v10, 0.0 }
 0x93d   :  { %v9081_v28 = vpop.eup %7418  ;;  %v2723_v4 = vpop.f32.mrf.mxu1  ;;  %3071 = vadd.xlane.f32.xlu0 %v3070_v55  ;;  %v9095_v55 = vmul.f32 0.17677669, %v6880_v16 }
 0x93e   :  { %v3067_v41 = vsel %vm880_vm2, %v9081_v28, 0.0  ;;  %v9101_v19 = vmul.f32 0.17677669, %v2723_v4 }
 0x93f   :  { %v9085_v25 = vpop.eup %7420  ;;  %v6883_v24 = vpop.f32.mrf.mxu1  ;;  %3068 = vadd.xlane.f32.xlu1 %v3067_v41 }
 0x940   :  { %v3076_v54 = vsel %vm880_vm2, %v9085_v25, 0.0  ;;  %v9109_v46 = vmul.f32 0.17677669, %v6883_v24  ;;  %v2947_v52 = vsel %vm880_vm2, %v9101_v19, -inf }
 0x941   :  { %v9089_v33 = vpop.eup %7422  ;;  %v2733_v11 = vpop.f32.mrf.mxu1  ;;  %3077 = vadd.xlane.f32.xlu0 %v3076_v54 }
 0x942   :  { %v3073_v23 = vsel %vm880_vm2, %v9089_v33, 0.0  ;;  %v9105_v20 = vmul.f32 0.17677669, %v2733_v11 }
 0x943   :  { %v9093_v51 = vpop.eup %7424  ;;  %v6886_v27 = vpop.f32.mrf.mxu1  ;;  %3074 = vadd.xlane.f32.xlu1 %v3073_v23  ;;  %v2950_v23 = vsel %vm880_vm2, %v9095_v55, -inf }
 0x944   :  { %v3082_v22 = vsel %vm880_vm2, %v9093_v51, 0.0  ;;  %v2953_v4 = vsel %vm880_vm2, %v9105_v20, -inf  ;;  %v9117_v11 = vmul.f32 0.17677669, %v6886_v27 }
 0x945   :  { %v9099_v41 = vpop.eup %7426  ;;  %v2743_v38 = vpop.f32.mrf.mxu1  ;;  %3083 = vadd.xlane.f32.xlu0 %v3082_v22 }
 0x946   :  { %v3079_v54 = vsel %vm880_vm2, %v9099_v41, 0.0  ;;  %v9113_v22 = vmul.f32 0.17677669, %v2743_v38  ;;  %v2962_v38 = vsel %vm880_vm2, %v9117_v11, -inf }
 0x947   :  { %3080 = vadd.xlane.f32.xlu1 %v3079_v54  ;;  %v6889_v16 = vpop.f32.mrf.mxu1  ;;  %v2956_v54 = vsel %vm880_vm2, %v9109_v46, -inf }
 0x948   :  { %v2959_v24 = vsel %vm880_vm2, %v9113_v22, -inf }
 0x949   :  { %2951 = vmax.xlane.f32.xlu0 %v2950_v23  ;;  %v2753_v50 = vpop.f32.mrf.mxu1 }
 0x94a   :  { %v9121_v23 = vmul.f32 0.17677669, %v2753_v50  ;;  %v2994_v50 = vpop.xlane.xlu1 %2993 }
 0x94b   :  { %2948 = vmax.xlane.f32.xlu1 %v2947_v52  ;;  %v9125_v52 = vmul.f32 0.17677669, %v6889_v16  ;;  %v2991_v16 = vpop.xlane.xlu0 %2990 }
 0x94c   :  { %v2965_v27 = vsel %vm880_vm2, %v9121_v23, -inf }
 0x94d   :  { %2954 = vmax.xlane.f32.xlu0 %v2953_v4  ;;  %v2968_v4 = vsel %vm880_vm2, %v9125_v52, -inf }
 0x94f   :  { %2957 = vmax.xlane.f32.xlu1 %v2956_v54  ;;  %v3010_v54 = vsub.f32 %v9036_v2, %v2994_v50 }
 0x951   :  { %2960 = vmax.xlane.f32.xlu0 %v2959_v24  ;;  %v3009_v24 = vsub.f32 %v9039_v49, %v2991_v16 }
 0x953   :  { %2963 = vmax.xlane.f32.xlu1 %v2962_v38  ;;  %v3041_v38 = vmul.f32 1.442695, %v3010_v54  ;;  %v3039_v7 = vmul.f32 1.442695, %v3009_v24 }
 0x955   :  { %2966 = vmax.xlane.f32.xlu0 %v2965_v27  ;;  %7428 = vpow2.f32 %v3041_v38 }
 0x956   :  { %7430 = vpow2.f32 %v3039_v7 }
 0x957   :  { %2969 = vmax.xlane.f32.xlu1 %v2968_v4 }
 0x962   :  { %v9139_v27 = vpop.eup %7428 }
 0x963   :  { %v9141_v57 = vpop.eup %7430  ;;  %v3088_v4 = vsel %vm880_vm2, %v9139_v27, 0.0 }
 0x964   :  { %v3085_v63 = vsel %vm880_vm2, %v9141_v57, 0.0 }
 0x968   :  { %3123 = vrot.lane.b32.xlu1 %v7961_v30, %s7654_s26 }
 0x96b   :  { %3125 = vrot.lane.b32.xlu0 %v7995_v34, %s7654_s26 }
 0x98a   :  { %3089 = vadd.xlane.f32.xlu0 %v3088_v4 }
 0x98c   :  { %3086 = vadd.xlane.f32.xlu1 %v3085_v63 }
 0x99d   :  { %3288 = vrot.lane.b32.xlu1 %v7999_v35, %s7654_s26 }
 0x9a0   :  { %3290 = vrot.lane.b32.xlu0 %v7991_v56, %s7654_s26 }
 0x9a1   :  { %3286 = vrot.lane.b32.xlu1 %v8005_v39, %s7654_s26 }
 0x9a4   :  { %3284 = vrot.lane.b32.xlu0 %v8013_v40, %s7654_s26 }
 0x9a5   :  { %3282 = vrot.lane.b32.xlu1 %v8009_v36, %s7654_s26 }
 0x9a8   :  { %3280 = vrot.lane.b32.xlu0 %v8021_v37, %s7654_s26 }
 0x9c6   :  { %v9159_v2 = vpop.xlane.xlu0 %3071 }
 0x9c8   :  { %v3069_v49 = vpop.xlane.xlu1 %3068 }
 0x9c9   :  { %7432 = vrcp.f32 %v3069_v49 }
 0x9ca   :  { %v9161_v63 = vpop.xlane.xlu0 %3077 }
 0x9cc   :  { %v9163_v7 = vpop.xlane.xlu1 %3074 }
 0x9ce   :  { %v9165_v50 = vpop.xlane.xlu0 %3083 }
 0x9d0   :  { %v9167_v16 = vpop.xlane.xlu1 %3080 }
 0x9d2   :  { %v2952_v54 = vpop.xlane.xlu0 %2951 }
 0x9d3   :  { %v2996_v24 = vsub.f32 %v9095_v55, %v2952_v54 }
 0x9d4   :  { %v2949_v38 = vpop.xlane.xlu1 %2948 }
 0x9d5   :  { %v3013_v4 = vmul.f32 1.442695, %v2996_v24  ;;  %v2995_v5 = vsub.f32 %v9101_v19, %v2949_v38 }
 0x9d6   :  { %v7433_v18 = vpop.eup %7432  ;;  %v2955_v60 = vpop.xlane.xlu0 %2954 }
 0x9d7   :  { %7434 = vpow2.f32 %v3013_v4  ;;  %v3011_v15 = vmul.f32 1.442695, %v2995_v5  ;;  %v2997_v49 = vsub.f32 %v9105_v20, %v2955_v60  ;;  %v3115_v13 = vmul.f32 %v7433_v18, %v9081_v28 }
 0x9d8   :  { %v2958_v14 = vpop.xlane.xlu1 %2957 }
 0x9d9   :  { %7436 = vpow2.f32 %v3011_v15  ;;  %v3015_v17 = vmul.f32 1.442695, %v2997_v49  ;;  %v2998_v48 = vsub.f32 %v9109_v46, %v2958_v14  ;;  %6962 = vmatprep.mubr.msk.f32.mxu0 %vm880_vm2, %v3115_v13 }
 0x9da   :  { %v2961_v55 = vpop.xlane.xlu0 %2960 }
 0x9db   :  { %7438 = vpow2.f32 %v3015_v17  ;;  %v3017_v54 = vmul.f32 1.442695, %v2998_v48  ;;  %v2999_v19 = vsub.f32 %v9113_v22, %v2961_v55 }
 0x9dc   :  { %v2964_v24 = vpop.xlane.xlu1 %2963 }
 0x9dd   :  { %7440 = vpow2.f32 %v3017_v54  ;;  %v3019_v38 = vmul.f32 1.442695, %v2999_v19  ;;  %v3000_v5 = vsub.f32 %v9117_v11, %v2964_v24 }
 0x9de   :  { %v2967_v60 = vpop.xlane.xlu0 %2966 }
 0x9df   :  { %7442 = vpow2.f32 %v3019_v38  ;;  %v3021_v18 = vmul.f32 1.442695, %v3000_v5  ;;  %v3001_v15 = vsub.f32 %v9121_v23, %v2967_v60 }
 0x9e0   :  { %v2970_v20 = vpop.xlane.xlu1 %2969 }
 0x9e1   :  { %7444 = vpow2.f32 %v3021_v18  ;;  %v3023_v46 = vmul.f32 1.442695, %v3001_v15  ;;  %v3002_v13 = vsub.f32 %v9125_v52, %v2970_v20  ;;  %v7642_v20 = vld [vmem:[%s10426_s1 + $0x20] sm:$0xff] }
 0x9e2   :  { %v3126_v14 = vpop.permute.xlu0 %3125 }
 0x9e3   :  { %7446 = vpow2.f32 %v3023_v46  ;;  %v3025_v17 = vmul.f32 1.442695, %v3002_v13  ;;  %6930 = vmatprep.subr.mxu1 %v3126_v14 }
 0x9e4   :  { %v9179_v48 = vpop.eup %7434  ;;  %v3124_v28 = vpop.permute.xlu1 %3123  ;;  %6931 = vmatpush3.msra.mxu1 %v3126_v14 }
 0x9e5   :  { %7448 = vpow2.f32 %v3025_v17  ;;  %6932 = vmatprep.subr.mxu1 %v3124_v28  ;;  %v3046_v22 = vsel %vm880_vm2, %v9179_v48, 0.0 }
 0x9e6   :  { %v9183_v11 = vpop.eup %7436  ;;  %3047 = vadd.xlane.f32.xlu1 %v3046_v22  ;;  %6933 = vmatpush3.msra.mxu1 %v3124_v28 }
 0x9e7   :  { %v3043_v23 = vsel %vm880_vm2, %v9183_v11, 0.0 }
 0x9e8   :  { %v9187_v52 = vpop.eup %7438  ;;  %3044 = vadd.xlane.f32.xlu0 %v3043_v23 }
 0x9e9   :  { %v3049_v55 = vsel %vm880_vm2, %v9187_v52, 0.0 }
 0x9ea   :  { %v9189_v4 = vpop.eup %7440 }
 0x9eb   :  { %v3052_v49 = vsel %vm880_vm2, %v9189_v4, 0.0 }
 0x9ec   :  { %v9195_v54 = vpop.eup %7442  ;;  %3053 = vadd.xlane.f32.xlu1 %v3052_v49  ;;  %3050 = vadd.xlane.f32.xlu0 %v3049_v55 }
 0x9ed   :  { %v3055_v38 = vsel %vm880_vm2, %v9195_v54, 0.0 }
 0x9ee   :  { %v9197_v19 = vpop.eup %7444 }
 0x9ef   :  { %v3058_v24 = vsel %vm880_vm2, %v9197_v19, 0.0 }
 0x9f0   :  { %v9203_v5 = vpop.eup %7446  ;;  %3059 = vadd.xlane.f32.xlu1 %v3058_v24  ;;  %3056 = vadd.xlane.f32.xlu0 %v3055_v38 }
 0x9f1   :  { %v3061_v15 = vsel %vm880_vm2, %v9203_v5, 0.0 }
 0x9f2   :  { %v9205_v60 = vpop.eup %7448 }
 0x9f3   :  { %v3064_v18 = vsel %vm880_vm2, %v9205_v60, 0.0 }
 0x9f4   :  { %3065 = vadd.xlane.f32.xlu1 %v3064_v18  ;;  %3062 = vadd.xlane.f32.xlu0 %v3061_v15 }
 0xa05   :  { %3278 = vrot.lane.b32.xlu1 %v8017_v42, %s7654_s26 }
 0xa09   :  { %3672 = vrot.lane.b32.xlu1 %v7965_v12, %s7655_s27 }
 0xa0a   :  { %3276 = vrot.lane.b32.xlu0 %v7977_v9, %s7654_s26 }
 0xa0d   :  { %3668 = vrot.lane.b32.xlu1 %v7975_v6, %s7655_s27 }
 0xa0e   :  { %3670 = vrot.lane.b32.xlu0 %v7967_v0, %s7655_s27 }
 0xa11   :  { %3430 = vrot.lane.b32.xlu1 %v7642_v20, %s7651_s21 }
 0xa12   :  { %3666 = vrot.lane.b32.xlu0 %v7971_v3, %s7655_s27 }
 0xa13   :  { %v9227_v46 = vpop.xlane.xlu0 %3089 }
 0xa15   :  { %v9229_v13 = vpop.xlane.xlu1 %3086  ;;  %3841 = vrot.lane.b32.xlu1 %v7991_v56, %s7655_s27 }
 0xa16   :  { %3664 = vrot.lane.b32.xlu0 %v7985_v21, %s7655_s27 }
 0xa17   :  { %v3291_v14 = vpop.permute.xlu0 %3290 }
 0xa18   :  { %6946 = vmatprep.subr.mxu0 %v3291_v14 }
 0xa19   :  { %v3289_v17 = vpop.permute.xlu1 %3288  ;;  %3839 = vrot.lane.b32.xlu1 %v7999_v35, %s7655_s27  ;;  %6947 = vmatpush3.msra.mxu0 %v3291_v14 }
 0xa1a   :  { %3662 = vrot.lane.b32.xlu0 %v7989_v26, %s7655_s27  ;;  %6948 = vmatprep.subr.mxu0 %v3289_v17 }
 0xa1b   :  { %6949 = vmatpush3.msra.mxu0 %v3289_v17  ;;  %v3285_v28 = vpop.permute.xlu0 %3284 }
 0xa1d   :  { %v3287_v22 = vpop.permute.xlu1 %3286  ;;  %3837 = vrot.lane.b32.xlu1 %v8005_v39, %s7655_s27 }
 0xa1e   :  { %3660 = vrot.lane.b32.xlu0 %v7995_v34, %s7655_s27  ;;  %6950 = vmatprep.subr.mxu0 %v3287_v22 }
 0xa1f   :  { %6951 = vmatpush3.msra.mxu0 %v3287_v22  ;;  %v3281_v49 = vpop.permute.xlu0 %3280 }
 0xa20   :  { %6952 = vmatprep.subr.mxu0 %v3285_v28 }
 0xa21   :  { %v3283_v23 = vpop.permute.xlu1 %3282  ;;  %3835 = vrot.lane.b32.xlu1 %v8013_v40, %s7655_s27  ;;  %6953 = vmatpush3.msra.mxu0 %v3285_v28 }
 0xa22   :  { %3658 = vrot.lane.b32.xlu0 %v7961_v30, %s7655_s27  ;;  %6954 = vmatprep.subr.mxu0 %v3283_v23 }
 0xa23   :  { %6955 = vmatpush3.msra.mxu0 %v3283_v23 }
 0xa24   :  { %6956 = vmatprep.subr.mxu0 %v3281_v49 }
 0xa25   :  { %3644 = vrot.lane.b32.xlu1 %v7995_v34, %s7656_s30  ;;  %6957 = vmatpush3.msra.mxu0 %v3281_v49 }
 0xa26   :  { %3642 = vrot.lane.b32.xlu0 %v7961_v30, %s7656_s30 }
 0xa29   :  { %3646 = vrot.lane.b32.xlu1 %v7989_v26, %s7656_s30 }
 0xa2a   :  { %3833 = vrot.lane.b32.xlu0 %v8009_v36, %s7655_s27 }
 0xa2d   :  { %3831 = vrot.lane.b32.xlu1 %v8021_v37, %s7655_s27 }
 0xa2e   :  { %3648 = vrot.lane.b32.xlu0 %v7985_v21, %s7656_s30 }
 0xa31   :  { %3652 = vrot.lane.b32.xlu1 %v7975_v6, %s7656_s30 }
 0xa32   :  { %3650 = vrot.lane.b32.xlu0 %v7971_v3, %s7656_s30 }
 0xa35   :  { %3654 = vrot.lane.b32.xlu1 %v7967_v0, %s7656_s30 }
 0xa36   :  { %3829 = vrot.lane.b32.xlu0 %v8017_v42, %s7655_s27 }
 0xa39   :  { %3827 = vrot.lane.b32.xlu1 %v7977_v9, %s7655_s27 }
 0xa3a   :  { %3656 = vrot.lane.b32.xlu0 %v7965_v12, %s7656_s30 }
 0xa3d   :  { %3813 = vrot.lane.b32.xlu1 %v8017_v42, %s7656_s30 }
 0xa3e   :  { %3811 = vrot.lane.b32.xlu0 %v7977_v9, %s7656_s30 }
 0xa41   :  { %3817 = vrot.lane.b32.xlu1 %v8009_v36, %s7656_s30 }
 0xa42   :  { %3815 = vrot.lane.b32.xlu0 %v8021_v37, %s7656_s30 }
 0xa45   :  { %3821 = vrot.lane.b32.xlu1 %v8005_v39, %s7656_s30 }
 0xa46   :  { %3819 = vrot.lane.b32.xlu0 %v8013_v40, %s7656_s30 }
 0xa49   :  { %3825 = vrot.lane.b32.xlu1 %v7991_v56, %s7656_s30 }
 0xa4a   :  { %3823 = vrot.lane.b32.xlu0 %v7999_v35, %s7656_s30 }
 0xa4d   :  { %4186 = vrot.lane.b32.xlu1 %v7965_v12, %s7657_s0 }
 0xa4e   :  { %4184 = vrot.lane.b32.xlu0 %v7967_v0, %s7657_s0 }
 0xa51   :  { %4182 = vrot.lane.b32.xlu1 %v7975_v6, %s7657_s0 }
 0xa52   :  { %4180 = vrot.lane.b32.xlu0 %v7971_v3, %s7657_s0 }
 0xa55   :  { %4178 = vrot.lane.b32.xlu1 %v7985_v21, %s7657_s0 }
 0xa56   :  { %4176 = vrot.lane.b32.xlu0 %v7989_v26, %s7657_s0 }
 0xa59   :  { %4174 = vrot.lane.b32.xlu1 %v7995_v34, %s7657_s0 }
 0xa6f   :  { %v3048_v55 = vpop.xlane.xlu1 %3047 }
 0xa70   :  { %7450 = vrcp.f32 %v3048_v55 }
 0xa71   :  { %v3045_v12 = vpop.xlane.xlu0 %3044 }
 0xa72   :  { %7452 = vrcp.f32 %v3045_v12 }
 0xa73   :  { %7454 = vrcp.f32 %v9159_v2 }
 0xa74   :  { %7456 = vrcp.f32 %v9163_v7 }
 0xa75   :  { %v3054_v0 = vpop.xlane.xlu1 %3053  ;;  %v3051_v6 = vpop.xlane.xlu0 %3050 }
 0xa76   :  { %7458 = vrcp.f32 %v3054_v0 }
 0xa77   :  { %7460 = vrcp.f32 %v3051_v6 }
 0xa78   :  { %7462 = vrcp.f32 %v9161_v63 }
 0xa79   :  { %7464 = vrcp.f32 %v9167_v16  ;;  %v3060_v3 = vpop.xlane.xlu1 %3059  ;;  %v3057_v21 = vpop.xlane.xlu0 %3056 }
 0xa7a   :  { %7466 = vrcp.f32 %v3060_v3 }
 0xa7b   :  { %7468 = vrcp.f32 %v3057_v21 }
 0xa7c   :  { %7470 = vrcp.f32 %v9165_v50 }
 0xa7d   :  { %7472 = vrcp.f32 %v9229_v13  ;;  %v3066_v26 = vpop.xlane.xlu1 %3065  ;;  %v3063_v34 = vpop.xlane.xlu0 %3062 }
 0xa7e   :  { %v7451_v2 = vpop.eup %7450  ;;  %7474 = vrcp.f32 %v3066_v26 }
 0xa7f   :  { %v7453_v7 = vpop.eup %7452  ;;  %7476 = vrcp.f32 %v3063_v34  ;;  %v3108_v16 = vmul.f32 %v7451_v2, %v9179_v48 }
 0xa80   :  { %7478 = vrcp.f32 %v9227_v46  ;;  %v3107_v63 = vmul.f32 %v7453_v7, %v9183_v11  ;;  %v7455_v24 = vpop.eup %7454 }
 0xa81   :  { %v3279_v38 = vpop.permute.xlu1 %3278  ;;  %v3277_v18 = vpop.permute.xlu0 %3276  ;;  %v3116_v13 = vmul.f32 %v7455_v24, %v9077_v10 }
 0xa82   :  { %v7457_v15 = vpop.eup %7456  ;;  %6934 = vmatprep.mubr.msk.f32.mxu1 %vm880_vm2, %v3107_v63  ;;  %6958 = vmatprep.subr.mxu0 %v3279_v38 }
 0xa83   :  { %v7459_v50 = vpop.eup %7458  ;;  %6935 = vmatmul.mubr.msk.f32.vlgmr.msra.gmra.mxu1 %vm880_vm2, %v3108_v16  ;;  %6959 = vmatpush3.msra.mxu0 %v3279_v38  ;;  %v3117_v28 = vmul.f32 %v7457_v15, %v9089_v33 }
 0xa84   :  { %v7461_v20 = vpop.eup %7460  ;;  %6960 = vmatprep.subr.mxu0 %v3277_v18  ;;  %v3110_v46 = vmul.f32 %v7459_v50, %v9189_v4 }
 0xa85   :  { %v7463_v11 = vpop.eup %7462  ;;  %v3673_v14 = vpop.permute.xlu1 %3672  ;;  %6961 = vmatpush3.msra.mxu0 %v3277_v18  ;;  %v3109_v17 = vmul.f32 %v7461_v20, %v9187_v52 }
 0xa86   :  { %v3671_v48 = vpop.permute.xlu0 %3670  ;;  %v7465_v22 = vpop.eup %7464  ;;  %6963 = vmatmul.mubr.msk.f32.vlgmr.msra.gmra.mxu0 %vm880_vm2, %v3116_v13  ;;  %7000 = vmatprep.subr.msk.mxu0 %vm565_vm1, %v3673_v14  ;;  %v3118_v4 = vmul.f32 %v7463_v11, %v9085_v25 }
 0xa87   :  { %v7467_v23 = vpop.eup %7466  ;;  %6937 = vmatprep.mubr.msk.f32.mxu1 %vm880_vm2, %v3109_v17  ;;  %6965 = vmatprep.mubr.msk.f32.mxu0 %vm880_vm2, %v3117_v28  ;;  %v3119_v0 = vmul.f32 %v7465_v22, %v9099_v41 }
 0xa88   :  { %v7469_v10 = vpop.eup %7468  ;;  %6938 = vmatmul.mubr.msk.f32.gmra.mxu1 %vm880_vm2, %v3110_v46  ;;  %7001 = vmatpush3.xpose.msk.msra.mxu0 %vm565_vm1, %v3673_v14  ;;  %v3112_v52 = vmul.f32 %v7467_v23, %v9197_v19 }
 0xa89   :  { %v7471_v33 = vpop.eup %7470  ;;  %7002 = vmatprep.subr.msk.mxu0 %vm565_vm1, %v3671_v48  ;;  %v3669_v49 = vpop.permute.xlu1 %3668  ;;  %v3111_v12 = vmul.f32 %v7469_v10, %v9195_v54 }
 0xa8a   :  { %v3667_v55 = vpop.permute.xlu0 %3666  ;;  %v7473_v6 = vpop.eup %7472  ;;  %6966 = vmatmul.mubr.msk.f32.gmra.mxu0 %vm880_vm2, %v3118_v4  ;;  %v3120_v19 = vmul.f32 %v7471_v33, %v9093_v51 }
 0xa8b   :  { %v7475_v3 = vpop.eup %7474  ;;  %6940 = vmatprep.mubr.msk.f32.mxu1 %vm880_vm2, %v3111_v12  ;;  %6968 = vmatprep.mubr.msk.f32.mxu0 %vm880_vm2, %v3119_v0  ;;  %v3121_v2 = vmul.f32 %v7473_v6, %v9141_v57 }
 0xa8c   :  { %v7477_v25 = vpop.eup %7476  ;;  %6941 = vmatmul.mubr.msk.f32.gmra.mxu1 %vm880_vm2, %v3112_v52  ;;  %7003 = vmatpush3.xpose.msk.msra.mxu0 %vm565_vm1, %v3671_v48  ;;  %v3114_v21 = vmul.f32 %v7475_v3, %v9205_v60 }
 0xa8d   :  { %v7479_v54 = vpop.eup %7478  ;;  %7004 = vmatprep.subr.msk.mxu0 %vm565_vm1, %v3669_v49  ;;  %v3431_v41 = vpop.permute.xlu1 %3430  ;;  %v3113_v34 = vmul.f32 %v7477_v25, %v9203_v5 }
 0xa8e   :  { %v3665_v26 = vpop.permute.xlu0 %3664  ;;  %6969 = vmatmul.mubr.msk.f32.gmra.mxu0 %vm880_vm2, %v3120_v19  ;;  %6974 = vmatprep.subr.mxu1 %v3431_v41  ;;  %v3122_v51 = vmul.f32 %v7479_v54, %v9139_v27 }
 0xa8f   :  { %6943 = vmatprep.mubr.msk.f32.mxu1 %vm880_vm2, %v3113_v34  ;;  %6971 = vmatprep.mubr.msk.f32.mxu0 %vm880_vm2, %v3121_v2 }
 0xa90   :  { %6944 = vmatmul.mubr.msk.f32.gmra.mxu1 %vm880_vm2, %v3114_v21  ;;  %7005 = vmatpush3.xpose.msk.msra.mxu0 %vm565_vm1, %v3669_v49 }
 0xa91   :  { %7006 = vmatprep.subr.msk.mxu0 %vm565_vm1, %v3667_v55  ;;  %v9328_v60 = vpop.permute.xlu1 %3841  ;;  %6975 = vmatpush3.msra.mxu1 %v3431_v41 }
 0xa92   :  { %v3663_v5 = vpop.permute.xlu0 %3662  ;;  %6972 = vmatmul.mubr.msk.f32.gmra.mxu0 %vm880_vm2, %v3122_v51  ;;  %7028 = vmatprep.subr.msk.mxu1 %vm565_vm1, %v9328_v60 }
 0xa94   :  { %7007 = vmatpush3.xpose.msk.msra.mxu0 %vm565_vm1, %v3667_v55 }
 0xa95   :  { %7008 = vmatprep.subr.msk.mxu0 %vm565_vm1, %v3665_v26  ;;  %v9335_v57 = vpop.permute.xlu1 %3839 }
 0xa96   :  { %v3661_v7 = vpop.permute.xlu0 %3660 }
 0xa98   :  { %7009 = vmatpush3.xpose.msk.msra.mxu0 %vm565_vm1, %v3665_v26 }
 0xa99   :  { %7010 = vmatprep.subr.msk.mxu0 %vm565_vm1, %v3663_v5  ;;  %v9339_v27 = vpop.permute.xlu1 %3837 }
 0xa9a   :  { %v3659_v63 = vpop.permute.xlu0 %3658 }
 0xa9c   :  { %7011 = vmatpush3.xpose.msk.msra.mxu0 %vm565_vm1, %v3663_v5 }
 0xa9d   :  { %7012 = vmatprep.subr.msk.mxu0 %vm565_vm1, %v3661_v7  ;;  %v9343_v24 = vpop.permute.xlu1 %3835 }
 0xa9e   :  { %v3643_v16 = vpop.permute.xlu0 %3642 }
 0xa9f   :  { %7016 = vmatprep.mubr.msk.f32.mxu0 %vm565_vm1, %v3643_v16 }
 0xaa0   :  { %7013 = vmatpush3.xpose.msk.msra.mxu0 %vm565_vm1, %v3661_v7 }
 0xaa1   :  { %7014 = vmatprep.subr.msk.mxu0 %vm565_vm1, %v3659_v63  ;;  %v3645_v38 = vpop.permute.xlu1 %3644 }
 0xaa2   :  { %v9348_v18 = vpop.permute.xlu0 %3833 }
 0xaa4   :  { %7015 = vmatpush3.xpose.msk.msra.mxu0 %vm565_vm1, %v3659_v63 }
 0xaa5   :  { %v3647_v15 = vpop.permute.xlu1 %3646 }
 0xaa6   :  { %v3649_v50 = vpop.permute.xlu0 %3648 }
 0xaa7   :  { %7017 = vmatmul.mubr.msk.f32.vlgmr.msra.gmra.mxu0 %vm565_vm1, %v3645_v38 }
 0xaa8   :  { %7019 = vmatprep.mubr.msk.f32.mxu0 %vm565_vm1, %v3647_v15 }
 0xaa9   :  { %v9353_v20 = vpop.permute.xlu1 %3831 }
 0xaaa   :  { %v3651_v13 = vpop.permute.xlu0 %3650 }
 0xaab   :  { %7020 = vmatmul.mubr.msk.f32.gmra.mxu0 %vm565_vm1, %v3649_v50 }
 0xaac   :  { %7022 = vmatprep.mubr.msk.f32.mxu0 %vm565_vm1, %v3651_v13 }
 0xaad   :  { %v3653_v46 = vpop.permute.xlu1 %3652 }
 0xaae   :  { %v9357_v11 = vpop.permute.xlu0 %3829 }
 0xaaf   :  { %7023 = vmatmul.mubr.msk.f32.gmra.mxu0 %vm565_vm1, %v3653_v46 }
 0xab1   :  { %v3655_v14 = vpop.permute.xlu1 %3654 }
 0xab2   :  { %v3657_v48 = vpop.permute.xlu0 %3656  ;;  %7025 = vmatprep.mubr.msk.f32.mxu0 %vm565_vm1, %v3655_v14 }
 0xab3   :  { %7026 = vmatmul.mubr.msk.f32.gmra.mxu0 %vm565_vm1, %v3657_v48 }
 0xab5   :  { %v9362_v17 = vpop.permute.xlu1 %3827 }
 0xab6   :  { %v9364_v28 = vpop.permute.xlu0 %3811 }
 0xab9   :  { %v9366_v22 = vpop.permute.xlu1 %3813 }
 0xaba   :  { %v9368_v23 = vpop.permute.xlu0 %3815 }
 0xabd   :  { %v9370_v10 = vpop.permute.xlu1 %3817 }
 0xabe   :  { %v9372_v4 = vpop.permute.xlu0 %3819 }
 0xac1   :  { %v9374_v52 = vpop.permute.xlu1 %3821 }
 0xac2   :  { %v9376_v33 = vpop.permute.xlu0 %3823 }
 0xac5   :  { %v9378_v49 = vpop.permute.xlu1 %3825 }
 0xac6   :  { %v4185_v55 = vpop.permute.xlu0 %4184 }
 0xac9   :  { %v4187_v12 = vpop.permute.xlu1 %4186 }
 0xaca   :  { %7056 = vmatprep.subr.mxu0 %v4187_v12  ;;  %v4181_v0 = vpop.permute.xlu0 %4180 }
 0xacb   :  { %7057 = vmatpush3.msra.mxu0 %v4187_v12 }
 0xacc   :  { %7058 = vmatprep.subr.mxu0 %v4185_v55 }
 0xacd   :  { %v4183_v6 = vpop.permute.xlu1 %4182  ;;  %7059 = vmatpush3.msra.mxu0 %v4185_v55 }
 0xace   :  { %7060 = vmatprep.subr.mxu0 %v4183_v6  ;;  %v4177_v25 = vpop.permute.xlu0 %4176 }
 0xacf   :  { %7061 = vmatpush3.msra.mxu0 %v4183_v6 }
 0xad0   :  { %7062 = vmatprep.subr.mxu0 %v4181_v0 }
 0xad1   :  { %v4179_v3 = vpop.permute.xlu1 %4178  ;;  %7063 = vmatpush3.msra.mxu0 %v4181_v0 }
 0xad2   :  { %7064 = vmatprep.subr.mxu0 %v4179_v3 }
 0xad3   :  { %7065 = vmatpush3.msra.mxu0 %v4179_v3 }
 0xad4   :  { %7066 = vmatprep.subr.mxu0 %v4177_v25 }
 0xad5   :  { %v4175_v19 = vpop.permute.xlu1 %4174  ;;  %7067 = vmatpush3.msra.mxu0 %v4177_v25 }
 0xad6   :  { %7068 = vmatprep.subr.mxu0 %v4175_v19 }
 0xad7   :  { %7069 = vmatpush3.msra.mxu0 %v4175_v19 }
 0xb43   :  { %v6936_v21 = vpop.f32.mrf.mxu1 }
 0xb45   :  { %v3237_v54 = vpop.f32.mrf.mxu1 }
 0xb46   :  { %v6964_v41 = vpop.f32.mrf.mxu0  ;;  %6976 = vmatprep.mubr.msk.f32.mxu1 %vm565_vm1, %v3237_v54 }
 0xb47   :  { %6977 = vmatmul.mubr.msk.f32.vlgmr.msra.gmra.mxu1 %vm565_vm1, %v6936_v21 }
 0xb48   :  { %v6939_v26 = vpop.f32.mrf.mxu1  ;;  %7029 = vmatpush3.xpose.msk.msra.mxu1 %vm565_vm1, %v9328_v60  ;;  %v3390_v34 = vpop.f32.mrf.mxu0 }
 0xb49   :  { %7030 = vmatprep.subr.msk.mxu1 %vm565_vm1, %v9335_v57 }
 0xb4a   :  { %v3247_v2 = vpop.f32.mrf.mxu1  ;;  %v6967_v51 = vpop.f32.mrf.mxu0 }
 0xb4b   :  { %6979 = vmatprep.mubr.msk.f32.mxu1 %vm565_vm1, %v3247_v2 }
 0xb4c   :  { %v6942_v5 = vpop.f32.mrf.mxu1  ;;  %6980 = vmatmul.mubr.msk.f32.gmra.mxu1 %vm565_vm1, %v6939_v26  ;;  %v3400_v60 = vpop.f32.mrf.mxu0 }
 0xb4d   :  { %7031 = vmatpush3.xpose.msk.msra.mxu1 %vm565_vm1, %v9335_v57 }
 0xb4e   :  { %7032 = vmatprep.subr.msk.mxu1 %vm565_vm1, %v9339_v27  ;;  %v3257_v7 = vpop.f32.mrf.mxu1  ;;  %v6970_v57 = vpop.f32.mrf.mxu0 }
 0xb4f   :  { %6982 = vmatprep.mubr.msk.f32.mxu1 %vm565_vm1, %v3257_v7 }
 0xb50   :  { %v6945_v63 = vpop.f32.mrf.mxu1  ;;  %6983 = vmatmul.mubr.msk.f32.gmra.mxu1 %vm565_vm1, %v6942_v5  ;;  %v3410_v38 = vpop.f32.mrf.mxu0 }
 0xb51   :  { %7033 = vmatpush3.xpose.msk.msra.mxu1 %vm565_vm1, %v9339_v27 }
 0xb52   :  { %7034 = vmatprep.subr.msk.mxu1 %vm565_vm1, %v9343_v24  ;;  %v3267_v16 = vpop.f32.mrf.mxu1  ;;  %v6973_v27 = vpop.f32.mrf.mxu0 }
 0xb53   :  { %6985 = vmatprep.mubr.msk.f32.mxu1 %vm565_vm1, %v3267_v16 }
 0xb54   :  { %6986 = vmatmul.mubr.msk.f32.gmra.mxu1 %vm565_vm1, %v6945_v63 }
 0xb55   :  { %7035 = vmatpush3.xpose.msk.msra.mxu1 %vm565_vm1, %v9343_v24  ;;  %6988 = vmatprep.mubr.msk.f32.mxu1 %vm565_vm1, %v3390_v34  ;;  %v3420_v24 = vpop.f32.mrf.mxu0 }
 0xb56   :  { %7036 = vmatprep.subr.msk.mxu1 %vm565_vm1, %v9348_v18 }
 0xb58   :  { %6989 = vmatmul.mubr.msk.f32.gmra.mxu1 %vm565_vm1, %v6964_v41 }
 0xb59   :  { %7037 = vmatpush3.xpose.msk.msra.mxu1 %vm565_vm1, %v9348_v18  ;;  %6991 = vmatprep.mubr.msk.f32.mxu1 %vm565_vm1, %v3400_v60 }
 0xb5a   :  { %7038 = vmatprep.subr.msk.mxu1 %vm565_vm1, %v9353_v20 }
 0xb5c   :  { %6992 = vmatmul.mubr.msk.f32.gmra.mxu1 %vm565_vm1, %v6967_v51 }
 0xb5d   :  { %7039 = vmatpush3.xpose.msk.msra.mxu1 %vm565_vm1, %v9353_v20  ;;  %6994 = vmatprep.mubr.msk.f32.mxu1 %vm565_vm1, %v3410_v38 }
 0xb5e   :  { %7040 = vmatprep.subr.msk.mxu1 %vm565_vm1, %v9357_v11 }
 0xb60   :  { %6995 = vmatmul.mubr.msk.f32.gmra.mxu1 %vm565_vm1, %v6970_v57 }
 0xb61   :  { %7041 = vmatpush3.xpose.msk.msra.mxu1 %vm565_vm1, %v9357_v11  ;;  %6997 = vmatprep.mubr.msk.f32.mxu1 %vm565_vm1, %v3420_v24 }
 0xb62   :  { %7042 = vmatprep.subr.msk.mxu1 %vm565_vm1, %v9362_v17 }
 0xb64   :  { %6998 = vmatmul.mubr.msk.f32.gmra.mxu1 %vm565_vm1, %v6973_v27 }
 0xb65   :  { %7043 = vmatpush3.xpose.msk.msra.mxu1 %vm565_vm1, %v9362_v17  ;;  %7044 = vmatprep.mubr.msk.f32.mxu1 %vm565_vm1, %v9364_v28 }
 0xb67   :  { %v7018_v18 = vpop.f32.mrf.mxu0 }
 0xb68   :  { %v3981_v15 = vmul.f32 0.17677669, %v7018_v18  ;;  %7045 = vmatmul.mubr.msk.f32.vlgmr.msra.gmra.mxu1 %vm565_vm1, %v9366_v22 }
 0xb69   :  { %v3772_v50 = vpop.f32.mrf.mxu0  ;;  %7047 = vmatprep.mubr.msk.f32.mxu1 %vm565_vm1, %v9368_v23 }
 0xb6a   :  { %v3980_v20 = vmul.f32 0.17677669, %v3772_v50  ;;  %v3999_v13 = vsel %vm880_vm2, %v3981_v15, -inf }
 0xb6b   :  { %4000 = vmax.xlane.f32.xlu1 %v3999_v13  ;;  %v7021_v46 = vpop.f32.mrf.mxu0  ;;  %v2520_v13 = vadd.f32 %v8979_v58, %v9045_v43 }
 0xb6c   :  { %v3983_v11 = vmul.f32 0.17677669, %v7021_v46  ;;  %7048 = vmatmul.mubr.msk.f32.gmra.mxu1 %vm565_vm1, %v9370_v10  ;;  %v3996_v14 = vsel %vm880_vm2, %v3980_v20, -inf }
 0xb6d   :  { %3997 = vmax.xlane.f32.xlu0 %v3996_v14  ;;  %v3782_v48 = vpop.f32.mrf.mxu0  ;;  %7050 = vmatprep.mubr.msk.f32.mxu1 %vm565_vm1, %v9372_v4 }
 0xb6e   :  { %v3982_v28 = vmul.f32 0.17677669, %v3782_v48  ;;  %v4005_v22 = vsel %vm880_vm2, %v3983_v11, -inf }
 0xb6f   :  { %v7024_v17 = vpop.f32.mrf.mxu0 }
 0xb70   :  { %7051 = vmatmul.mubr.msk.f32.gmra.mxu1 %vm565_vm1, %v9374_v52  ;;  %v3985_v12 = vmul.f32 0.17677669, %v7024_v17  ;;  %v4002_v4 = vsel %vm880_vm2, %v3982_v28, -inf }
 0xb71   :  { %4006 = vmax.xlane.f32.xlu0 %v4005_v22  ;;  %v3792_v23 = vpop.f32.mrf.mxu0  ;;  %7053 = vmatprep.mubr.msk.f32.mxu1 %vm565_vm1, %v9376_v33  ;;  %v2515_v22 = vadd.f32 %v8982_v59, %v9047_v62  ;;  %v2525_v59 = vadd.f32 %v8988_v47, %v9051_v44 }
 0xb72   :  { %v3984_v10 = vmul.f32 0.17677669, %v3792_v23  ;;  %v4011_v25 = vsel %vm880_vm2, %v3985_v12, -inf }
 0xb73   :  { %v7027_v55 = vpop.f32.mrf.mxu0 }
 0xb74   :  { %7054 = vmatmul.mubr.msk.f32.gmra.mxu1 %vm565_vm1, %v9378_v49  ;;  %v4008_v0 = vsel %vm880_vm2, %v3984_v10, -inf  ;;  %v3987_v3 = vmul.f32 0.17677669, %v7027_v55 }
 0xb75   :  { %4003 = vmax.xlane.f32.xlu0 %v4002_v4  ;;  %4009 = vmax.xlane.f32.xlu1 %v4008_v0  ;;  %v3802_v52 = vpop.f32.mrf.mxu0 }
 0xb76   :  { %v3986_v6 = vmul.f32 0.17677669, %v3802_v52  ;;  %v4017_v33 = vsel %vm880_vm2, %v3987_v3, -inf }
 0xb78   :  { %v4014_v19 = vsel %vm880_vm2, %v3986_v6, -inf }
 0xb79   :  { %4012 = vmax.xlane.f32.xlu0 %v4011_v25  ;;  %4015 = vmax.xlane.f32.xlu1 %v4014_v19  ;;  %v2535_v19 = vadd.f32 %v8995_v61, %v9055_v8 }
 0xb7d   :  { %4018 = vmax.xlane.f32.xlu0 %v4017_v33 }
 0xbf4   :  { %v4001_v21 = vpop.xlane.xlu1 %4000 }
 0xbf5   :  { %v4045_v49 = vsub.f32 %v3981_v15, %v4001_v21 }
 0xbf6   :  { %v3998_v54 = vpop.xlane.xlu0 %3997 }
 0xbf7   :  { %v4062_v41 = vmul.f32 1.442695, %v4045_v49  ;;  %v4044_v26 = vsub.f32 %v3980_v20, %v3998_v54  ;;  %v2550_v49 = vadd.f32 %v8997_v29, %v9057_v45  ;;  %v10495_v29 = vld [vmem:[#allocation29_spill] sm:$0xff] }
 0xbf8   :  { %v10496_v45 = vld [vmem:[#allocation21_spill] sm:$0xff] }
 0xbf9   :  { %7480 = vpow2.f32 %v4062_v41  ;;  %v4060_v34 = vmul.f32 1.442695, %v4044_v26 }
 0xbfa   :  { %v4007_v2 = vpop.xlane.xlu0 %4006 }
 0xbfb   :  { %7482 = vpow2.f32 %v4060_v34  ;;  %v4047_v51 = vsub.f32 %v3983_v11, %v4007_v2  ;;  %v2560_v2 = vadd.f32 %v10496_v45, %v10495_v29 }
 0xbfd   :  { %v4066_v5 = vmul.f32 1.442695, %v4047_v51 }
 0xbfe   :  { %v4010_v7 = vpop.xlane.xlu1 %4009  ;;  %v4004_v60 = vpop.xlane.xlu0 %4003 }
 0xbff   :  { %7484 = vpow2.f32 %v4066_v5  ;;  %v4048_v63 = vsub.f32 %v3984_v10, %v4010_v7  ;;  %v4046_v16 = vsub.f32 %v3982_v28, %v4004_v60  ;;  %v10497_v7 = vld [vmem:[#allocation30_spill] sm:$0xff]  ;;  %v10498_v60 = vld [vmem:[#allocation20_spill] sm:$0xff] }
 0xc01   :  { %v4064_v57 = vmul.f32 1.442695, %v4046_v16  ;;  %v4068_v38 = vmul.f32 1.442695, %v4048_v63  ;;  %v2555_v63 = vadd.f32 %v10498_v60, %v10497_v7 }
 0xc02   :  { %v4013_v27 = vpop.xlane.xlu0 %4012  ;;  %v4016_v24 = vpop.xlane.xlu1 %4015 }
 0xc03   :  { %v4049_v18 = vsub.f32 %v3985_v12, %v4013_v27  ;;  %v4050_v15 = vsub.f32 %v3986_v6, %v4016_v24  ;;  %7486 = vpow2.f32 %v4064_v57  ;;  %v2530_v12 = vadd.f32 %v8985_v32, %v9049_v31  ;;  %v10499_v24 = vld [vmem:[#allocation31_spill] sm:$0xff] }
 0xc04   :  { %7488 = vpow2.f32 %v4068_v38 }
 0xc05   :  { %v4070_v50 = vmul.f32 1.442695, %v4049_v18  ;;  %v4072_v46 = vmul.f32 1.442695, %v4050_v15  ;;  %v10500_v18 = vld [vmem:[#allocation22_spill] sm:$0xff] }
 0xc06   :  { %v9450_v20 = vpop.eup %7480  ;;  %v4019_v11 = vpop.xlane.xlu0 %4018  ;;  %v2570_v15 = vadd.f32 %v10500_v18, %v10499_v24 }
 0xc07   :  { %7490 = vpow2.f32 %v4070_v50  ;;  %v4051_v14 = vsub.f32 %v3987_v3, %v4019_v11  ;;  %v6978_v48 = vpop.f32.mrf.mxu1  ;;  %v4095_v17 = vsel %vm880_vm2, %v9450_v20, 0.0  ;;  %v2540_v3 = vadd.f32 %v8991_v53, %v9053_v1  ;;  %v10502_v11 = vld [vmem:[#allocation23_spill] sm:$0xff] }
 0xc08   :  { %v9456_v28 = vpop.eup %7482  ;;  %v9460_v23 = vadd.f32 %v6978_v48, %v2520_v13  ;;  %4096 = vadd.xlane.f32.xlu0 %v4095_v17  ;;  %7492 = vpow2.f32 %v4072_v46  ;;  %v10501_v46 = vld [vmem:[#allocation32_spill] sm:$0xff] }
 0xc09   :  { %v4074_v10 = vmul.f32 1.442695, %v4051_v14  ;;  %v3547_v55 = vpop.f32.mrf.mxu1  ;;  %v4092_v58 = vsel %vm880_vm2, %v9456_v28, 0.0  ;;  %v2565_v14 = vadd.f32 %v10502_v11, %v10501_v46 }
 0xc0a   :  { %v9464_v43 = vadd.f32 %v3547_v55, %v2515_v22  ;;  %4093 = vadd.xlane.f32.xlu1 %v4092_v58  ;;  %v10503_v22 = vld [vmem:[#allocation33_spill] sm:$0xff] }
 0xc0b   :  { %7494 = vpow2.f32 %v4074_v10  ;;  %v10504_v10 = vld [vmem:[#allocation24_spill] sm:$0xff] }
 0xc0c   :  { %v9468_v4 = vpop.eup %7484  ;;  %v6981_v0 = vpop.f32.mrf.mxu1  ;;  %v2580_v55 = vadd.f32 %v10504_v10, %v10503_v22 }
 0xc0d   :  { %v9472_v62 = vadd.f32 %v6981_v0, %v2530_v12  ;;  %v4101_v52 = vsel %vm880_vm2, %v9468_v4, 0.0  ;;  %v10505_v0 = vld [vmem:[#allocation34_spill] sm:$0xff] }
 0xc0e   :  { %v3557_v6 = vpop.f32.mrf.mxu1  ;;  %4102 = vadd.xlane.f32.xlu0 %v4101_v52 }
 0xc0f   :  { %v9478_v25 = vadd.f32 %v3557_v6, %v2525_v59  ;;  %v10506_v59 = vld [vmem:[#allocation25_spill] sm:$0xff] }
 0xc10   :  { %v6984_v32 = vpop.f32.mrf.mxu1  ;;  %v9480_v31 = vpop.eup %7486  ;;  %v2575_v52 = vadd.f32 %v10506_v59, %v10505_v0 }
 0xc11   :  { %v9484_v33 = vadd.f32 %v6984_v32, %v2540_v3  ;;  %v4098_v44 = vsel %vm880_vm2, %v9480_v31, 0.0  ;;  %v9488_v21 = vpop.eup %7488  ;;  %v10507_v32 = vld [vmem:[#allocation35_spill] sm:$0xff] }
 0xc12   :  { %v3567_v47 = vpop.f32.mrf.mxu1  ;;  %4099 = vadd.xlane.f32.xlu1 %v4098_v44  ;;  %v4104_v26 = vsel %vm880_vm2, %v9488_v21, 0.0 }
 0xc13   :  { %v9492_v53 = vadd.f32 %v3567_v47, %v2535_v19  ;;  %v10508_v19 = vld [vmem:[#allocation26_spill] sm:$0xff] }
 0xc14   :  { %v9494_v1 = vpop.eup %7490  ;;  %v6987_v54 = vpop.f32.mrf.mxu1  ;;  %v2590_v47 = vadd.f32 %v10508_v19, %v10507_v32 }
 0xc15   :  { %v9496_v41 = vadd.f32 %v6987_v54, %v2550_v49  ;;  %v4107_v61 = vsel %vm880_vm2, %v9494_v1, 0.0  ;;  %v9504_v34 = vpop.eup %7492  ;;  %v10509_v54 = vld [vmem:[#allocation36_spill] sm:$0xff] }
 0xc16   :  { %v9500_v8 = vpop.f32.mrf.mxu1  ;;  %4108 = vadd.xlane.f32.xlu0 %v4107_v61  ;;  %4105 = vadd.xlane.f32.xlu1 %v4104_v26  ;;  %v4110_v27 = vsel %vm880_vm2, %v9504_v34, 0.0  ;;  %v10510_v61 = vld [vmem:[#allocation27_spill] sm:$0xff] }
 0xc17   :  { %v2585_v26 = vadd.f32 %v10510_v61, %v10509_v54 }
 0xc18   :  { %v9508_v51 = vpop.eup %7494  ;;  %v6990_v5 = vpop.f32.mrf.mxu1 }
 0xc19   :  { %v9512_v16 = vadd.f32 %v6990_v5, %v2560_v2  ;;  %v4113_v57 = vsel %vm880_vm2, %v9508_v51, 0.0 }
 0xc1a   :  { %v3587_v38 = vpop.f32.mrf.mxu1  ;;  %4114 = vadd.xlane.f32.xlu0 %v4113_v57  ;;  %4111 = vadd.xlane.f32.xlu1 %v4110_v27 }
 0xc1b   :  { %v9520_v50 = vadd.f32 %v3587_v38, %v2555_v63 }
 0xc1c   :  { %v6993_v13 = vpop.f32.mrf.mxu1 }
 0xc1d   :  { %v9524_v48 = vadd.f32 %v6993_v13, %v2570_v15 }
 0xc1e   :  { %v3597_v17 = vpop.f32.mrf.mxu1 }
 0xc1f   :  { %v9528_v58 = vadd.f32 %v3597_v17, %v2565_v14 }
 0xc20   :  { %v6996_v12 = vpop.f32.mrf.mxu1 }
 0xc21   :  { %v9532_v6 = vadd.f32 %v6996_v12, %v2580_v55 }
 0xc22   :  { %v3607_v3 = vpop.f32.mrf.mxu1 }
 0xc23   :  { %v9536_v44 = vadd.f32 %v3607_v3, %v2575_v52 }
 0xc24   :  { %v6999_v49 = vpop.f32.mrf.mxu1 }
 0xc25   :  { %v9540_v29 = vadd.f32 %v6999_v49, %v2590_v47 }
 0xc26   :  { %v3617_v45 = vpop.f32.mrf.mxu1 }
 0xc27   :  { %v9542_v2 = vadd.f32 %v3617_v45, %v2585_v26 }
 0xc28   :  { %v7046_v5 = vpop.f32.mrf.mxu1 }
 0xc29   :  { %v3989_v7 = vmul.f32 0.17677669, %v7046_v5 }
 0xc2a   :  { %v3941_v60 = vpop.f32.mrf.mxu1 }
 0xc2b   :  { %v3988_v63 = vmul.f32 0.17677669, %v3941_v60  ;;  %v4023_v57 = vsel %vm880_vm2, %v3989_v7, -inf }
 0xc2c   :  { %v7049_v38 = vpop.f32.mrf.mxu1  ;;  %4024 = vmax.xlane.f32.xlu0 %v4023_v57 }
 0xc2d   :  { %v3991_v27 = vmul.f32 0.17677669, %v7049_v38  ;;  %v4020_v24 = vsel %vm880_vm2, %v3988_v63, -inf }
 0xc2e   :  { %v3951_v18 = vpop.f32.mrf.mxu1  ;;  %4021 = vmax.xlane.f32.xlu1 %v4020_v24 }
 0xc2f   :  { %v3990_v15 = vmul.f32 0.17677669, %v3951_v18  ;;  %v4029_v13 = vsel %vm880_vm2, %v3991_v27, -inf }
 0xc30   :  { %v7052_v46 = vpop.f32.mrf.mxu1  ;;  %4030 = vmax.xlane.f32.xlu0 %v4029_v13 }
 0xc31   :  { %v3993_v11 = vmul.f32 0.17677669, %v7052_v46  ;;  %v4026_v14 = vsel %vm880_vm2, %v3990_v15, -inf }
 0xc32   :  { %v3961_v17 = vpop.f32.mrf.mxu1  ;;  %4027 = vmax.xlane.f32.xlu1 %v4026_v14 }
 0xc33   :  { %v3992_v22 = vmul.f32 0.17677669, %v3961_v17  ;;  %v4035_v10 = vsel %vm880_vm2, %v3993_v11, -inf }
 0xc34   :  { %v7055_v55 = vpop.f32.mrf.mxu1  ;;  %4036 = vmax.xlane.f32.xlu0 %v4035_v10 }
 0xc35   :  { %v9549_v12 = vmul.f32 0.17677669, %v7055_v55  ;;  %v4032_v0 = vsel %vm880_vm2, %v3992_v22, -inf }
 0xc36   :  { %4033 = vmax.xlane.f32.xlu1 %v4032_v0  ;;  %v3971_v52 = vpop.f32.mrf.mxu1 }
 0xc37   :  { %v4041_v59 = vsel %vm880_vm2, %v9549_v12, -inf  ;;  %v9564_v3 = vmul.f32 0.17677669, %v3971_v52 }
 0xc38   :  { %4042 = vmax.xlane.f32.xlu0 %v4041_v59 }
 0xc39   :  { %v4038_v32 = vsel %vm880_vm2, %v9564_v3, -inf }
 0xc47   :  { %4339 = vrot.lane.b32.xlu1 %v7991_v56, %s7657_s0 }
 0xc4b   :  { %4335 = vrot.lane.b32.xlu1 %v8005_v39, %s7657_s0 }
 0xc4e   :  { %4172 = vrot.lane.b32.xlu0 %v7961_v30, %s7657_s0 }
 0xc52   :  { %4337 = vrot.lane.b32.xlu0 %v7999_v35, %s7657_s0 }
 0xc56   :  { %4331 = vrot.lane.b32.xlu0 %v8009_v36, %s7657_s0 }
 0xc6f   :  { %4039 = vmax.xlane.f32.xlu1 %v4038_v32 }
 0xc80   :  { %4333 = vrot.lane.b32.xlu1 %v8013_v40, %s7657_s0 }
 0xc84   :  { %4329 = vrot.lane.b32.xlu1 %v8021_v37, %s7657_s0 }
 0xc91   :  { %v4097_v39 = vpop.xlane.xlu0 %4096 }
 0xc93   :  { %v4094_v30 = vpop.xlane.xlu1 %4093 }
 0xc94   :  { %7496 = vrcp.f32 %v4094_v30 }
 0xc95   :  { %7498 = vrcp.f32 %v4097_v39 }
 0xc97   :  { %v4103_v36 = vpop.xlane.xlu0 %4102 }
 0xc9b   :  { %v4100_v19 = vpop.xlane.xlu1 %4099 }
 0xc9c   :  { %7500 = vrcp.f32 %v4100_v19 }
 0xc9d   :  { %7502 = vrcp.f32 %v4103_v36 }
 0xc9f   :  { %v4109_v47 = vpop.xlane.xlu0 %4108  ;;  %v4106_v49 = vpop.xlane.xlu1 %4105 }
 0xca1   :  { %v7497_v56 = vpop.eup %7496 }
 0xca2   :  { %v4156_v35 = vmul.f32 %v7497_v56, %v9456_v28  ;;  %v7499_v0 = vpop.eup %7498 }
 0xca3   :  { %v4115_v54 = vpop.xlane.xlu0 %4114  ;;  %v4112_v61 = vpop.xlane.xlu1 %4111  ;;  %v4157_v30 = vmul.f32 %v7499_v0, %v9450_v20 }
 0xca4   :  { %7072 = vmatprep.mubr.msk.f32.mxu0 %vm880_vm2, %v4156_v35 }
 0xca9   :  { %v7501_v52 = vpop.eup %7500 }
 0xcaa   :  { %v4158_v56 = vmul.f32 %v7501_v52, %v9480_v31 }
 0xcb5   :  { %v4025_v26 = vpop.xlane.xlu0 %4024 }
 0xcb6   :  { %v4053_v40 = vsub.f32 %v3989_v7, %v4025_v26 }
 0xcb7   :  { %v4022_v45 = vpop.xlane.xlu1 %4021 }
 0xcb8   :  { %v4078_v37 = vmul.f32 1.442695, %v4053_v40  ;;  %v4052_v5 = vsub.f32 %v3988_v63, %v4022_v45 }
 0xcb9   :  { %v4031_v60 = vpop.xlane.xlu0 %4030 }
 0xcba   :  { %7504 = vpow2.f32 %v4078_v37  ;;  %v4076_v28 = vmul.f32 1.442695, %v4052_v5  ;;  %v4055_v57 = vsub.f32 %v3991_v27, %v4031_v60 }
 0xcbb   :  { %7506 = vrcp.f32 %v4106_v49  ;;  %v4028_v38 = vpop.xlane.xlu1 %4027 }
 0xcbc   :  { %7508 = vpow2.f32 %v4076_v28  ;;  %v4082_v24 = vmul.f32 1.442695, %v4055_v57  ;;  %v4054_v18 = vsub.f32 %v3990_v15, %v4028_v38 }
 0xcbd   :  { %7510 = vrcp.f32 %v4109_v47  ;;  %v4037_v13 = vpop.xlane.xlu0 %4036 }
 0xcbe   :  { %7512 = vpow2.f32 %v4082_v24  ;;  %v4080_v46 = vmul.f32 1.442695, %v4054_v18  ;;  %v4057_v14 = vsub.f32 %v3993_v11, %v4037_v13  ;;  %v7503_v11 = vpop.eup %7502  ;;  %v7643_v24 = vld [vmem:[%s10426_s1 + $0x30] sm:$0xff] }
 0xcbf   :  { %7514 = vrcp.f32 %v4112_v61  ;;  %v4034_v7 = vpop.xlane.xlu1 %4033  ;;  %v4159_v47 = vmul.f32 %v7503_v11, %v9468_v4 }
 0xcc0   :  { %7516 = vpow2.f32 %v4080_v46  ;;  %v4086_v17 = vmul.f32 1.442695, %v4057_v14  ;;  %v4056_v63 = vsub.f32 %v3992_v22, %v4034_v7 }
 0xcc1   :  { %7518 = vrcp.f32 %v4115_v54  ;;  %v4043_v10 = vpop.xlane.xlu0 %4042 }
 0xcc2   :  { %7520 = vpow2.f32 %v4086_v17  ;;  %v4084_v55 = vmul.f32 1.442695, %v4056_v63  ;;  %v4059_v27 = vsub.f32 %v9549_v12, %v4043_v10 }
 0xcc3   :  { %v4340_v59 = vpop.permute.xlu1 %4339 }
 0xcc4   :  { %7522 = vpow2.f32 %v4084_v55  ;;  %v4090_v15 = vmul.f32 1.442695, %v4059_v27  ;;  %7084 = vmatprep.subr.mxu1 %v4340_v59 }
 0xcc5   :  { %7085 = vmatpush3.msra.mxu1 %v4340_v59  ;;  %v4173_v32 = vpop.permute.xlu0 %4172 }
 0xcc6   :  { %7524 = vpow2.f32 %v4090_v15  ;;  %7070 = vmatprep.subr.mxu0 %v4173_v32 }
 0xcc7   :  { %v9576_v22 = vpop.eup %7504  ;;  %7071 = vmatpush3.msra.mxu0 %v4173_v32  ;;  %v4336_v49 = vpop.permute.xlu1 %4335 }
 0xcc8   :  { %v7507_v35 = vpop.eup %7506  ;;  %7073 = vmatmul.mubr.msk.f32.vlgmr.msra.gmra.mxu0 %vm880_vm2, %v4157_v30  ;;  %v4119_v12 = vsel %vm880_vm2, %v9576_v22, 0.0 }
 0xcc9   :  { %v9582_v39 = vpop.eup %7508  ;;  %4120 = vadd.xlane.f32.xlu0 %v4119_v12  ;;  %7075 = vmatprep.mubr.msk.f32.mxu0 %vm880_vm2, %v4158_v56  ;;  %v4338_v36 = vpop.permute.xlu0 %4337  ;;  %v4160_v54 = vmul.f32 %v7507_v35, %v9488_v21 }
 0xcca   :  { %v7511_v20 = vpop.eup %7510  ;;  %7086 = vmatprep.subr.mxu1 %v4338_v36  ;;  %v4116_v19 = vsel %vm880_vm2, %v9582_v39, 0.0 }
 0xccb   :  { %v9588_v31 = vpop.eup %7512  ;;  %4117 = vadd.xlane.f32.xlu1 %v4116_v19  ;;  %7087 = vmatpush3.msra.mxu1 %v4338_v36  ;;  %v4161_v37 = vmul.f32 %v7511_v20, %v9494_v1 }
 0xccc   :  { %v7515_v61 = vpop.eup %7514  ;;  %7076 = vmatmul.mubr.msk.f32.gmra.mxu0 %vm880_vm2, %v4159_v47  ;;  %7088 = vmatprep.subr.mxu1 %v4336_v49  ;;  %v4125_v26 = vsel %vm880_vm2, %v9588_v31, 0.0 }
 0xccd   :  { %v9594_v40 = vpop.eup %7516  ;;  %4126 = vadd.xlane.f32.xlu0 %v4125_v26  ;;  %7078 = vmatprep.mubr.msk.f32.mxu0 %vm880_vm2, %v4160_v54  ;;  %v4162_v5 = vmul.f32 %v7515_v61, %v9504_v34  ;;  %v4332_v14 = vpop.permute.xlu0 %4331 }
 0xcce   :  { %v7519_v4 = vpop.eup %7518  ;;  %7089 = vmatpush3.msra.mxu1 %v4336_v49  ;;  %v4122_v45 = vsel %vm880_vm2, %v9594_v40, 0.0 }
 0xccf   :  { %v9600_v21 = vpop.eup %7520  ;;  %4123 = vadd.xlane.f32.xlu1 %v4122_v45  ;;  %v4163_v1 = vmul.f32 %v7519_v4, %v9508_v51 }
 0xcd0   :  { %7079 = vmatmul.mubr.msk.f32.gmra.mxu0 %vm880_vm2, %v4161_v37  ;;  %v4131_v60 = vsel %vm880_vm2, %v9600_v21, 0.0 }
 0xcd1   :  { %v9606_v28 = vpop.eup %7522  ;;  %4132 = vadd.xlane.f32.xlu0 %v4131_v60  ;;  %7081 = vmatprep.mubr.msk.f32.mxu0 %vm880_vm2, %v4162_v5 }
 0xcd2   :  { %v4128_v57 = vsel %vm880_vm2, %v9606_v28, 0.0 }
 0xcd3   :  { %v9612_v38 = vpop.eup %7524  ;;  %4129 = vadd.xlane.f32.xlu1 %v4128_v57 }
 0xcd4   :  { %7082 = vmatmul.mubr.msk.f32.gmra.mxu0 %vm880_vm2, %v4163_v1  ;;  %v4137_v34 = vsel %vm880_vm2, %v9612_v38, 0.0 }
 0xcd5   :  { %4138 = vadd.xlane.f32.xlu0 %v4137_v34 }
 0xceb   :  { %4327 = vrot.lane.b32.xlu0 %v8017_v42, %s7657_s0 }
 0xcef   :  { %4479 = vrot.lane.b32.xlu0 %v7643_v24, %s7651_s21  ;;  %v9658_v24 = vld [vmem:[%s10427_s3] sm:$0xff] }
 0xcf8   :  { %v4040_v18 = vpop.xlane.xlu1 %4039 }
 0xcf9   :  { %v4058_v51 = vsub.f32 %v9564_v3, %v4040_v18 }
 0xcfb   :  { %v4088_v13 = vmul.f32 1.442695, %v4058_v51 }
 0xcfc   :  { %v4334_v46 = vpop.permute.xlu1 %4333 }
 0xcfd   :  { %7526 = vpow2.f32 %v4088_v13  ;;  %7090 = vmatprep.subr.mxu1 %v4334_v46 }
 0xcfe   :  { %7091 = vmatpush3.msra.mxu1 %v4334_v46 }
 0xcff   :  { %7092 = vmatprep.subr.mxu1 %v4332_v14 }
 0xd00   :  { %v4330_v7 = vpop.permute.xlu1 %4329  ;;  %7093 = vmatpush3.msra.mxu1 %v4332_v14 }
 0xd01   :  { %7094 = vmatprep.subr.mxu1 %v4330_v7 }
 0xd02   :  { %7095 = vmatpush3.msra.mxu1 %v4330_v7 }
 0xd0a   :  { %v9624_v42 = vpop.eup %7526 }
 0xd0b   :  { %v4134_v17 = vsel %vm880_vm2, %v9624_v42, 0.0 }
 0xd0c   :  { %4135 = vadd.xlane.f32.xlu1 %v4134_v17  ;;  %v10512_v17 = vld [vmem:[#allocation4_spill] sm:$0xff] }
 0xd1d   :  { %4325 = vrot.lane.b32.xlu1 %v7977_v9, %s7657_s0 }
 0xd52   :  { %v4121_v3 = vpop.xlane.xlu0 %4120 }
 0xd54   :  { %v4118_v63 = vpop.xlane.xlu1 %4117 }
 0xd55   :  { %7528 = vrcp.f32 %v4118_v63 }
 0xd56   :  { %v4127_v10 = vpop.xlane.xlu0 %4126  ;;  %7530 = vrcp.f32 %v4121_v3 }
 0xd58   :  { %v4124_v32 = vpop.xlane.xlu1 %4123 }
 0xd59   :  { %7532 = vrcp.f32 %v4124_v32 }
 0xd5a   :  { %v4133_v55 = vpop.xlane.xlu0 %4132  ;;  %7534 = vrcp.f32 %v4127_v10 }
 0xd5c   :  { %v4130_v30 = vpop.xlane.xlu1 %4129 }
 0xd5d   :  { %7536 = vrcp.f32 %v4130_v30 }
 0xd5e   :  { %v4139_v27 = vpop.xlane.xlu0 %4138  ;;  %7538 = vrcp.f32 %v4133_v55 }
 0xd5f   :  { %7540 = vrcp.f32 %v4139_v27  ;;  %v10513_v27 = vld [vmem:[#allocation2_spill] sm:$0xff] }
 0xd62   :  { %v7529_v0 = vpop.eup %7528  ;;  %v4328_v59 = vpop.permute.xlu0 %4327 }
 0xd63   :  { %7096 = vmatprep.subr.mxu1 %v4328_v59  ;;  %v4164_v52 = vmul.f32 %v7529_v0, %v9582_v39  ;;  %v7531_v47 = vpop.eup %7530 }
 0xd64   :  { %7097 = vmatpush3.msra.mxu1 %v4328_v59  ;;  %v4165_v61 = vmul.f32 %v7531_v47, %v9576_v22 }
 0xd65   :  { %7100 = vmatprep.mubr.msk.f32.mxu1 %vm880_vm2, %v4164_v52 }
 0xd66   :  { %v4480_v15 = vpop.permute.xlu0 %4479  ;;  %v7533_v49 = vpop.eup %7532 }
 0xd67   :  { %7112 = vmatprep.subr.mxu0 %v4480_v15  ;;  %v7535_v26 = vpop.eup %7534  ;;  %v4166_v4 = vmul.f32 %v7533_v49, %v9594_v40 }
 0xd68   :  { %7113 = vmatpush3.msra.mxu0 %v4480_v15  ;;  %v4167_v37 = vmul.f32 %v7535_v26, %v9588_v31  ;;  %v10511_v31 = vld [vmem:[#allocation18_spill] sm:$0xff]  ;;  %v10514_v15 = vld [vmem:[#allocation8_spill] sm:$0xff] }
 0xd6a   :  { %v7537_v45 = vpop.eup %7536 }
 0xd6b   :  { %v7539_v5 = vpop.eup %7538  ;;  %v4168_v60 = vmul.f32 %v7537_v45, %v9606_v28  ;;  %v4693_v28 = vsub.s32 4, %v10511_v31 }
 0xd6c   :  { %v7541_v22 = vpop.eup %7540  ;;  %v4169_v57 = vmul.f32 %v7539_v5, %v9600_v21 }
 0xd6d   :  { %v4171_v34 = vmul.f32 %v7541_v22, %v9612_v38  ;;  %v9661_v21 = vrot.slane %v9658_v24, %v4693_v28  ;;  %v10520_v22 = vld [vmem:[#allocation14_spill] sm:$0xff] }
 0xd88   :  { %v7074_v11 = vpop.f32.mrf.mxu0 }
 0xd8a   :  { %v4286_v9 = vpop.f32.mrf.mxu0 }
 0xd8b   :  { %7114 = vmatprep.mubr.msk.f32.mxu0 %vm565_vm1, %v4286_v9 }
 0xd8c   :  { %v7077_v56 = vpop.f32.mrf.mxu0  ;;  %7115 = vmatmul.mubr.msk.f32.vlgmr.msra.gmra.mxu0 %vm565_vm1, %v7074_v11  ;;  %v10515_v11 = vld [vmem:[#allocation28_spill] sm:$0xff] }
 0xd8e   :  { %v4296_v35 = vpop.f32.mrf.mxu0 }
 0xd8f   :  { %7117 = vmatprep.mubr.msk.f32.mxu0 %vm565_vm1, %v4296_v35 }
 0xd90   :  { %v7080_v12 = vpop.f32.mrf.mxu0  ;;  %7118 = vmatmul.mubr.msk.f32.gmra.mxu0 %vm565_vm1, %v7077_v56 }
 0xd92   :  { %v4306_v39 = vpop.f32.mrf.mxu0 }
 0xd93   :  { %7120 = vmatprep.mubr.msk.f32.mxu0 %vm565_vm1, %v4306_v39 }
 0xd94   :  { %v7083_v36 = vpop.f32.mrf.mxu0  ;;  %7121 = vmatmul.mubr.msk.f32.gmra.mxu0 %vm565_vm1, %v7080_v12  ;;  %v10517_v12 = vld [vmem:[#allocation6_spill] sm:$0xff] }
 0xd95   :  { %v4136_v20 = vpop.xlane.xlu1 %4135 }
 0xd96   :  { %7542 = vrcp.f32 %v4136_v20  ;;  %v4316_v19 = vpop.f32.mrf.mxu0 }
 0xd97   :  { %7123 = vmatprep.mubr.msk.f32.mxu0 %vm565_vm1, %v4316_v19 }
 0xd98   :  { %7124 = vmatmul.mubr.msk.f32.gmra.mxu0 %vm565_vm1, %v7083_v36 }
 0xd99   :  { %v4326_v54 = vpop.permute.xlu1 %4325 }
 0xd9a   :  { %7098 = vmatprep.subr.mxu1 %v4326_v54 }
 0xd9b   :  { %7099 = vmatpush3.msra.mxu1 %v4326_v54  ;;  %v10518_v54 = vld [vmem:[#allocation11_spill] sm:$0xff] }
 0xd9c   :  { %7101 = vmatmul.mubr.msk.f32.vlgmr.msra.gmra.mxu1 %vm880_vm2, %v4165_v61 }
 0xd9d   :  { %7103 = vmatprep.mubr.msk.f32.mxu1 %vm880_vm2, %v4166_v4  ;;  %v10519_v4 = vld [vmem:[#allocation9_spill] sm:$0xff] }
 0xda0   :  { %7104 = vmatmul.mubr.msk.f32.gmra.mxu1 %vm880_vm2, %v4167_v37 }
 0xda1   :  { %7106 = vmatprep.mubr.msk.f32.mxu1 %vm880_vm2, %v4168_v60 }
 0xda3   :  { %v7543_v1 = vpop.eup %7542 }
 0xda4   :  { %7107 = vmatmul.mubr.msk.f32.gmra.mxu1 %vm880_vm2, %v4169_v57  ;;  %v4170_v40 = vmul.f32 %v7543_v1, %v9624_v42 }
 0xda6   :  { %7109 = vmatprep.mubr.msk.f32.mxu1 %vm880_vm2, %v4170_v40  ;;  %v10521_v40 = vld [vmem:[#allocation13_spill] sm:$0xff] }
 0xda8   :  { %7110 = vmatmul.mubr.msk.f32.gmra.mxu1 %vm880_vm2, %v4171_v34 }
 0xe4c   :  { %v7116_v18 = vpop.f32.mrf.mxu0 }
 0xe4d   :  { %v4676_v51 = vadd.f32 %v7116_v18, %v9460_v23 }
 0xe4e   :  { %v4596_v13 = vpop.f32.mrf.mxu0 }
 0xe4f   :  { %v4696_v46 = vadd.f32 %v9661_v21, %v4676_v51  ;;  %v4675_v38 = vadd.f32 %v4596_v13, %v9464_v43 }
 0xe50   :  { %v7119_v14 = vpop.f32.mrf.mxu0 }
 0xe51   :  { %v4695_v7 = vadd.f32 %v9661_v21, %v4675_v38  ;;  %v4678_v42 = vadd.f32 %v7119_v14, %v9472_v62  ;;  %v9669_v3 = vadd.f32 %v4696_v46, %v10512_v17 }
 0xe52   :  { %v4606_v63 = vpop.f32.mrf.mxu0 }
 0xe53   :  { %v4698_v10 = vadd.f32 %v9661_v21, %v4678_v42  ;;  %v4677_v55 = vadd.f32 %v4606_v63, %v9478_v25  ;;  %v4730_v23 = vsel %vm90_vm0, %v9669_v3, 0.0  ;;  %v9676_v0 = vadd.f32 %v4695_v7, %v10513_v27  ;;  %v10516_v25 = vld [vmem:[#allocation19_spill] sm:$0xff] }
 0xe54   :  { %4731 = vadd.xlane.f32.xlu0 %v4730_v23  ;;  %v7122_v43 = vpop.f32.mrf.mxu0  ;;  %v2545_v9 = vadd.f32 %v10516_v25, %v10515_v11 }
 0xe55   :  { %v4697_v59 = vadd.f32 %v9661_v21, %v4677_v55  ;;  %v4680_v62 = vadd.f32 %v7122_v43, %v9484_v33  ;;  %v4727_v52 = vsel %vm90_vm0, %v9676_v0, 0.0  ;;  %v9683_v32 = vadd.f32 %v4698_v10, %v10514_v15 }
 0xe56   :  { %4728 = vadd.xlane.f32.xlu1 %v4727_v52  ;;  %v4616_v30 = vpop.f32.mrf.mxu0  ;;  %v3632_v33 = vadd.f32 %v9500_v8, %v2545_v9 }
 0xe57   :  { %v4700_v56 = vadd.f32 %v9661_v21, %v4680_v62  ;;  %v4679_v35 = vadd.f32 %v4616_v30, %v9492_v53  ;;  %v9690_v39 = vadd.f32 %v4697_v59, %v10517_v12  ;;  %v4736_v20 = vsel %vm90_vm0, %v9683_v32, 0.0  ;;  %v10522_v62 = vld [vmem:[#allocation5_spill] sm:$0xff]  ;;  %v10523_v30 = vld [vmem:[#allocation3_spill] sm:$0xff] }
 0xe58   :  { %v7125_v36 = vpop.f32.mrf.mxu0 }
 0xe59   :  { %v4699_v19 = vadd.f32 %v9661_v21, %v4679_v35  ;;  %v4682_v47 = vadd.f32 %v7125_v36, %v9496_v41  ;;  %v4733_v49 = vsel %vm90_vm0, %v9690_v39, 0.0  ;;  %v9700_v61 = vadd.f32 %v4700_v56, %v10518_v54  ;;  %v10524_v36 = vld [vmem:[#allocation10_spill] sm:$0xff] }
 0xe5a   :  { %4737 = vadd.xlane.f32.xlu1 %v4736_v20  ;;  %4734 = vadd.xlane.f32.xlu0 %v4733_v49  ;;  %v4626_v53 = vpop.f32.mrf.mxu0 }
 0xe5b   :  { %v4702_v26 = vadd.f32 %v9661_v21, %v4682_v47  ;;  %v4681_v8 = vadd.f32 %v4626_v53, %v3632_v33  ;;  %v9704_v45 = vadd.f32 %v4699_v19, %v10519_v4  ;;  %v4742_v41 = vsel %vm90_vm0, %v9700_v61, 0.0 }
 0xe5c   :  { %v7102_v37 = vpop.f32.mrf.mxu1 }
 0xe5d   :  { %v4701_v5 = vadd.f32 %v9661_v21, %v4681_v8  ;;  %v4739_v60 = vsel %vm90_vm0, %v9704_v45, 0.0  ;;  %v9712_v57 = vadd.f32 %v4702_v26, %v10520_v22  ;;  %v10525_v26 = vld [vmem:[#allocation7_spill] sm:$0xff] }
 0xe5e   :  { %v4439_v1 = vpop.f32.mrf.mxu1  ;;  %4743 = vadd.xlane.f32.xlu1 %v4742_v41  ;;  %4740 = vadd.xlane.f32.xlu0 %v4739_v60  ;;  %v10526_v60 = vld [vmem:[#allocation15_spill] sm:$0xff] }
 0xe5f   :  { %7126 = vmatprep.mubr.msk.f32.mxu0 %vm565_vm1, %v4439_v1  ;;  %v9716_v34 = vadd.f32 %v4701_v5, %v10521_v40  ;;  %v4748_v18 = vsel %vm90_vm0, %v9712_v57, 0.0 }
 0xe60   :  { %v7105_v28 = vpop.f32.mrf.mxu1  ;;  %7127 = vmatmul.mubr.msk.f32.gmra.mxu0 %vm565_vm1, %v7102_v37 }
 0xe61   :  { %v4745_v51 = vsel %vm90_vm0, %v9716_v34, 0.0 }
 0xe62   :  { %v4449_v13 = vpop.f32.mrf.mxu1  ;;  %4749 = vadd.xlane.f32.xlu1 %v4748_v18  ;;  %4746 = vadd.xlane.f32.xlu0 %v4745_v51 }
 0xe63   :  { %7129 = vmatprep.mubr.msk.f32.mxu0 %vm565_vm1, %v4449_v13  ;;  %v10527_v13 = vld [vmem:[#allocation12_spill] sm:$0xff] }
 0xe64   :  { %v7108_v46 = vpop.f32.mrf.mxu1  ;;  %7130 = vmatmul.mubr.msk.f32.gmra.mxu0 %vm565_vm1, %v7105_v28 }
 0xe66   :  { %v4459_v38 = vpop.f32.mrf.mxu1 }
 0xe67   :  { %7132 = vmatprep.mubr.msk.f32.mxu0 %vm565_vm1, %v4459_v38 }
 0xe68   :  { %v7111_v14 = vpop.f32.mrf.mxu1  ;;  %7133 = vmatmul.mubr.msk.f32.gmra.mxu0 %vm565_vm1, %v7108_v46 }
 0xe6a   :  { %v4469_v7 = vpop.f32.mrf.mxu1 }
 0xe6b   :  { %7135 = vmatprep.mubr.msk.f32.mxu0 %vm565_vm1, %v4469_v7 }
 0xe6c   :  { %7136 = vmatmul.mubr.msk.f32.gmra.mxu0 %vm565_vm1, %v7111_v14 }
 0xedd   :  { %v4732_v15 = vpop.xlane.xlu0 %4731 }
 0xedf   :  { %v4729_v63 = vpop.xlane.xlu1 %4728 }
 0xee3   :  { %v4735_v19 = vpop.xlane.xlu0 %4734 }
 0xee7   :  { %v4741_v14 = vpop.xlane.xlu0 %4740 }
 0xf20   :  { %v7128_v42 = vpop.f32.mrf.mxu0 }
 0xf21   :  { %v4684_v17 = vadd.f32 %v7128_v42, %v9512_v16 }
 0xf22   :  { %v4636_v10 = vpop.f32.mrf.mxu0 }
 0xf23   :  { %v4704_v55 = vadd.f32 %v9661_v21, %v4684_v17  ;;  %v4683_v23 = vadd.f32 %v4636_v10, %v9520_v50  ;;  %v4738_v50 = vpop.xlane.xlu1 %4737  ;;  %v10528_v17 = vld [vmem:[#allocation17_spill] sm:$0xff] }
 0xf24   :  { %v7131_v27 = vpop.f32.mrf.mxu0  ;;  %v4778_v1 = vmul.f32 0.03125, %v4738_v50 }
 0xf25   :  { %v4703_v43 = vadd.f32 %v9661_v21, %v4683_v23  ;;  %v4686_v59 = vadd.f32 %v7131_v27, %v9524_v48  ;;  %v9735_v52 = vadd.f32 %v4704_v55, %v10522_v62  ;;  %v10529_v23 = vld [vmem:[#allocation16_spill] sm:$0xff] }
 0xf26   :  { %v4646_v11 = vpop.f32.mrf.mxu0  ;;  %v9787_v10 = vsub.f32 %v9683_v32, %v4778_v1 }
 0xf27   :  { %v4706_v25 = vadd.f32 %v9661_v21, %v4686_v59  ;;  %v4685_v16 = vadd.f32 %v4646_v11, %v9528_v58  ;;  %v4754_v9 = vsel %vm90_vm0, %v9735_v52, 0.0  ;;  %v9742_v56 = vadd.f32 %v4703_v43, %v10523_v30  ;;  %v4744_v40 = vpop.xlane.xlu1 %4743 }
 0xf28   :  { %4755 = vadd.xlane.f32.xlu1 %v4754_v9  ;;  %v7134_v35 = vpop.f32.mrf.mxu0  ;;  %v4776_v58 = vmul.f32 0.03125, %v4732_v15  ;;  %v4779_v59 = vmul.f32 0.03125, %v4741_v14  ;;  %v4747_v15 = vpop.xlane.xlu0 %4746  ;;  %v4810_v9 = vmul.f32 %v9787_v10, %v9787_v10 }
 0xf29   :  { %v4705_v48 = vadd.f32 %v9661_v21, %v4685_v16  ;;  %v4688_v12 = vadd.f32 %v7134_v35, %v9532_v6  ;;  %v4751_v33 = vsel %vm90_vm0, %v9742_v56, 0.0  ;;  %v9749_v20 = vadd.f32 %v4706_v25, %v10524_v36 }
 0xf2a   :  { %4752 = vadd.xlane.f32.xlu0 %v4751_v33  ;;  %v4656_v47 = vpop.f32.mrf.mxu0  ;;  %v4775_v6 = vmul.f32 0.03125, %v4729_v63  ;;  %v4781_v30 = vmul.f32 0.03125, %v4747_v15 }
 0xf2b   :  { %v4708_v49 = vadd.f32 %v9661_v21, %v4688_v12  ;;  %v4687_v54 = vadd.f32 %v4656_v47, %v9536_v44  ;;  %v4760_v53 = vsel %vm90_vm0, %v9749_v20, 0.0  ;;  %v9756_v8 = vadd.f32 %v4705_v48, %v10525_v26  ;;  %v4976_v26 = vld [vmem:[%s10426_s1 + $0x18] sm:$0xff] }
 0xf2c   :  { %4761 = vadd.xlane.f32.xlu1 %v4760_v53  ;;  %v7137_v4 = vpop.f32.mrf.mxu0  ;;  %v9766_v44 = vsub.f32 %v9669_v3, %v4776_v58  ;;  %v9776_v38 = vsub.f32 %v9676_v0, %v4775_v6  ;;  %v4777_v3 = vmul.f32 0.03125, %v4735_v19  ;;  %v4780_v0 = vmul.f32 0.03125, %v4744_v40  ;;  %v4977_v53 = vld [vmem:[%s10426_s1 + $0x28] sm:$0xff] }
 0xf2d   :  { %v4707_v37 = vadd.f32 %v9661_v21, %v4687_v54  ;;  %v4690_v5 = vadd.f32 %v7137_v4, %v9540_v29  ;;  %v4757_v41 = vsel %vm90_vm0, %v9756_v8, 0.0  ;;  %v9763_v22 = vadd.f32 %v4708_v49, %v10526_v60  ;;  %v4978_v54 = vld [vmem:[%s10426_s1 + $0x38] sm:$0xff]  ;;  %v4975_v6 = vld [vmem:[%s10426_s1 + $0x8] sm:$0xff] }
 0xf2e   :  { %4758 = vadd.xlane.f32.xlu0 %v4757_v41  ;;  %v4666_v28 = vpop.f32.mrf.mxu0  ;;  %v9795_v43 = vsub.f32 %v9690_v39, %v4777_v3  ;;  %v4807_v32 = vmul.f32 %v9776_v38, %v9776_v38  ;;  %v9802_v11 = vsub.f32 %v9700_v61, %v4780_v0  ;;  %v9808_v39 = vsub.f32 %v9704_v45, %v4779_v59 }
 0xf2f   :  { %v4710_v18 = vadd.f32 %v9661_v21, %v4690_v5  ;;  %v4689_v51 = vadd.f32 %v4666_v28, %v9542_v2  ;;  %v4766_v29 = vsel %vm90_vm0, %v9763_v22, 0.0  ;;  %v9773_v46 = vadd.f32 %v4707_v37, %v10527_v13  ;;  %7138 = vmatprep.subr.mxu1 %v4978_v54 }
 0xf30   :  { %4767 = vadd.xlane.f32.xlu1 %v4766_v29  ;;  %v4808_v2 = vmul.f32 %v9766_v44, %v9766_v44  ;;  %v4823_v50 = vsel %vm90_vm0, %v4807_v32, 0.0  ;;  %v4809_v35 = vmul.f32 %v9795_v43, %v9795_v43  ;;  %v4832_v48 = vsel %vm90_vm0, %v4810_v9, 0.0  ;;  %7139 = vmatpush3.msra.mxu1 %v4978_v54 }
 0xf31   :  { %v4709_v7 = vadd.f32 %v9661_v21, %v4689_v51  ;;  %v4763_v42 = vsel %vm90_vm0, %v9773_v46, 0.0  ;;  %v9782_v63 = vadd.f32 %v4710_v18, %v10528_v17  ;;  %v4750_v21 = vpop.xlane.xlu1 %4749  ;;  %v4812_v12 = vmul.f32 %v9802_v11, %v9802_v11  ;;  %7140 = vmatprep.subr.mxu1 %v4977_v53 }
 0xf32   :  { %4764 = vadd.xlane.f32.xlu0 %v4763_v42  ;;  %v4782_v25 = vmul.f32 0.03125, %v4750_v21  ;;  %v4826_v16 = vsel %vm90_vm0, %v4808_v2, 0.0  ;;  %v9820_v33 = vsub.f32 %v9716_v34, %v4781_v30  ;;  %v4829_v45 = vsel %vm90_vm0, %v4809_v35, 0.0  ;;  %7141 = vmatpush3.msra.mxu1 %v4977_v53 }
 0xf33   :  { %v4772_v55 = vsel %vm90_vm0, %v9782_v63, 0.0  ;;  %v9792_v27 = vadd.f32 %v4709_v7, %v10529_v23  ;;  %v4811_v36 = vmul.f32 %v9808_v39, %v9808_v39  ;;  %v4838_v58 = vsel %vm90_vm0, %v4812_v12, 0.0  ;;  %7142 = vmatprep.subr.mxu1 %v4976_v26 }
 0xf34   :  { %4773 = vadd.xlane.f32.xlu1 %v4772_v55  ;;  %v9814_v61 = vsub.f32 %v9712_v57, %v4782_v25  ;;  %v4813_v47 = vmul.f32 %v9820_v33, %v9820_v33  ;;  %7143 = vmatpush3.msra.mxu1 %v4976_v26 }
 0xf35   :  { %v4769_v62 = vsel %vm90_vm0, %v9792_v27, 0.0  ;;  %v4835_v19 = vsel %vm90_vm0, %v4811_v36, 0.0  ;;  %7144 = vmatprep.subr.mxu1 %v4975_v6 }
 0xf36   :  { %4770 = vadd.xlane.f32.xlu0 %v4769_v62  ;;  %v4814_v57 = vmul.f32 %v9814_v61, %v9814_v61  ;;  %v4841_v49 = vsel %vm90_vm0, %v4813_v47, 0.0  ;;  %7145 = vmatpush3.msra.mxu1 %v4975_v6 }
 0xf38   :  { %4827 = vadd.xlane.f32.xlu1 %v4826_v16  ;;  %v4844_v34 = vsel %vm90_vm0, %v4814_v57, 0.0 }
 0xf3a   :  { %4824 = vadd.xlane.f32.xlu0 %v4823_v50 }
 0xf3c   :  { %4833 = vadd.xlane.f32.xlu1 %v4832_v48 }
 0xf3e   :  { %4830 = vadd.xlane.f32.xlu0 %v4829_v45 }
 0xf40   :  { %4839 = vadd.xlane.f32.xlu1 %v4838_v58 }
 0xf42   :  { %4836 = vadd.xlane.f32.xlu0 %v4835_v19 }
 0xf44   :  { %4845 = vadd.xlane.f32.xlu1 %v4844_v34 }
 0xf46   :  { %4842 = vadd.xlane.f32.xlu0 %v4841_v49 }
 0xfb1   :  { %v4756_v4 = vpop.xlane.xlu1 %4755 }
 0xfb2   :  { %v4784_v37 = vmul.f32 0.03125, %v4756_v4 }
 0xfb3   :  { %v4753_v5 = vpop.xlane.xlu0 %4752 }
 0xfb4   :  { %v9846_v41 = vsub.f32 %v9735_v52, %v4784_v37  ;;  %v4783_v60 = vmul.f32 0.03125, %v4753_v5 }
 0xfb5   :  { %v4762_v1 = vpop.xlane.xlu1 %4761 }
 0xfb6   :  { %v9849_v40 = vsub.f32 %v9742_v56, %v4783_v60  ;;  %v4786_v28 = vmul.f32 0.03125, %v4762_v1  ;;  %v4816_v18 = vmul.f32 %v9846_v41, %v9846_v41 }
 0xfb7   :  { %v4759_v51 = vpop.xlane.xlu0 %4758 }
 0xfb8   :  { %v9854_v29 = vsub.f32 %v9749_v20, %v4786_v28  ;;  %v4785_v13 = vmul.f32 0.03125, %v4759_v51  ;;  %v4850_v14 = vsel %vm90_vm0, %v4816_v18, 0.0  ;;  %v4815_v52 = vmul.f32 %v9849_v40, %v9849_v40 }
 0xfb9   :  { %v4768_v3 = vpop.xlane.xlu1 %4767  ;;  %4851 = vadd.xlane.f32.xlu1 %v4850_v14  ;;  %v4937_v18 = vsub.s32 2, %v10511_v31 }
 0xfba   :  { %v9860_v7 = vsub.f32 %v9756_v8, %v4785_v13  ;;  %v4788_v56 = vmul.f32 0.03125, %v4768_v3  ;;  %v4847_v42 = vsel %vm90_vm0, %v4815_v52, 0.0  ;;  %v4818_v17 = vmul.f32 %v9854_v29, %v9854_v29 }
 0xfbb   :  { %v4765_v2 = vpop.xlane.xlu0 %4764  ;;  %4848 = vadd.xlane.f32.xlu0 %v4847_v42  ;;  %v4957_v42 = vsub.s32 3, %v10511_v31 }
 0xfbc   :  { %v9866_v20 = vsub.f32 %v9763_v22, %v4788_v56  ;;  %v4787_v0 = vmul.f32 0.03125, %v4765_v2  ;;  %v4856_v55 = vsel %vm90_vm0, %v4818_v17, 0.0  ;;  %v4817_v23 = vmul.f32 %v9860_v7, %v9860_v7 }
 0xfbd   :  { %4857 = vadd.xlane.f32.xlu1 %v4856_v55  ;;  %v4774_v8 = vpop.xlane.xlu1 %4773  ;;  %v9895_v56 = vrot.slane %v9658_v24, %v4937_v18 }
 0xfbe   :  { %v9872_v21 = vsub.f32 %v9773_v46, %v4787_v0  ;;  %v4790_v59 = vmul.f32 0.03125, %v4774_v8  ;;  %v4853_v62 = vsel %vm90_vm0, %v4817_v23, 0.0  ;;  %v4820_v32 = vmul.f32 %v9866_v20, %v9866_v20 }
 0xfbf   :  { %4854 = vadd.xlane.f32.xlu0 %v4853_v62  ;;  %v4771_v22 = vpop.xlane.xlu0 %4770  ;;  %v9902_v8 = vrot.slane %v9658_v24, %v4957_v42 }
 0xfc0   :  { %v9878_v15 = vsub.f32 %v9782_v63, %v4790_v59  ;;  %v4789_v25 = vmul.f32 0.03125, %v4771_v22  ;;  %v4862_v16 = vsel %vm90_vm0, %v4820_v32, 0.0  ;;  %v4819_v9 = vmul.f32 %v9872_v21, %v9872_v21 }
 0xfc1   :  { %4863 = vadd.xlane.f32.xlu1 %v4862_v16  ;;  %v4828_v46 = vpop.xlane.xlu1 %4827 }
 0xfc2   :  { %v9884_v30 = vsub.f32 %v9792_v27, %v4789_v25  ;;  %v4872_v50 = vmul.f32 0.03125, %v4828_v46  ;;  %v4859_v35 = vsel %vm90_vm0, %v4819_v9, 0.0  ;;  %v4822_v48 = vmul.f32 %v9878_v15, %v9878_v15 }
 0xfc3   :  { %4860 = vadd.xlane.f32.xlu0 %v4859_v35  ;;  %v4825_v63 = vpop.xlane.xlu0 %4824 }
 0xfc4   :  { %v4888_v12 = vadd.f32 1e-05, %v4872_v50  ;;  %v4871_v45 = vmul.f32 0.03125, %v4825_v63  ;;  %v4868_v36 = vsel %vm90_vm0, %v4822_v48, 0.0  ;;  %v4821_v58 = vmul.f32 %v9884_v30, %v9884_v30 }
 0xfc5   :  { %4869 = vadd.xlane.f32.xlu1 %v4868_v36  ;;  %v4834_v57 = vpop.xlane.xlu1 %4833 }
 0xfc6   :  { %7544 = vrsqrt.f32 %v4888_v12  ;;  %v4887_v27 = vadd.f32 1e-05, %v4871_v45  ;;  %v4874_v19 = vmul.f32 0.03125, %v4834_v57  ;;  %v4865_v47 = vsel %vm90_vm0, %v4821_v58, 0.0 }
 0xfc7   :  { %4866 = vadd.xlane.f32.xlu0 %v4865_v47  ;;  %v4831_v34 = vpop.xlane.xlu0 %4830  ;;  %v5622_v47 = vld [vmem:[%s10428_s2 + $0x70] sm:$0xff] }
 0xfc8   :  { %7546 = vrsqrt.f32 %v4887_v27  ;;  %v4890_v49 = vadd.f32 1e-05, %v4874_v19  ;;  %v4873_v54 = vmul.f32 0.03125, %v4831_v34  ;;  %v5621_v34 = vld [vmem:[%s10428_s2 + $0x68] sm:$0xff] }
 0xfc9   :  { %v4840_v53 = vpop.xlane.xlu1 %4839 }
 0xfca   :  { %7548 = vrsqrt.f32 %v4890_v49  ;;  %v4889_v26 = vadd.f32 1e-05, %v4873_v54  ;;  %v4876_v6 = vmul.f32 0.03125, %v4840_v53  ;;  %v5620_v54 = vld [vmem:[%s10428_s2 + $0x60] sm:$0xff] }
 0xfcb   :  { %v4837_v4 = vpop.xlane.xlu0 %4836 }
 0xfcc   :  { %7550 = vrsqrt.f32 %v4889_v26  ;;  %v4892_v37 = vadd.f32 1e-05, %v4876_v6  ;;  %v4875_v5 = vmul.f32 0.03125, %v4837_v4  ;;  %v5619_v6 = vld [vmem:[%s10428_s2 + $0x58] sm:$0xff] }
 0xfcd   :  { %v4846_v60 = vpop.xlane.xlu1 %4845 }
 0xfce   :  { %7552 = vrsqrt.f32 %v4892_v37  ;;  %v4891_v1 = vadd.f32 1e-05, %v4875_v5  ;;  %v4878_v28 = vmul.f32 0.03125, %v4846_v60  ;;  %v5618_v60 = vld [vmem:[%s10428_s2 + $0x50] sm:$0xff] }
 0xfcf   :  { %v4843_v51 = vpop.xlane.xlu0 %4842 }
 0xfd0   :  { %7554 = vrsqrt.f32 %v4891_v1  ;;  %v4894_v13 = vadd.f32 1e-05, %v4878_v28  ;;  %v4877_v14 = vmul.f32 0.03125, %v4843_v51  ;;  %v5617_v51 = vld [vmem:[%s10428_s2 + $0x48] sm:$0xff] }
 0xfd2   :  { %7556 = vrsqrt.f32 %v4894_v13  ;;  %v4893_v52 = vadd.f32 1e-05, %v4877_v14 }
 0xfd3   :  { %v7545_v3 = vpop.eup %7544 }
 0xfd4   :  { %v4920_v17 = vmul.f32 %v7545_v3, %v9766_v44  ;;  %7558 = vrsqrt.f32 %v4893_v52  ;;  %v5616_v3 = vld [vmem:[%s10428_s2 + $0x40] sm:$0xff] }
 0xfd5   :  { %v7547_v2 = vpop.eup %7546 }
 0xfd6   :  { %v4919_v0 = vmul.f32 %v7547_v2, %v9776_v38  ;;  %v4940_v23 = vmul.f32 %v9895_v56, %v4920_v17 }
 0xfd7   :  { %v7549_v55 = vpop.eup %7548 }
 0xfd8   :  { %v4939_v59 = vmul.f32 %v9895_v56, %v4919_v0  ;;  %v4922_v62 = vmul.f32 %v7549_v55, %v9787_v10  ;;  %v9911_v16 = vadd.f32 %v9902_v8, %v4940_v23  ;;  %v5615_v0 = vld [vmem:[%s10428_s2 + $0x38] sm:$0xff] }
 0xfd9   :  { %v7551_v32 = vpop.eup %7550 }
 0xfda   :  { %v9907_v22 = vadd.f32 %v9902_v8, %v4939_v59  ;;  %v4921_v44 = vmul.f32 %v7551_v32, %v9795_v43  ;;  %v4942_v38 = vmul.f32 %v9895_v56, %v4922_v62  ;;  %v5614_v62 = vld [vmem:[%s10428_s2 + $0x30] sm:$0xff] }
 0xfdb   :  { %v7553_v25 = vpop.eup %7552 }
 0xfdc   :  { %7146 = vmatprep.mubr.msk.f32.mxu1 %vm90_vm0, %v9907_v22  ;;  %v4941_v9 = vmul.f32 %v9895_v56, %v4921_v44  ;;  %v4924_v46 = vmul.f32 %v7553_v25, %v9802_v11  ;;  %v9925_v48 = vadd.f32 %v9902_v8, %v4942_v38  ;;  %v5613_v38 = vld [vmem:[%s10428_s2 + $0x28] sm:$0xff] }
 0xfdd   :  { %v7555_v10 = vpop.eup %7554  ;;  %7147 = vmatmul.mubr.msk.f32.vlgmr.msra.gmra.mxu1 %vm90_vm0, %v9911_v16 }
 0xfde   :  { %v9921_v50 = vadd.f32 %v9902_v8, %v4941_v9  ;;  %v4923_v43 = vmul.f32 %v7555_v10, %v9808_v39  ;;  %v4944_v63 = vmul.f32 %v9895_v56, %v4924_v46  ;;  %v5612_v10 = vld [vmem:[%s10428_s2 + $0x20] sm:$0xff] }
 0xfdf   :  { %v7557_v35 = vpop.eup %7556 }
 0xfe0   :  { %7149 = vmatprep.mubr.msk.f32.mxu1 %vm90_vm0, %v9921_v50  ;;  %v4943_v11 = vmul.f32 %v9895_v56, %v4923_v43  ;;  %v4926_v12 = vmul.f32 %v7557_v35, %v9814_v61  ;;  %v9939_v58 = vadd.f32 %v9902_v8, %v4944_v63  ;;  %v5611_v63 = vld [vmem:[%s10428_s2 + $0x18] sm:$0xff] }
 0xfe1   :  { %v7559_v45 = vpop.eup %7558  ;;  %7150 = vmatmul.mubr.msk.f32.gmra.mxu1 %vm90_vm0, %v9925_v48 }
 0xfe2   :  { %v9935_v36 = vadd.f32 %v9902_v8, %v4943_v11  ;;  %v4925_v39 = vmul.f32 %v7559_v45, %v9820_v33  ;;  %v4946_v57 = vmul.f32 %v9895_v56, %v4926_v12  ;;  %v5623_v33 = vld [vmem:[%s10428_s2 + $0x78] sm:$0xff]  ;;  %v5610_v45 = vld [vmem:[%s10428_s2 + $0x10] sm:$0xff] }
 0xfe3   :  { %7170 = vmatprep.subr.mxu0 %v5623_v33 }
 0xfe4   :  { %7152 = vmatprep.mubr.msk.f32.mxu1 %vm90_vm0, %v9935_v36  ;;  %v4945_v27 = vmul.f32 %v9895_v56, %v4925_v39  ;;  %v9951_v19 = vadd.f32 %v9902_v8, %v4946_v57  ;;  %7171 = vmatpush3.msra.mxu0 %v5623_v33  ;;  %v5609_v33 = vld [vmem:[%s10428_s2 + $0x8] sm:$0xff] }
 0xfe5   :  { %7153 = vmatmul.mubr.msk.f32.gmra.mxu1 %vm90_vm0, %v9939_v58  ;;  %7172 = vmatprep.subr.mxu0 %v5622_v47 }
 0xfe6   :  { %v9948_v61 = vadd.f32 %v9902_v8, %v4945_v27  ;;  %7173 = vmatpush3.msra.mxu0 %v5622_v47 }
 0xfe7   :  { %7174 = vmatprep.subr.mxu0 %v5621_v34 }
 0xfe8   :  { %7155 = vmatprep.mubr.msk.f32.mxu1 %vm90_vm0, %v9948_v61  ;;  %7175 = vmatpush3.msra.mxu0 %v5621_v34 }
 0xfe9   :  { %7156 = vmatmul.mubr.msk.f32.gmra.mxu1 %vm90_vm0, %v9951_v19  ;;  %7176 = vmatprep.subr.mxu0 %v5620_v54 }
 0xfea   :  { %7177 = vmatpush3.msra.mxu0 %v5620_v54 }
 0xfeb   :  { %7178 = vmatprep.subr.mxu0 %v5619_v6 }
 0xfec   :  { %7179 = vmatpush3.msra.mxu0 %v5619_v6 }
 0xfed   :  { %7180 = vmatprep.subr.mxu0 %v5618_v60 }
 0xfee   :  { %7181 = vmatpush3.msra.mxu0 %v5618_v60 }
 0xfef   :  { %7182 = vmatprep.subr.mxu0 %v5617_v51 }
 0xff0   :  { %7183 = vmatpush3.msra.mxu0 %v5617_v51 }
 0xff1   :  { %7184 = vmatprep.subr.mxu0 %v5616_v3 }
 0xff2   :  { %7185 = vmatpush3.msra.mxu0 %v5616_v3 }
 0xff3   :  { %7186 = vmatprep.subr.mxu0 %v5615_v0 }
 0xff4   :  { %7187 = vmatpush3.msra.mxu0 %v5615_v0 }
 0xff5   :  { %7188 = vmatprep.subr.mxu0 %v5614_v62 }
 0xff6   :  { %7189 = vmatpush3.msra.mxu0 %v5614_v62 }
 0xff7   :  { %7190 = vmatprep.subr.mxu0 %v5613_v38 }
 0xff8   :  { %7191 = vmatpush3.msra.mxu0 %v5613_v38 }
 0xff9   :  { %7192 = vmatprep.subr.mxu0 %v5612_v10 }
 0xffa   :  { %7193 = vmatpush3.msra.mxu0 %v5612_v10 }
 0xffb   :  { %7194 = vmatprep.subr.mxu0 %v5611_v63 }
 0xffc   :  { %7195 = vmatpush3.msra.mxu0 %v5611_v63 }
 0xffd   :  { %7196 = vmatprep.subr.mxu0 %v5610_v45 }
 0xffe   :  { %7197 = vmatpush3.msra.mxu0 %v5610_v45 }
 0xfff   :  { %7198 = vmatprep.subr.mxu0 %v5609_v33 }
0x1000   :  { %7199 = vmatpush3.msra.mxu0 %v5609_v33 }
0x1042   :  { %v4852_v49 = vpop.xlane.xlu1 %4851 }
0x1043   :  { %v4880_v53 = vmul.f32 0.03125, %v4852_v49 }
0x1044   :  { %v4849_v26 = vpop.xlane.xlu0 %4848 }
0x1045   :  { %v4896_v4 = vadd.f32 1e-05, %v4880_v53  ;;  %v4879_v37 = vmul.f32 0.03125, %v4849_v26 }
0x1046   :  { %v4858_v5 = vpop.xlane.xlu1 %4857 }
0x1047   :  { %7560 = vrsqrt.f32 %v4896_v4  ;;  %v4895_v1 = vadd.f32 1e-05, %v4879_v37  ;;  %v4882_v28 = vmul.f32 0.03125, %v4858_v5 }
0x1048   :  { %v4855_v18 = vpop.xlane.xlu0 %4854 }
0x1049   :  { %7562 = vrsqrt.f32 %v4895_v1  ;;  %v4898_v13 = vadd.f32 1e-05, %v4882_v28  ;;  %v4881_v14 = vmul.f32 0.03125, %v4855_v18 }
0x104a   :  { %v4864_v52 = vpop.xlane.xlu1 %4863 }
0x104b   :  { %7564 = vrsqrt.f32 %v4898_v13  ;;  %v4897_v42 = vadd.f32 1e-05, %v4881_v14  ;;  %v4884_v17 = vmul.f32 0.03125, %v4864_v52 }
0x104c   :  { %v4861_v2 = vpop.xlane.xlu0 %4860 }
0x104d   :  { %7566 = vrsqrt.f32 %v4897_v42  ;;  %v4900_v55 = vadd.f32 1e-05, %v4884_v17  ;;  %v4883_v23 = vmul.f32 0.03125, %v4861_v2 }
0x104e   :  { %v4870_v59 = vpop.xlane.xlu1 %4869 }
0x104f   :  { %7568 = vrsqrt.f32 %v4900_v55  ;;  %v4899_v32 = vadd.f32 1e-05, %v4883_v23  ;;  %v4886_v44 = vmul.f32 0.03125, %v4870_v59 }
0x1050   :  { %v4867_v25 = vpop.xlane.xlu0 %4866 }
0x1051   :  { %7570 = vrsqrt.f32 %v4899_v32  ;;  %v4902_v9 = vadd.f32 1e-05, %v4886_v44  ;;  %v4885_v46 = vmul.f32 0.03125, %v4867_v25 }
0x1053   :  { %7572 = vrsqrt.f32 %v4902_v9  ;;  %v4901_v43 = vadd.f32 1e-05, %v4885_v46 }
0x1054   :  { %v7561_v35 = vpop.eup %7560 }
0x1055   :  { %7574 = vrsqrt.f32 %v4901_v43  ;;  %v4928_v11 = vmul.f32 %v7561_v35, %v9846_v41 }
0x1056   :  { %v7563_v12 = vpop.eup %7562 }
0x1057   :  { %v4927_v39 = vmul.f32 %v7563_v12, %v9849_v40  ;;  %v4948_v27 = vmul.f32 %v9895_v56, %v4928_v11  ;;  %v5608_v40 = vld [vmem:[%s10428_s2] sm:$0xff] }
0x1058   :  { %v7565_v57 = vpop.eup %7564  ;;  %7200 = vmatprep.subr.mxu0 %v5608_v40 }
0x1059   :  { %v4930_v41 = vmul.f32 %v7565_v57, %v9854_v29  ;;  %v4947_v47 = vmul.f32 %v9895_v56, %v4927_v39  ;;  %v10015_v26 = vadd.f32 %v9902_v8, %v4948_v27  ;;  %7201 = vmatpush3.msra.mxu0 %v5608_v40 }
0x105a   :  { %v7567_v34 = vpop.eup %7566 }
0x105b   :  { %v10011_v49 = vadd.f32 %v9902_v8, %v4947_v47  ;;  %v4929_v54 = vmul.f32 %v7567_v34, %v9860_v7  ;;  %v4950_v29 = vmul.f32 %v9895_v56, %v4930_v41 }
0x105c   :  { %v7569_v53 = vpop.eup %7568 }
0x105d   :  { %v4932_v6 = vmul.f32 %v7569_v53, %v9866_v20  ;;  %7158 = vmatprep.mubr.msk.f32.mxu1 %vm90_vm0, %v10011_v49  ;;  %v4949_v4 = vmul.f32 %v9895_v56, %v4929_v54  ;;  %v10029_v1 = vadd.f32 %v9902_v8, %v4950_v29 }
0x105e   :  { %v7571_v37 = vpop.eup %7570  ;;  %7159 = vmatmul.mubr.msk.f32.gmra.mxu1 %vm90_vm0, %v10015_v26 }
0x105f   :  { %v10025_v7 = vadd.f32 %v9902_v8, %v4949_v4  ;;  %v4931_v5 = vmul.f32 %v7571_v37, %v9872_v21  ;;  %v4952_v20 = vmul.f32 %v9895_v56, %v4932_v6 }
0x1060   :  { %v7573_v60 = vpop.eup %7572 }
0x1061   :  { %v4934_v28 = vmul.f32 %v7573_v60, %v9878_v15  ;;  %7161 = vmatprep.mubr.msk.f32.mxu1 %vm90_vm0, %v10025_v7  ;;  %v4951_v18 = vmul.f32 %v9895_v56, %v4931_v5  ;;  %v10043_v14 = vadd.f32 %v9902_v8, %v4952_v20 }
0x1062   :  { %v7575_v51 = vpop.eup %7574  ;;  %7162 = vmatmul.mubr.msk.f32.gmra.mxu1 %vm90_vm0, %v10029_v1 }
0x1063   :  { %v10039_v13 = vadd.f32 %v9902_v8, %v4951_v18  ;;  %v4933_v21 = vmul.f32 %v7575_v51, %v9884_v30  ;;  %v4954_v52 = vmul.f32 %v9895_v56, %v4934_v28  ;;  %v4981_v30 = vsub.s32 7, %v10511_v31 }
0x1065   :  { %7164 = vmatprep.mubr.msk.f32.mxu1 %vm90_vm0, %v10039_v13  ;;  %v4953_v15 = vmul.f32 %v9895_v56, %v4933_v21  ;;  %v10055_v42 = vadd.f32 %v9902_v8, %v4954_v52  ;;  %v10063_v17 = vrot.slane %v9658_v24, %v4981_v30 }
0x1066   :  { %7165 = vmatmul.mubr.msk.f32.gmra.mxu1 %vm90_vm0, %v10043_v14 }
0x1067   :  { %v10052_v3 = vadd.f32 %v9902_v8, %v4953_v15  ;;  %10530 = vst [vmem:[#allocation29_spill] sm:$0xff] %v10055_v42 }
0x1069   :  { %7167 = vmatprep.mubr.msk.f32.mxu1 %vm90_vm0, %v10052_v3 }
0x106a   :  { %7168 = vmatmul.mubr.msk.f32.gmra.mxu1 %vm90_vm0, %v10055_v42 }
0x109d   :  { %v7148_v56 = vpop.f32.mrf.mxu1 }
0x109e   :  { %v5103_v2 = vadd.f32 %v7148_v56, %v10063_v17 }
0x109f   :  { %v5097_v0 = vpop.f32.mrf.mxu1 }
0x10a0   :  { %v5193_v55 = vmul.f32 0.70710677, %v5103_v2  ;;  %v5098_v23 = vadd.f32 %v5097_v0, %v10063_v17 }
0x10a1   :  { %v7151_v8 = vpop.f32.mrf.mxu1 }
0x10a2   :  { %v5241_v59 = vand.u32 2147483647, %v5193_v55  ;;  %v10067_v62 = vmul.f32 0.70710677, %v5098_v23  ;;  %v10070_v32 = vadd.f32 %v7151_v8, %v10063_v17  ;;  %vm5209_vm3 = vcmp.ge.f32.partialorder %v5193_v55, 0.0 }
0x10a3   :  { %v5107_v44 = vpop.f32.mrf.mxu1  ;;  %v10113_v8 = vmul.f32 0.5, %v5103_v2  ;;  %v10449_v55 = vmov -1.0  }
0x10a4   :  { %v5257_v25 = vmul.f32 0.3275911, %v5241_v59  ;;  %v5240_v38 = vand.u32 2147483647, %v10067_v62  ;;  %v10074_v24 = vmul.f32 0.70710677, %v10070_v32  ;;  %v10077_v9 = vadd.f32 %v5107_v44, %v10063_v17 }
0x10a5   :  { %v7154_v46 = vpop.f32.mrf.mxu1  ;;  %v5465_v34 = vsub.f32 0.0, %v5241_v59  ;;  %vm5208_vm4 = vcmp.ge.f32.partialorder %v10067_v62, 0.0 }
0x10a6   :  { %v5273_v10 = vadd.f32 1.0, %v5257_v25  ;;  %v5256_v43 = vmul.f32 0.3275911, %v5240_v38  ;;  %v5243_v35 = vand.u32 2147483647, %v10074_v24  ;;  %v10085_v27 = vadd.f32 %v7154_v46, %v10063_v17 }
0x10a7   :  { %v10081_v63 = vmul.f32 0.70710677, %v10077_v9  ;;  %v5117_v11 = vpop.f32.mrf.mxu1  ;;  %v5464_v37 = vsub.f32 0.0, %v5240_v38  ;;  %v5481_v5 = vmul.f32 %v5465_v34, %v5241_v59  ;;  %v10126_v62 = vsel %vm5208_vm4, 1.0, %v10449_v55 }
0x10a8   :  { %7576 = vrcp.f32 %v5273_v10  ;;  %v5272_v12 = vadd.f32 1.0, %v5256_v43  ;;  %v5259_v45 = vmul.f32 0.3275911, %v5243_v35  ;;  %v10088_v47 = vadd.f32 %v5117_v11, %v10063_v17 }
0x10a9   :  { %v5242_v39 = vand.u32 2147483647, %v10081_v63  ;;  %v7157_v33 = vpop.f32.mrf.mxu1  ;;  %v10091_v40 = vmul.f32 0.70710677, %v10085_v27  ;;  %v5467_v51 = vsub.f32 0.0, %v5243_v35  ;;  %v5480_v15 = vmul.f32 %v5464_v37, %v5240_v38 }
0x10aa   :  { %7578 = vrcp.f32 %v5272_v12  ;;  %v5275_v57 = vadd.f32 1.0, %v5259_v45  ;;  %v10094_v53 = vmul.f32 0.70710677, %v10088_v47  ;;  %v10098_v6 = vadd.f32 %v7157_v33, %v10063_v17 }
0x10ab   :  { %v5258_v41 = vmul.f32 0.3275911, %v5242_v39  ;;  %v5245_v29 = vand.u32 2147483647, %v10091_v40  ;;  %v5127_v4 = vpop.f32.mrf.mxu1  ;;  %v5498_v59 = vmul.f32 1.442695, %v5481_v5  ;;  %v5483_v11 = vmul.f32 %v5467_v51, %v5243_v35 }
0x10ac   :  { %7580 = vrcp.f32 %v5275_v57  ;;  %v5244_v20 = vand.u32 2147483647, %v10094_v53  ;;  %v10102_v28 = vmul.f32 0.70710677, %v10098_v6  ;;  %v10105_v18 = vadd.f32 %v5127_v4, %v10063_v17 }
0x10ad   :  { %v5274_v54 = vadd.f32 1.0, %v5258_v41  ;;  %v5261_v60 = vmul.f32 0.3275911, %v5245_v29  ;;  %v5466_v46 = vsub.f32 0.0, %v5242_v39  ;;  %v10118_v38 = vsel %vm5209_vm3, 1.0, %v10449_v55 }
0x10ae   :  { %v5260_v52 = vmul.f32 0.3275911, %v5244_v20  ;;  %v5247_v30 = vand.u32 2147483647, %v10102_v28  ;;  %v10109_v56 = vmul.f32 0.70710677, %v10105_v18 }
0x10af   :  { %7582 = vrcp.f32 %v5274_v54  ;;  %v5277_v21 = vadd.f32 1.0, %v5261_v60  ;;  %v10120_v43 = vmul.f32 0.5, %v5098_v23  ;;  %v5496_v57 = vmul.f32 1.442695, %v5480_v15 }
0x10b0   :  { %v5276_v44 = vadd.f32 1.0, %v5260_v52  ;;  %v5263_v10 = vmul.f32 0.3275911, %v5247_v30  ;;  %v5246_v12 = vand.u32 2147483647, %v10109_v56  ;;  %v5469_v41 = vsub.f32 0.0, %v5245_v29 }
0x10b1   :  { %7584 = vrcp.f32 %v5277_v21  ;;  %v5482_v4 = vmul.f32 %v5466_v46, %v5242_v39  ;;  %v5502_v37 = vmul.f32 1.442695, %v5483_v11  ;;  %v5468_v5 = vsub.f32 0.0, %v5244_v20 }
0x10b2   :  { %7586 = vrcp.f32 %v5276_v44  ;;  %v5279_v33 = vadd.f32 1.0, %v5263_v10  ;;  %v5262_v34 = vmul.f32 0.3275911, %v5246_v12  ;;  %vm5211_vm5 = vcmp.ge.f32.partialorder %v10074_v24, 0.0 }
0x10b3   :  { %7588 = vpow2.f32 %v5498_v59  ;;  %v5485_v59 = vmul.f32 %v5469_v41, %v5245_v29  ;;  %v5471_v44 = vsub.f32 0.0, %v5247_v30  ;;  %v5500_v46 = vmul.f32 1.442695, %v5482_v4 }
0x10b4   :  { %7590 = vrcp.f32 %v5279_v33  ;;  %v5278_v60 = vadd.f32 1.0, %v5262_v34  ;;  %v5470_v33 = vsub.f32 0.0, %v5246_v12  ;;  %v10143_v29 = vsel %vm5211_vm5, 1.0, %v10449_v55 }
0x10b5   :  { %v10111_v0 = vpop.eup %7576  ;;  %7592 = vpow2.f32 %v5496_v57  ;;  %v5506_v41 = vmul.f32 1.442695, %v5485_v59  ;;  %vm5210_vm6 = vcmp.ge.f32.partialorder %v10081_v63, 0.0  ;;  %vm5213_vm7 = vcmp.ge.f32.partialorder %v10091_v40, 0.0 }
0x10b6   :  { %v5321_v25 = vmul.f32 1.0614054, %v10111_v0  ;;  %7594 = vrcp.f32 %v5278_v60  ;;  %v5487_v60 = vmul.f32 %v5471_v44, %v5247_v30  ;;  %vm5212_vm8 = vcmp.ge.f32.partialorder %v10094_v53, 0.0 }
0x10b7   :  { %v10123_v2 = vpop.eup %7578  ;;  %7596 = vpow2.f32 %v5502_v37  ;;  %vm5215_vm9 = vcmp.ge.f32.partialorder %v10102_v28, 0.0  ;;  %vm5214_vm10 = vcmp.ge.f32.partialorder %v10109_v56, 0.0  ;;  %v5180_v28 = vmul.f32 0.5, %v10088_v47 }
0x10b8   :  { %v5337_v45 = vadd.f32 -1.4531521, %v5321_v25  ;;  %v5320_v35 = vmul.f32 1.0614054, %v10123_v2  ;;  %7598 = vpow2.f32 %v5500_v46  ;;  %v5510_v44 = vmul.f32 1.442695, %v5487_v60 }
0x10b9   :  { %v10128_v54 = vpop.eup %7580  ;;  %7600 = vpow2.f32 %v5506_v41 }
0x10ba   :  { %v5353_v23 = vmul.f32 %v10111_v0, %v5337_v45  ;;  %v5323_v51 = vmul.f32 1.0614054, %v10128_v54  ;;  %v5336_v52 = vadd.f32 -1.4531521, %v5320_v35  ;;  %v5484_v45 = vmul.f32 %v5468_v5, %v5244_v20 }
0x10bc   :  { %v5369_v21 = vadd.f32 1.4214138, %v5353_v23  ;;  %v10134_v15 = vpop.eup %7582  ;;  %v5339_v25 = vadd.f32 -1.4531521, %v5323_v51  ;;  %v5352_v10 = vmul.f32 %v10123_v2, %v5336_v52  ;;  %v5504_v5 = vmul.f32 1.442695, %v5484_v45 }
0x10bd   :  { %v5322_v11 = vmul.f32 1.0614054, %v10134_v15  ;;  %v5486_v52 = vmul.f32 %v5470_v33, %v5246_v12 }
0x10be   :  { %v5385_v39 = vmul.f32 %v10111_v0, %v5369_v21  ;;  %v5355_v57 = vmul.f32 %v10128_v54, %v5339_v25  ;;  %v5368_v23 = vadd.f32 1.4214138, %v5352_v10  ;;  %v10145_v51 = vpop.eup %7584  ;;  %7602 = vpow2.f32 %v5504_v5 }
0x10bf   :  { %v5338_v35 = vadd.f32 -1.4531521, %v5322_v11  ;;  %v5325_v24 = vmul.f32 1.0614054, %v10145_v51  ;;  %v10152_v30 = vpop.eup %7586  ;;  %7604 = vpow2.f32 %v5510_v44 }
0x10c0   :  { %v5401_v34 = vadd.f32 -0.28449672, %v5385_v39  ;;  %v5371_v4 = vadd.f32 1.4214138, %v5355_v57  ;;  %v5384_v20 = vmul.f32 %v10123_v2, %v5368_v23  ;;  %v7589_v46 = vpop.eup %7588  ;;  %v5324_v45 = vmul.f32 1.0614054, %v10152_v30 }
0x10c1   :  { %v5354_v37 = vmul.f32 %v10134_v15, %v5338_v35  ;;  %v5341_v57 = vadd.f32 -1.4531521, %v5325_v24  ;;  %v10158_v33 = vpop.eup %7590  ;;  %v5508_v35 = vmul.f32 1.442695, %v5486_v52 }
0x10c2   :  { %v5417_v21 = vmul.f32 %v10111_v0, %v5401_v34  ;;  %v5387_v25 = vmul.f32 %v10128_v54, %v5371_v4  ;;  %v5400_v10 = vadd.f32 -0.28449672, %v5384_v20  ;;  %v5340_v24 = vadd.f32 -1.4531521, %v5324_v45 }
0x10c3   :  { %v5370_v59 = vadd.f32 1.4214138, %v5354_v37  ;;  %v5357_v60 = vmul.f32 %v10145_v51, %v5341_v57  ;;  %v7593_v37 = vpop.eup %7592  ;;  %7606 = vpow2.f32 %v5508_v35 }
0x10c4   :  { %v5433_v39 = vadd.f32 0.2548296, %v5417_v21  ;;  %v5403_v11 = vadd.f32 -0.28449672, %v5387_v25  ;;  %v5416_v23 = vmul.f32 %v10123_v2, %v5400_v10  ;;  %v5327_v21 = vmul.f32 1.0614054, %v10158_v33  ;;  %v10164_v10 = vpop.eup %7594 }
0x10c5   :  { %v5386_v12 = vmul.f32 %v10134_v15, %v5370_v59  ;;  %v5356_v57 = vmul.f32 %v10152_v30, %v5340_v24  ;;  %v7597_v44 = vpop.eup %7596 }
0x10c6   :  { %v5449_v34 = vmul.f32 %v10111_v0, %v5433_v39  ;;  %v5419_v41 = vmul.f32 %v10128_v54, %v5403_v11  ;;  %v5432_v0 = vadd.f32 0.2548296, %v5416_v23  ;;  %v5373_v39 = vadd.f32 1.4214138, %v5357_v60 }
0x10c7   :  { %v5402_v20 = vadd.f32 -0.28449672, %v5386_v12  ;;  %v5343_v55 = vadd.f32 -1.4531521, %v5327_v21 }
0x10c8   :  { %v5529_v4 = vmul.f32 %v7589_v46, %v5449_v34  ;;  %v5435_v25 = vadd.f32 0.2548296, %v5419_v41  ;;  %v5448_v5 = vmul.f32 %v10123_v2, %v5432_v0  ;;  %v5389_v46 = vmul.f32 %v10145_v51, %v5373_v39 }
0x10c9   :  { %v5418_v52 = vmul.f32 %v10134_v15, %v5402_v20  ;;  %v5326_v34 = vmul.f32 1.0614054, %v10164_v10  ;;  %v5359_v12 = vmul.f32 %v10158_v33, %v5343_v55 }
0x10ca   :  { %v5545_v59 = vsub.f32 1.0, %v5529_v4  ;;  %v5451_v11 = vmul.f32 %v10128_v54, %v5435_v25  ;;  %v5528_v45 = vmul.f32 %v7593_v37, %v5448_v5  ;;  %v5372_v4 = vadd.f32 1.4214138, %v5356_v57  ;;  %v7599_v25 = vpop.eup %7598 }
0x10cb   :  { %v5434_v41 = vadd.f32 0.2548296, %v5418_v52  ;;  %v5405_v2 = vadd.f32 -0.28449672, %v5389_v46  ;;  %v5342_v21 = vadd.f32 -1.4531521, %v5326_v34 }
0x10cc   :  { %v5561_v23 = vmul.f32 %v5545_v59, %v10118_v38  ;;  %v5531_v60 = vmul.f32 %v7597_v44, %v5451_v11  ;;  %v5375_v0 = vadd.f32 1.4214138, %v5359_v12  ;;  %v5544_v54 = vsub.f32 1.0, %v5528_v45 }
0x10cd   :  { %v5450_v20 = vmul.f32 %v10134_v15, %v5434_v41  ;;  %v5388_v39 = vmul.f32 %v10152_v30, %v5372_v4  ;;  %v5421_v42 = vmul.f32 %v10145_v51, %v5405_v2  ;;  %v5358_v38 = vmul.f32 %v10164_v10, %v5342_v21  ;;  %v7601_v15 = vpop.eup %7600 }
0x10ce   :  { %v5547_v24 = vsub.f32 1.0, %v5531_v60  ;;  %v5577_v55 = vadd.f32 1.0, %v5561_v23  ;;  %v5391_v37 = vmul.f32 %v10158_v33, %v5375_v0  ;;  %v5560_v59 = vmul.f32 %v5544_v54, %v10126_v62 }
0x10cf   :  { %v5530_v5 = vmul.f32 %v7599_v25, %v5450_v20  ;;  %v5404_v35 = vadd.f32 -0.28449672, %v5388_v39  ;;  %v5437_v11 = vadd.f32 0.2548296, %v5421_v42  ;;  %v5374_v57 = vadd.f32 1.4214138, %v5358_v38 }
0x10d0   :  { %v5563_v52 = vmul.f32 %v5547_v24, %v10143_v29  ;;  %v10531_v46 = vmov -1.0   ;;  %v5407_v44 = vadd.f32 -0.28449672, %v5391_v37  ;;  %v5576_v12 = vadd.f32 1.0, %v5560_v59  ;;  %v7603_v29 = vpop.eup %7602 }
0x10d1   :  { %v5226_v34 = vsel %vm5210_vm6, 1.0, %v10531_v46  ;;  %v5546_v45 = vsub.f32 1.0, %v5530_v5  ;;  %v5420_v23 = vmul.f32 %v10152_v30, %v5404_v35  ;;  %v5453_v62 = vmul.f32 %v10145_v51, %v5437_v11  ;;  %v7605_v20 = vpop.eup %7604 }
0x10d2   :  { %v5390_v41 = vmul.f32 %v10164_v10, %v5374_v57  ;;  %v5593_v42 = vmul.f32 %v5577_v55, %v10113_v8  ;;  %v5423_v60 = vmul.f32 %v10158_v33, %v5407_v44  ;;  %v5592_v4 = vmul.f32 %v5576_v12, %v10120_v43  ;;  %v7607_v35 = vpop.eup %7606 }
0x10d3   :  { %v5562_v63 = vmul.f32 %v5546_v45, %v5226_v34  ;;  %v5579_v2 = vadd.f32 1.0, %v5563_v52  ;;  %v5436_v21 = vadd.f32 0.2548296, %v5420_v23  ;;  %v5533_v0 = vmul.f32 %v7601_v15, %v5453_v62 }
0x10d4   :  { %v5406_v54 = vadd.f32 -0.28449672, %v5390_v41  ;;  %v5178_v25 = vmul.f32 0.5, %v10077_v9  ;;  %v5439_v24 = vadd.f32 0.2548296, %v5423_v60  ;;  %7202 = vmatprep.mubr.f32.mxu0 %v5592_v4  ;;  %v5179_v39 = vmul.f32 0.5, %v10070_v32 }
0x10d5   :  { %v5578_v51 = vadd.f32 1.0, %v5562_v63  ;;  %7203 = vmatmul.mubr.f32.vlgmr.msra.gmra.mxu0 %v5593_v42  ;;  %v5452_v8 = vmul.f32 %v10152_v30, %v5436_v21  ;;  %v5549_v38 = vsub.f32 1.0, %v5533_v0  ;;  %v5229_v43 = vsel %vm5213_vm7, 1.0, %v10531_v46 }
0x10d6   :  { %v5422_v55 = vmul.f32 %v10164_v10, %v5406_v54  ;;  %v5455_v37 = vmul.f32 %v10158_v33, %v5439_v24  ;;  %v5595_v9 = vmul.f32 %v5579_v2, %v5179_v39  ;;  %v5228_v40 = vsel %vm5212_vm8, 1.0, %v10531_v46 }
0x10d7   :  { %v5594_v59 = vmul.f32 %v5578_v51, %v5178_v25  ;;  %v5532_v5 = vmul.f32 %v7603_v29, %v5452_v8  ;;  %v5565_v30 = vmul.f32 %v5549_v38, %v5229_v43  ;;  %v5231_v33 = vsel %vm5215_vm9, 1.0, %v10531_v46 }
0x10d8   :  { %v5438_v52 = vadd.f32 0.2548296, %v5422_v55  ;;  %v5535_v32 = vmul.f32 %v7605_v20, %v5455_v37  ;;  %v5181_v62 = vmul.f32 0.5, %v10085_v27  ;;  %v5230_v41 = vsel %vm5214_vm10, 1.0, %v10531_v46 }
0x10d9   :  { %7205 = vmatprep.mubr.f32.mxu0 %v5594_v59  ;;  %v5548_v11 = vsub.f32 1.0, %v5532_v5  ;;  %v5581_v12 = vadd.f32 1.0, %v5565_v30  ;;  %v5182_v4 = vmul.f32 0.5, %v10105_v18  ;;  %v5183_v63 = vmul.f32 0.5, %v10098_v6 }
0x10da   :  { %7206 = vmatmul.mubr.f32.gmra.mxu0 %v5595_v9  ;;  %v5454_v57 = vmul.f32 %v10164_v10, %v5438_v52  ;;  %v5551_v15 = vsub.f32 1.0, %v5535_v32 }
0x10db   :  { %v5564_v53 = vmul.f32 %v5548_v11, %v5228_v40  ;;  %v5597_v60 = vmul.f32 %v5581_v12, %v5181_v62 }
0x10dc   :  { %v5534_v34 = vmul.f32 %v7607_v35, %v5454_v57  ;;  %v5567_v44 = vmul.f32 %v5551_v15, %v5231_v33 }
0x10dd   :  { %v5580_v45 = vadd.f32 1.0, %v5564_v53 }
0x10de   :  { %v5550_v23 = vsub.f32 1.0, %v5534_v34  ;;  %v5583_v42 = vadd.f32 1.0, %v5567_v44 }
0x10df   :  { %v5596_v10 = vmul.f32 %v5580_v45, %v5180_v28 }
0x10e0   :  { %v5566_v29 = vmul.f32 %v5550_v23, %v5230_v41  ;;  %v5599_v21 = vmul.f32 %v5583_v42, %v5183_v63 }
0x10e1   :  { %7208 = vmatprep.mubr.f32.mxu0 %v5596_v10 }
0x10e2   :  { %v5582_v56 = vadd.f32 1.0, %v5566_v29  ;;  %7209 = vmatmul.mubr.f32.gmra.mxu0 %v5597_v60 }
0x10e4   :  { %v5598_v2 = vmul.f32 %v5582_v56, %v5182_v4 }
0x10e6   :  { %7211 = vmatprep.mubr.f32.mxu0 %v5598_v2 }
0x10e7   :  { %7212 = vmatmul.mubr.f32.gmra.mxu0 %v5599_v21 }
0x111e   :  { %v7160_v47 = vpop.f32.mrf.mxu1 }
0x111f   :  { %v5143_v27 = vadd.f32 %v7160_v47, %v10063_v17 }
0x1120   :  { %v5137_v0 = vpop.f32.mrf.mxu1 }
0x1121   :  { %v5201_v54 = vmul.f32 0.70710677, %v5143_v27  ;;  %v5138_v20 = vadd.f32 %v5137_v0, %v10063_v17 }
0x1122   :  { %v7163_v25 = vpop.f32.mrf.mxu1 }
0x1123   :  { %v5249_v24 = vand.u32 2147483647, %v5201_v54  ;;  %v10212_v51 = vmul.f32 0.70710677, %v5138_v20  ;;  %v10215_v18 = vadd.f32 %v7163_v25, %v10063_v17  ;;  %vm5217_vm11 = vcmp.ge.f32.partialorder %v5201_v54, 0.0 }
0x1124   :  { %v5147_v6 = vpop.f32.mrf.mxu1  ;;  %v10258_v25 = vmul.f32 0.5, %v5143_v27  ;;  %v10263_v54 = vsel %vm5217_vm11, 1.0, %v10531_v46 }
0x1125   :  { %v5265_v39 = vmul.f32 0.3275911, %v5249_v24  ;;  %v5248_v8 = vand.u32 2147483647, %v10212_v51  ;;  %v10219_v38 = vmul.f32 0.70710677, %v10215_v18  ;;  %v10222_v55 = vadd.f32 %v5147_v6, %v10063_v17 }
0x1126   :  { %v7166_v43 = vpop.f32.mrf.mxu1  ;;  %v5473_v53 = vsub.f32 0.0, %v5249_v24  ;;  %vm5216_vm12 = vcmp.ge.f32.partialorder %v10212_v51, 0.0 }
0x1127   :  { %v5281_v37 = vadd.f32 1.0, %v5265_v39  ;;  %v5264_v59 = vmul.f32 0.3275911, %v5248_v8  ;;  %v5251_v9 = vand.u32 2147483647, %v10219_v38  ;;  %v10230_v57 = vadd.f32 %v7166_v43, %v10063_v17 }
0x1128   :  { %v10226_v5 = vmul.f32 0.70710677, %v10222_v55  ;;  %v5157_v52 = vpop.f32.mrf.mxu1  ;;  %v5472_v62 = vsub.f32 0.0, %v5248_v8  ;;  %v5489_v41 = vmul.f32 %v5473_v53, %v5249_v24  ;;  %vm5219_vm13 = vcmp.ge.f32.partialorder %v10219_v38, 0.0 }
0x1129   :  { %7608 = vrcp.f32 %v5281_v37  ;;  %v5280_v32 = vadd.f32 1.0, %v5264_v59  ;;  %v5267_v30 = vmul.f32 0.3275911, %v5251_v9  ;;  %v10233_v33 = vadd.f32 %v5157_v52, %v10063_v17 }
0x112a   :  { %v5250_v35 = vand.u32 2147483647, %v10226_v5  ;;  %v7169_v40 = vpop.f32.mrf.mxu1  ;;  %v10236_v34 = vmul.f32 0.70710677, %v10230_v57  ;;  %v5475_v4 = vsub.f32 0.0, %v5251_v9  ;;  %v5488_v2 = vmul.f32 %v5472_v62, %v5248_v8 }
0x112b   :  { %7610 = vrcp.f32 %v5280_v32  ;;  %v5283_v11 = vadd.f32 1.0, %v5267_v30  ;;  %v10239_v12 = vmul.f32 0.70710677, %v10233_v33  ;;  %v10243_v45 = vadd.f32 %v7169_v40, %v10063_v17 }
0x112c   :  { %v5266_v15 = vmul.f32 0.3275911, %v5250_v35  ;;  %v5253_v28 = vand.u32 2147483647, %v10236_v34  ;;  %v5167_v23 = vpop.f32.mrf.mxu1  ;;  %v5514_v24 = vmul.f32 1.442695, %v5489_v41  ;;  %v5491_v37 = vmul.f32 %v5475_v4, %v5251_v9 }
0x112d   :  { %7612 = vrcp.f32 %v5283_v11  ;;  %v5252_v29 = vand.u32 2147483647, %v10239_v12  ;;  %v10247_v42 = vmul.f32 0.70710677, %v10243_v45  ;;  %v10250_v60 = vadd.f32 %v5167_v23, %v10063_v17 }
0x112e   :  { %v5282_v44 = vadd.f32 1.0, %v5266_v15  ;;  %v5269_v10 = vmul.f32 0.3275911, %v5253_v28  ;;  %v5474_v39 = vsub.f32 0.0, %v5250_v35  ;;  %v10265_v8 = vmul.f32 0.5, %v5138_v20 }
0x112f   :  { %v5268_v63 = vmul.f32 0.3275911, %v5252_v29  ;;  %v5255_v21 = vand.u32 2147483647, %v10247_v42  ;;  %v10254_v47 = vmul.f32 0.70710677, %v10250_v60 }
0x1130   :  { %7614 = vrcp.f32 %v5282_v44  ;;  %v5285_v56 = vadd.f32 1.0, %v5269_v10  ;;  %v5512_v32 = vmul.f32 1.442695, %v5488_v2  ;;  %v10271_v11 = vsel %vm5216_vm12, 1.0, %v10531_v46 }
0x1131   :  { %v5284_v6 = vadd.f32 1.0, %v5268_v63  ;;  %v5271_v43 = vmul.f32 0.3275911, %v5255_v21  ;;  %v5254_v59 = vand.u32 2147483647, %v10254_v47  ;;  %v5477_v51 = vsub.f32 0.0, %v5253_v28 }
0x1132   :  { %7616 = vrcp.f32 %v5285_v56  ;;  %v5490_v53 = vmul.f32 %v5474_v39, %v5250_v35  ;;  %v5518_v23 = vmul.f32 1.442695, %v5491_v37  ;;  %v5476_v62 = vsub.f32 0.0, %v5252_v29 }
0x1133   :  { %7618 = vrcp.f32 %v5284_v6  ;;  %v5287_v30 = vadd.f32 1.0, %v5271_v43  ;;  %v5270_v40 = vmul.f32 0.3275911, %v5254_v59  ;;  %v5493_v2 = vmul.f32 %v5477_v51, %v5253_v28 }
0x1134   :  { %7620 = vpow2.f32 %v5514_v24  ;;  %v5479_v24 = vsub.f32 0.0, %v5255_v21  ;;  %v5516_v6 = vmul.f32 1.442695, %v5490_v53  ;;  %v5492_v37 = vmul.f32 %v5476_v62, %v5252_v29 }
0x1135   :  { %7622 = vrcp.f32 %v5287_v30  ;;  %v5286_v41 = vadd.f32 1.0, %v5270_v40  ;;  %v10288_v28 = vsel %vm5219_vm13, 1.0, %v10531_v46  ;;  %vm5218_vm14 = vcmp.ge.f32.partialorder %v10226_v5, 0.0 }
0x1136   :  { %v10256_v0 = vpop.eup %7608  ;;  %7624 = vpow2.f32 %v5512_v32  ;;  %v5495_v53 = vmul.f32 %v5479_v24, %v5255_v21  ;;  %vm5221_vm15 = vcmp.ge.f32.partialorder %v10236_v34, 0.0  ;;  %vm5220_vm0 = vcmp.ge.f32.partialorder %v10239_v12, 0.0 }
0x1137   :  { %v5329_v17 = vmul.f32 1.0614054, %v10256_v0  ;;  %7626 = vrcp.f32 %v5286_v41  ;;  %vm5223_vm1 = vcmp.ge.f32.partialorder %v10247_v42, 0.0  ;;  %v5236_v34 = vsel %vm5220_vm0, 1.0, %v10531_v46 }
0x1138   :  { %v10268_v52 = vpop.eup %7610  ;;  %7628 = vpow2.f32 %v5518_v23  ;;  %vm5222_vm3 = vcmp.ge.f32.partialorder %v10254_v47, 0.0  ;;  %v5188_v42 = vmul.f32 0.5, %v10233_v33  ;;  %v5626_v33 = vsub.s32 5, %v10511_v31 }
0x1139   :  { %v5345_v27 = vadd.f32 -1.4531521, %v5329_v17  ;;  %v5328_v9 = vmul.f32 1.0614054, %v10268_v52  ;;  %7630 = vpow2.f32 %v5516_v6 }
0x113a   :  { %v10273_v15 = vpop.eup %7612 }
0x113b   :  { %v5361_v20 = vmul.f32 %v10256_v0, %v5345_v27  ;;  %v5331_v44 = vmul.f32 1.0614054, %v10273_v15  ;;  %v5344_v4 = vadd.f32 -1.4531521, %v5328_v9  ;;  %v5478_v27 = vsub.f32 0.0, %v5254_v59 }
0x113d   :  { %v5377_v10 = vadd.f32 1.4214138, %v5361_v20  ;;  %v10279_v56 = vpop.eup %7614  ;;  %v5347_v63 = vadd.f32 -1.4531521, %v5331_v44  ;;  %v5360_v17 = vmul.f32 %v10268_v52, %v5344_v4  ;;  %v5522_v20 = vmul.f32 1.442695, %v5493_v2 }
0x113e   :  { %v5330_v39 = vmul.f32 1.0614054, %v10279_v56  ;;  %v5494_v38 = vmul.f32 %v5478_v27, %v5254_v59 }
0x113f   :  { %v5393_v35 = vmul.f32 %v10256_v0, %v5377_v10  ;;  %v5363_v43 = vmul.f32 %v10273_v15, %v5347_v63  ;;  %v5376_v30 = vadd.f32 1.4214138, %v5360_v17  ;;  %v10290_v9 = vpop.eup %7616  ;;  %v5520_v10 = vmul.f32 1.442695, %v5492_v37 }
0x1140   :  { %v5346_v40 = vadd.f32 -1.4531521, %v5330_v39  ;;  %v5333_v41 = vmul.f32 1.0614054, %v10290_v9  ;;  %v10297_v2 = vpop.eup %7618  ;;  %7632 = vpow2.f32 %v5522_v20  ;;  %v5526_v17 = vmul.f32 1.442695, %v5495_v53 }
0x1141   :  { %v5409_v32 = vadd.f32 -0.28449672, %v5393_v35  ;;  %v5379_v51 = vadd.f32 1.4214138, %v5363_v43  ;;  %v5392_v23 = vmul.f32 %v10268_v52, %v5376_v30  ;;  %v7621_v6 = vpop.eup %7620  ;;  %v5332_v30 = vmul.f32 1.0614054, %v10297_v2 }
0x1142   :  { %v5362_v29 = vmul.f32 %v10279_v56, %v5346_v40  ;;  %v5349_v24 = vadd.f32 -1.4531521, %v5333_v41  ;;  %v10303_v37 = vpop.eup %7622  ;;  %7634 = vpow2.f32 %v5520_v10  ;;  %v5524_v40 = vmul.f32 1.442695, %v5494_v38 }
0x1143   :  { %v5425_v44 = vmul.f32 %v10256_v0, %v5409_v32  ;;  %v5395_v62 = vmul.f32 %v10273_v15, %v5379_v51  ;;  %v5408_v63 = vadd.f32 -0.28449672, %v5392_v23  ;;  %v5335_v20 = vmul.f32 1.0614054, %v10303_v37 }
0x1144   :  { %v5378_v35 = vadd.f32 1.4214138, %v5362_v29  ;;  %v5365_v27 = vmul.f32 %v10290_v9, %v5349_v24  ;;  %7636 = vpow2.f32 %v5526_v17 }
0x1145   :  { %v5441_v4 = vadd.f32 0.2548296, %v5425_v44  ;;  %v5411_v21 = vadd.f32 -0.28449672, %v5395_v62  ;;  %v5424_v43 = vmul.f32 %v10268_v52, %v5408_v63  ;;  %v7625_v44 = vpop.eup %7624  ;;  %v5348_v62 = vadd.f32 -1.4531521, %v5332_v30 }
0x1146   :  { %v5394_v32 = vmul.f32 %v10279_v56, %v5378_v35  ;;  %v5381_v29 = vadd.f32 1.4214138, %v5365_v27  ;;  %v10309_v41 = vpop.eup %7626  ;;  %v5351_v63 = vadd.f32 -1.4531521, %v5335_v20  ;;  %7638 = vpow2.f32 %v5524_v40 }
0x1147   :  { %v5457_v39 = vmul.f32 %v10256_v0, %v5441_v4  ;;  %v5427_v59 = vmul.f32 %v10273_v15, %v5411_v21  ;;  %v5440_v0 = vadd.f32 0.2548296, %v5424_v43  ;;  %v5364_v24 = vmul.f32 %v10297_v2, %v5348_v62 }
0x1148   :  { %v5410_v53 = vadd.f32 -0.28449672, %v5394_v32  ;;  %v5397_v38 = vmul.f32 %v10290_v9, %v5381_v29  ;;  %v5367_v43 = vmul.f32 %v10303_v37, %v5351_v63 }
0x1149   :  { %v5537_v51 = vmul.f32 %v7621_v6, %v5457_v39  ;;  %v5443_v23 = vadd.f32 0.2548296, %v5427_v59  ;;  %v5456_v35 = vmul.f32 %v10268_v52, %v5440_v0  ;;  %v5334_v6 = vmul.f32 1.0614054, %v10309_v41  ;;  %v7629_v39 = vpop.eup %7628 }
0x114a   :  { %v5426_v21 = vmul.f32 %v10279_v56, %v5410_v53  ;;  %v5413_v27 = vadd.f32 -0.28449672, %v5397_v38  ;;  %v5380_v52 = vadd.f32 1.4214138, %v5364_v24  ;;  %v5383_v20 = vadd.f32 1.4214138, %v5367_v43  ;;  %v7631_v53 = vpop.eup %7630 }
0x114b   :  { %v5553_v4 = vsub.f32 1.0, %v5537_v51  ;;  %v5459_v10 = vmul.f32 %v10273_v15, %v5443_v23  ;;  %v5536_v32 = vmul.f32 %v7625_v44, %v5456_v35  ;;  %v5350_v51 = vadd.f32 -1.4531521, %v5334_v6 }
0x114c   :  { %v5442_v30 = vadd.f32 0.2548296, %v5426_v21  ;;  %v5429_v29 = vmul.f32 %v10290_v9, %v5413_v27  ;;  %v5396_v62 = vmul.f32 %v10297_v2, %v5380_v52  ;;  %v5399_v44 = vmul.f32 %v10303_v37, %v5383_v20 }
0x114d   :  { %v5569_v17 = vmul.f32 %v5553_v4, %v10263_v54  ;;  %v5539_v59 = vmul.f32 %v7629_v39, %v5459_v10  ;;  %v5552_v15 = vsub.f32 1.0, %v5536_v32  ;;  %v5366_v54 = vmul.f32 %v10309_v41, %v5350_v51 }
0x114e   :  { %v5458_v0 = vmul.f32 %v10279_v56, %v5442_v30  ;;  %v5445_v40 = vadd.f32 0.2548296, %v5429_v29  ;;  %v5412_v10 = vadd.f32 -0.28449672, %v5396_v62  ;;  %v7633_v56 = vpop.eup %7632  ;;  %v5234_v24 = vsel %vm5218_vm14, 1.0, %v10531_v46 }
0x114f   :  { %v5555_v23 = vsub.f32 1.0, %v5539_v59  ;;  %v5585_v4 = vadd.f32 1.0, %v5569_v17  ;;  %v5568_v63 = vmul.f32 %v5552_v15, %v10271_v11  ;;  %v5382_v38 = vadd.f32 1.4214138, %v5366_v54 }
0x1150   :  { %v5538_v35 = vmul.f32 %v7631_v53, %v5458_v0  ;;  %v5415_v6 = vadd.f32 -0.28449672, %v5399_v44  ;;  %v5461_v17 = vmul.f32 %v10290_v9, %v5445_v40  ;;  %v5428_v11 = vmul.f32 %v10297_v2, %v5412_v10 }
0x1151   :  { %v5571_v21 = vmul.f32 %v5555_v23, %v10288_v28  ;;  %v5584_v39 = vadd.f32 1.0, %v5568_v63  ;;  %v5398_v32 = vmul.f32 %v10309_v41, %v5382_v38  ;;  %v7635_v28 = vpop.eup %7634  ;;  %v5601_v30 = vmul.f32 %v5585_v4, %v10258_v25 }
0x1152   :  { %v5554_v43 = vsub.f32 1.0, %v5538_v35  ;;  %v5431_v59 = vmul.f32 %v10303_v37, %v5415_v6  ;;  %v5541_v51 = vmul.f32 %v7633_v56, %v5461_v17  ;;  %v5444_v20 = vadd.f32 0.2548296, %v5428_v11  ;;  %v7637_v0 = vpop.eup %7636 }
0x1153   :  { %v5600_v27 = vmul.f32 %v5584_v39, %v10265_v8  ;;  %v5587_v52 = vadd.f32 1.0, %v5571_v21  ;;  %v5414_v15 = vadd.f32 -0.28449672, %v5398_v32  ;;  %v5186_v53 = vmul.f32 0.5, %v10222_v55 }
0x1154   :  { %v5570_v5 = vmul.f32 %v5554_v43, %v5234_v24  ;;  %v5447_v9 = vadd.f32 0.2548296, %v5431_v59  ;;  %v5187_v29 = vmul.f32 0.5, %v10215_v18  ;;  %v5557_v62 = vsub.f32 1.0, %v5541_v51 }
0x1155   :  { %7214 = vmatprep.mubr.f32.mxu0 %v5600_v27  ;;  %v5460_v25 = vmul.f32 %v10297_v2, %v5444_v20  ;;  %v5430_v54 = vmul.f32 %v10309_v41, %v5414_v15  ;;  %v5237_v8 = vsel %vm5221_vm15, 1.0, %v10531_v46  ;;  %v7639_v2 = vpop.eup %7638  ;;  %v5189_v17 = vmul.f32 0.5, %v10230_v57 }
0x1156   :  { %v5586_v23 = vadd.f32 1.0, %v5570_v5  ;;  %7215 = vmatmul.mubr.f32.gmra.mxu0 %v5601_v30  ;;  %v5463_v4 = vmul.f32 %v10303_v37, %v5447_v9  ;;  %v5603_v63 = vmul.f32 %v5587_v52, %v5187_v29  ;;  %v5573_v21 = vmul.f32 %v5557_v62, %v5237_v8 }
0x1157   :  { %v5540_v55 = vmul.f32 %v7635_v28, %v5460_v25  ;;  %v5446_v35 = vadd.f32 0.2548296, %v5430_v54  ;;  %v5239_v37 = vsel %vm5223_vm1, 1.0, %v10531_v46  ;;  %v5238_v11 = vsel %vm5222_vm3, 1.0, %v10531_v46  ;;  %v7645_v46 = vld [vmem:[%s10427_s3] sm:$0xff] }
0x1158   :  { %v5602_v44 = vmul.f32 %v5586_v23, %v5186_v53  ;;  %v5543_v18 = vmul.f32 %v7637_v0, %v5463_v4  ;;  %v5589_v24 = vadd.f32 1.0, %v5573_v21  ;;  %v5190_v59 = vmul.f32 0.5, %v10250_v60 }
0x1159   :  { %v5556_v40 = vsub.f32 1.0, %v5540_v55  ;;  %v5462_v10 = vmul.f32 %v10309_v41, %v5446_v35  ;;  %v5191_v27 = vmul.f32 0.5, %v10243_v45  ;;  %v10359_v51 = vrot.slane %v7645_v46, %v5626_v33 }
0x115a   :  { %7217 = vmatprep.mubr.f32.mxu0 %v5602_v44  ;;  %v5559_v38 = vsub.f32 1.0, %v5543_v18  ;;  %v5605_v28 = vmul.f32 %v5589_v24, %v5189_v17 }
0x115b   :  { %7218 = vmatmul.mubr.f32.gmra.mxu0 %v5603_v63  ;;  %v5572_v12 = vmul.f32 %v5556_v40, %v5236_v34  ;;  %v5542_v56 = vmul.f32 %v7639_v2, %v5462_v10 }
0x115c   :  { %v5575_v6 = vmul.f32 %v5559_v38, %v5239_v37 }
0x115d   :  { %v5588_v39 = vadd.f32 1.0, %v5572_v12  ;;  %v5558_v43 = vsub.f32 1.0, %v5542_v56 }
0x115e   :  { %v5591_v30 = vadd.f32 1.0, %v5575_v6 }
0x115f   :  { %v5604_v41 = vmul.f32 %v5588_v39, %v5188_v42  ;;  %v5574_v32 = vmul.f32 %v5558_v43, %v5238_v11 }
0x1160   :  { %v5607_v52 = vmul.f32 %v5591_v30, %v5191_v27 }
0x1161   :  { %7220 = vmatprep.mubr.f32.mxu0 %v5604_v41  ;;  %v5590_v47 = vadd.f32 1.0, %v5574_v32 }
0x1162   :  { %7221 = vmatmul.mubr.f32.gmra.mxu0 %v5605_v28  ;;  %v10532_v28 = vld [vmem:[#allocation29_spill] sm:$0xff] }
0x1163   :  { %v5606_v5 = vmul.f32 %v5590_v47, %v5190_v59 }
0x1165   :  { %7223 = vmatprep.mubr.f32.mxu0 %v5606_v5 }
0x1166   :  { %7224 = vmatmul.mubr.f32.gmra.mxu0 %v5607_v52 }
0x1195   :  { %v7204_v57 = vpop.f32.mrf.mxu0 }
0x1196   :  { %v5700_v45 = vadd.f32 %v7204_v57, %v10359_v51 }
0x1197   :  { %v5694_v20 = vpop.f32.mrf.mxu0 }
0x1198   :  { %v5695_v60 = vadd.f32 %v5694_v20, %v10359_v51  ;;  %v5774_v9 = vadd.f32 %v5700_v45, %v9911_v16 }
0x119a   :  { %v7207_v15 = vpop.f32.mrf.mxu0  ;;  %v5773_v0 = vadd.f32 %v5695_v60, %v9907_v22 }
0x119b   :  { %v5710_v23 = vadd.f32 %v7207_v15, %v10359_v51 }
0x119c   :  { %v5704_v53 = vpop.f32.mrf.mxu0  ;;  %5789 = vxpose.xlu0.b32.start [1/8] (short) (narrow) %v5773_v0, 32 }
0x119d   :  { %v5705_v31 = vadd.f32 %v5704_v53, %v10359_v51  ;;  %v5776_v54 = vadd.f32 %v5710_v23, %v9925_v48 }
0x119f   :  { %v5775_v29 = vadd.f32 %v5705_v31, %v9921_v50 }
0x11a0   :  { %5790 = vxpose.xlu0.b32.cont [2/8] (short) (narrow) %v5774_v9, 32 }
0x11a2   :  { %v7210_v62 = vpop.f32.mrf.mxu0 }
0x11a3   :  { %v5720_v22 = vadd.f32 %v7210_v62, %v10359_v51 }
0x11a4   :  { %v5714_v25 = vpop.f32.mrf.mxu0  ;;  %5791 = vxpose.xlu0.b32.cont [3/8] (short) (narrow) %v5775_v29, 32 }
0x11a5   :  { %v5715_v8 = vadd.f32 %v5714_v25, %v10359_v51  ;;  %v5778_v63 = vadd.f32 %v5720_v22, %v9939_v58 }
0x11a7   :  { %v7213_v4 = vpop.f32.mrf.mxu0  ;;  %v5777_v16 = vadd.f32 %v5715_v8, %v9935_v36 }
0x11a8   :  { %5792 = vxpose.xlu0.b32.cont [4/8] (short) (narrow) %v5776_v54, 32  ;;  %v5730_v50 = vadd.f32 %v7213_v4, %v10359_v51 }
0x11a9   :  { %v5724_v44 = vpop.f32.mrf.mxu0 }
0x11aa   :  { %v5725_v55 = vadd.f32 %v5724_v44, %v10359_v51  ;;  %v5780_v48 = vadd.f32 %v5730_v50, %v9951_v19 }
0x11ac   :  { %5793 = vxpose.xlu0.b32.cont [5/8] (short) (narrow) %v5777_v16, 32  ;;  %v5779_v35 = vadd.f32 %v5725_v55, %v9948_v61 }
0x11b0   :  { %5794 = vxpose.xlu0.b32.cont [6/8] (short) (narrow) %v5778_v63, 32 }
0x11b4   :  { %5795 = vxpose.xlu0.b32.cont [7/8] (short) (narrow) %v5779_v35, 32 }
0x11b8   :  { %5796 = vxpose.xlu0.b32.end [8/8] (short) (narrow) %v5780_v48, 32 }
0x1216   :  { %v7216_v21 = vpop.f32.mrf.mxu0 }
0x1217   :  { %v5740_v10 = vadd.f32 %v7216_v21, %v10359_v51 }
0x1218   :  { %v5734_v18 = vpop.f32.mrf.mxu0  ;;  %v5805_v40 = vpop.trf.xlu0 }
0x1219   :  { %v5735_v2 = vadd.f32 %v5734_v18, %v10359_v51  ;;  %5821 = vst.msk [vmem:[%s10429_s4] sm:$0xff] %vm880_vm2, %v5805_v40  ;;  %v5782_v19 = vadd.f32 %v5740_v10, %v10015_v26 }
0x121b   :  { %v7219_v36 = vpop.f32.mrf.mxu0  ;;  %v5781_v58 = vadd.f32 %v5735_v2, %v10011_v49 }
0x121c   :  { %v5806_v34 = vpop.trf.xlu0  ;;  %v5750_v49 = vadd.f32 %v7219_v36, %v10359_v51 }
0x121d   :  { %v5744_v61 = vpop.f32.mrf.mxu0  ;;  %5825 = vxpose.xlu1.b32.start [1/8] (short) (narrow) %v5781_v58, 32  ;;  %5822 = vst.msk [vmem:[%s10429_s4 + $0x8] sm:$0xff] %vm880_vm2, %v5806_v34 }
0x121e   :  { %v5745_v38 = vadd.f32 %v5744_v61, %v10359_v51  ;;  %v5784_v6 = vadd.f32 %v5750_v49, %v10029_v1 }
0x1220   :  { %v5807_v37 = vpop.trf.xlu0  ;;  %v5783_v12 = vadd.f32 %v5745_v38, %v10025_v7 }
0x1221   :  { %5826 = vxpose.xlu1.b32.cont [2/8] (short) (narrow) %v5782_v19, 32  ;;  %5823 = vst.msk [vmem:[%s10429_s4 + $0x10] sm:$0xff] %vm880_vm2, %v5807_v37 }
0x1222   :  { %v7222_v56 = vpop.f32.mrf.mxu0 }
0x1223   :  { %v5760_v7 = vadd.f32 %v7222_v56, %v10359_v51 }
0x1224   :  { %v5754_v26 = vpop.f32.mrf.mxu0  ;;  %v5808_v24 = vpop.trf.xlu0 }
0x1225   :  { %5827 = vxpose.xlu1.b32.cont [3/8] (short) (narrow) %v5783_v12, 32  ;;  %v5755_v42 = vadd.f32 %v5754_v26, %v10359_v51  ;;  %5824 = vst.msk [vmem:[%s10429_s4 + $0x18] sm:$0xff] %vm880_vm2, %v5808_v24  ;;  %v5786_v11 = vadd.f32 %v5760_v7, %v10043_v14 }
0x1226   :  { %v7225_v39 = vpop.f32.mrf.mxu0 }
0x1227   :  { %v5785_v43 = vadd.f32 %v5755_v42, %v10039_v13  ;;  %v5770_v1 = vadd.f32 %v7225_v39, %v10359_v51 }
0x1228   :  { %v5764_v17 = vpop.f32.mrf.mxu0 }
0x1229   :  { %5828 = vxpose.xlu1.b32.cont [4/8] (short) (narrow) %v5784_v6, 32  ;;  %v5765_v41 = vadd.f32 %v5764_v17, %v10359_v51  ;;  %v5788_v30 = vadd.f32 %v5770_v1, %v10532_v28 }
0x122b   :  { %v5787_v32 = vadd.f32 %v5765_v41, %v10052_v3 }
0x122d   :  { %5829 = vxpose.xlu1.b32.cont [5/8] (short) (narrow) %v5785_v43, 32 }
0x1231   :  { %5830 = vxpose.xlu1.b32.cont [6/8] (short) (narrow) %v5786_v11, 32 }
0x1235   :  { %5831 = vxpose.xlu1.b32.cont [7/8] (short) (narrow) %v5787_v32, 32 }
0x1239   :  { %5832 = vxpose.xlu1.b32.end [8/8] (short) (narrow) %v5788_v30, 32 }
0x1299   :  { %v5841_v59 = vpop.trf.xlu1 }
0x129a   :  { %6154 = vst.msk [vmem:[%s10429_s4 + $0x20] sm:$0xff] %vm880_vm2, %v5841_v59 }
0x129d   :  { %v5842_v13 = vpop.trf.xlu1 }
0x129e   :  { %6155 = vst.msk [vmem:[%s10429_s4 + $0x28] sm:$0xff] %vm880_vm2, %v5842_v13 }
0x12a1   :  { %v5843_v14 = vpop.trf.xlu1 }
0x12a2   :  { %6156 = vst.msk [vmem:[%s10429_s4 + $0x30] sm:$0xff] %vm880_vm2, %v5843_v14 }
0x12a5   :  { %v5844_v3 = vpop.trf.xlu1 }
0x12a6   :  { %6157 = vst.msk [vmem:[%s10429_s4 + $0x38] sm:$0xff] %vm880_vm2, %v5844_v3 }

</bundles_post_ra>
